<compile_context>
chip_gen: v7x
topology: tpu7x:2x2x1
jax: 0.10.0
libtpu: 0.0.40
codegen_flags: <defaults>
</compile_context>

<pallas_src>
import functools

import jax
import jax.numpy as jnp
from jax.experimental import pallas as pl
from jax.experimental.pallas import tpu as pltpu

BN_EPS = 1e-5
LANE = 128


def _round_up(x, m):
    return (x + m - 1) // m * m


# ----------------------------------------------------------------------------
# Pass 1: BN batch statistics -> folded per-feature scale / shift.
# ----------------------------------------------------------------------------
def bn_stats_kernel(x_ref, w1_ref, gamma_ref, beta_ref,
                    scale_ref, shift_ref, sumx_ref, gram_ref, *, batch):
    i = pl.program_id(0)

    @pl.when(i == 0)
    def _():
        sumx_ref[...] = jnp.zeros_like(sumx_ref)
        gram_ref[...] = jnp.zeros_like(gram_ref)

    # Padded batch rows were zero-filled in the wrapper, so they contribute
    # nothing to either statistic -> no masking needed.
    x = x_ref[...]                                                 # [TB, S] bf16
    ones = jnp.ones((1, x.shape[0]), jnp.bfloat16)
    sumx_ref[...] += jnp.dot(ones, x, preferred_element_type=jnp.float32)
    # Gram matrix x^T x (contract the batch axis), f32 accumulation on the MXU.
    gram_ref[...] += jax.lax.dot_general(
        x, x, (((0,), (0,)), ((), ())), preferred_element_type=jnp.float32)

    @pl.when(i == pl.num_programs(0) - 1)
    def _():
        inv_n = 1.0 / float(batch)
        w1f = w1_ref[...].astype(jnp.float32)                      # exact cast
        mean = jnp.dot(sumx_ref[...], w1f,
                       preferred_element_type=jnp.float32) * inv_n  # [1, H1]
        e_h2 = jnp.sum(jnp.dot(gram_ref[...], w1f,
                               preferred_element_type=jnp.float32) * w1f,
                       axis=0, keepdims=True) * inv_n                # [1, H1]
        # Biased variance (PyTorch training-mode normalization).  Note: the
        # E[h^2]-E[h]^2 form is fine here because fc1's bias is cancelled by the
        # mean subtraction, so the activation mean stays small vs. its std.
        var = jnp.maximum(e_h2 - mean * mean, 0.0)
        scale = gamma_ref[...] * jax.lax.rsqrt(var + BN_EPS)
        scale_ref[...] = scale
        shift_ref[...] = beta_ref[...] - mean * scale


# ----------------------------------------------------------------------------
# Pass 2: fc1 -> folded BN -> relu -> fc2 -> relu -> fc3 -> tanh.
# ----------------------------------------------------------------------------
def actor_fwd_kernel(x_ref, w1_ref, scale_ref, shift_ref,
                     w2_ref, b2_ref, w3_ref, b3_ref, out_ref):
    h1 = jnp.dot(x_ref[...], w1_ref[...],
                 preferred_element_type=jnp.float32)                # [TB, H1]
    a1 = jnp.maximum(h1 * scale_ref[...] + shift_ref[...], 0.0)
    h2 = jnp.dot(a1.astype(jnp.bfloat16), w2_ref[...],
                 preferred_element_type=jnp.float32) + b2_ref[...]  # [TB, H2p]
    a2 = jnp.maximum(h2, 0.0)
    h3 = jnp.dot(a2.astype(jnp.bfloat16), w3_ref[...],
                 preferred_element_type=jnp.float32) + b3_ref[...]  # [TB, Ap]
    out_ref[...] = jnp.tanh(h3).astype(out_ref.dtype)


@functools.partial(jax.jit, static_argnames=("tile_b",))
def actor_forward(state, w1, gamma, beta, w2, b2, w3, b3, *, tile_b=1024):
    B, S = state.shape
    H1 = w1.shape[1]
    H2 = w2.shape[1]
    A = w3.shape[1]

    tb = min(_round_up(tile_b, 8), _round_up(B, 8))   # sublane-aligned batch tile
    b_pad = _round_up(B, tb)
    nb = b_pad // tb
    h2_pad = _round_up(H2, LANE)                      # 300 -> 384, lane-dense
    a_pad = _round_up(A, LANE)                        # lane-dense output slab

    # bf16 matmul operands (native MXU path, halves weight/state DMA); BN and
    # bias math stays f32 inside the kernels (v5e has no bf16 VPU).
    x = jnp.zeros((b_pad, S), jnp.bfloat16).at[:B].set(state.astype(jnp.bfloat16))
    w1b = w1.astype(jnp.bfloat16)
    w2b = jnp.zeros((H1, h2_pad), jnp.bfloat16).at[:, :H2].set(w2.astype(jnp.bfloat16))
    b2p = jnp.zeros((1, h2_pad), jnp.float32).at[:, :H2].set(b2)
    w3b = jnp.zeros((h2_pad, a_pad), jnp.bfloat16).at[:H2, :A].set(w3.astype(jnp.bfloat16))
    b3p = jnp.zeros((1, a_pad), jnp.float32).at[:, :A].set(b3)

    const = lambda shape: pl.BlockSpec(shape, lambda i: (0, 0))

    # ---- pass 1: batch statistics -> folded (scale, shift), computed once ----
    scale, shift = pl.pallas_call(
        functools.partial(bn_stats_kernel, batch=B),
        out_shape=(jax.ShapeDtypeStruct((1, H1), jnp.float32),
                   jax.ShapeDtypeStruct((1, H1), jnp.float32)),
        grid_spec=pltpu.PrefetchScalarGridSpec(
            num_scalar_prefetch=0,
            grid=(nb,),
            in_specs=[
                pl.BlockSpec((tb, S), lambda i: (i, 0)),   # state tile (streamed)
                const((S, H1)),                            # w1 (VMEM-resident)
                const((1, H1)), const((1, H1)),            # gamma, beta
            ],
            out_specs=[const((1, H1)), const((1, H1))],    # scale, shift
            scratch_shapes=[pltpu.VMEM((1, S), jnp.float32),   # sum_x
                            pltpu.VMEM((S, S), jnp.float32)],  # x^T x
        ),
        compiler_params=pltpu.CompilerParams(
            dimension_semantics=("arbitrary",),            # cross-tile accumulation
            vmem_limit_bytes=32 * 1024 * 1024,
        ),
    )(x, w1b, gamma, beta)

    # ---- pass 2: the actual MLP, one independent grid step per batch tile ----
    out = pl.pallas_call(
        actor_fwd_kernel,
        out_shape=jax.ShapeDtypeStruct((b_pad, a_pad), jnp.bfloat16),
        grid_spec=pltpu.PrefetchScalarGridSpec(
            num_scalar_prefetch=0,
            grid=(nb,),
            in_specs=[
                pl.BlockSpec((tb, S), lambda i: (i, 0)),   # state tile (streamed)
                const((S, H1)),                            # w1
                const((1, H1)), const((1, H1)),            # folded scale, shift
                const((H1, h2_pad)), const((1, h2_pad)),   # w2, b2 (padded)
                const((h2_pad, a_pad)), const((1, a_pad)), # w3, b3 (padded)
            ],
            out_specs=pl.BlockSpec((tb, a_pad), lambda i: (i, 0)),
        ),
        compiler_params=pltpu.CompilerParams(
            # Tiles are fully independent -> parallel (uses both TCs on v7x).
            dimension_semantics=("parallel",),
            vmem_limit_bytes=32 * 1024 * 1024,
        ),
    )(x, w1b, scale, shift, w2b, b2p, w3b, b3p)

    return out[:B, :A].astype(jnp.float32)


# ----------------------------------------------------------------------------
# Init mirroring the PyTorch module's reset_parameters() quirks.
# ----------------------------------------------------------------------------
def init_actor_params(key, state_size, action_size, fc1_units=400, fc2_units=300):
    """hidden_init() in the reference uses weight.size()[0] == out_features (a
    quirk of the original code); reproduced here.  Linear biases keep PyTorch's
    default U(-1/sqrt(in_features), +)."""
    ks = jax.random.split(key, 6)

    def u(k, shape, lim):
        return jax.random.uniform(k, shape, jnp.float32, -lim, lim)

    lim1 = 1.0 / jnp.sqrt(jnp.float32(fc1_units))   # hidden_init(fc1)
    lim2 = 1.0 / jnp.sqrt(jnp.float32(fc2_units))   # hidden_init(fc2)

    w1 = u(ks[0], (state_size, fc1_units), lim1)
    b1 = u(ks[1], (1, fc1_units), 1.0 / jnp.sqrt(jnp.float32(state_size)))
    w2 = u(ks[2], (fc1_units, fc2_units), lim2)
    b2 = u(ks[3], (1, fc2_units), 1.0 / jnp.sqrt(jnp.float32(fc1_units)))
    w3 = u(ks[4], (fc2_units, action_size), 0.003)
    b3 = u(ks[5], (1, action_size), 1.0 / jnp.sqrt(jnp.float32(fc2_units)))

    gamma = jnp.ones((1, fc1_units), jnp.float32)   # BatchNorm1d weight init
    beta = jnp.zeros((1, fc1_units), jnp.float32)   # BatchNorm1d bias init
    return w1, b1, gamma, beta, w2, b2, w3, b3


def actor_reference(state, w1, b1, gamma, beta, w2, b2, w3, b3):
    """Faithful f32 PyTorch semantics (training-mode BN, fc1 bias included)."""
    h1 = state @ w1 + b1
    mean = jnp.mean(h1, axis=0, keepdims=True)
    var = jnp.mean((h1 - mean) ** 2, axis=0, keepdims=True)   # biased variance
    a1 = jnp.maximum((h1 - mean) * jax.lax.rsqrt(var + BN_EPS) * gamma + beta, 0.0)
    a2 = jnp.maximum(a1 @ w2 + b2, 0.0)
    return jnp.tanh(a2 @ w3 + b3)


if __name__ == "__main__":
    STATE, ACTION = 33, 4          # Reacher-style dims; fc1=400, fc2=300 (defaults)
    B = 300                        # not a multiple of 8 -> exercises batch padding
    key = jax.random.PRNGKey(0)
    pkey, xkey = jax.random.split(key)

    w1, b1, gamma, beta, w2, b2, w3, b3 = init_actor_params(pkey, STATE, ACTION)
    state = jax.random.normal(xkey, (B, STATE), jnp.float32)

    ref = actor_reference(state, w1, b1, gamma, beta, w2, b2, w3, b3)

    # Default (single-tile) config, plus a small-tile config that exercises the
    # cross-tile BN statistics accumulation and the padded last tile.
    for tb in (1024, 128):
        out = actor_forward(state, w1, gamma, beta, w2, b2, w3, b3, tile_b=tb)
        out = jax.block_until_ready(out)
        assert out.shape == (B, ACTION)
        max_err = float(jnp.max(jnp.abs(out - ref)))
        assert max_err < 1e-2, f"tile_b={tb}: mismatch vs reference (max abs err {max_err:.2e})"
    print("KERNEL_OK")
</pallas_src>

<mosaic_0001>
module attributes {stable_mosaic.version = 11 : i64} {
  func.func @bn_stats_kernel(%arg0: i32, %arg1: memref<304x33xbf16, #tpu.memory_space<vmem>>, %arg2: memref<33x400xbf16, #tpu.memory_space<vmem>>, %arg3: memref<1x400xf32, #tpu.memory_space<vmem>>, %arg4: memref<1x400xf32, #tpu.memory_space<vmem>>, %arg5: memref<1x400xf32, #tpu.memory_space<vmem>>, %arg6: memref<1x400xf32, #tpu.memory_space<vmem>>, %arg7: memref<1x33xf32, #tpu.memory_space<vmem>>, %arg8: memref<33x33xf32, #tpu.memory_space<vmem>>) attributes {dimension_semantics = [#tpu.dimension_semantics<arbitrary>], iteration_bounds = array<i64: 1>, scalar_prefetch = 0 : i64, scratch_operands = 2 : i64, tpu.core_type = #tpu.core_type<tc>, window_params = [{transform_indices = @transform_0, window_bounds = array<i64: 304, 33>}, {pipeline_mode = #tpu.pipeline_mode<synchronous>, transform_indices = @transform_1, window_bounds = array<i64: 33, 400>}, {pipeline_mode = #tpu.pipeline_mode<synchronous>, transform_indices = @transform_2, window_bounds = array<i64: 1, 400>}, {pipeline_mode = #tpu.pipeline_mode<synchronous>, transform_indices = @transform_3, window_bounds = array<i64: 1, 400>}, {pipeline_mode = #tpu.pipeline_mode<synchronous>, transform_indices = @transform_4, window_bounds = array<i64: 1, 400>}, {pipeline_mode = #tpu.pipeline_mode<synchronous>, transform_indices = @transform_5, window_bounds = array<i64: 1, 400>}]} {
    %c0_i32 = arith.constant 0 : i32
    %0 = arith.cmpi eq, %arg0, %c0_i32 : i32
    %1 = arith.extui %0 : i1 to i32
    %c0_i32_0 = arith.constant 0 : i32
    %2 = arith.cmpi ne, %1, %c0_i32_0 : i32
    scf.if %2 {
      %cst_14 = arith.constant 0.000000e+00 : f32
      %16 = vector.broadcast %cst_14 : f32 to vector<1x33xf32>
      %c0_15 = arith.constant 0 : index
      %c0_16 = arith.constant 0 : index
      %17 = vector.load %arg7[%c0_15, %c0_16] : memref<1x33xf32, #tpu.memory_space<vmem>>, vector<1x33xf32>
      tpu.vector_store %arg7[%c0_15, %c0_16], %16 {strides = array<i32>} : memref<1x33xf32, #tpu.memory_space<vmem>>, vector<1x33xf32>,
      %cst_17 = arith.constant 0.000000e+00 : f32
      %18 = vector.broadcast %cst_17 : f32 to vector<33x33xf32>
      %c0_18 = arith.constant 0 : index
      %c0_19 = arith.constant 0 : index
      %19 = vector.load %arg8[%c0_18, %c0_19] : memref<33x33xf32, #tpu.memory_space<vmem>>, vector<33x33xf32>
      tpu.vector_store %arg8[%c0_18, %c0_19], %18 {strides = array<i32>} : memref<33x33xf32, #tpu.memory_space<vmem>>, vector<33x33xf32>,
    } else {
    }
    %c0 = arith.constant 0 : index
    %c0_1 = arith.constant 0 : index
    %3 = vector.load %arg1[%c0, %c0_1] : memref<304x33xbf16, #tpu.memory_space<vmem>>, vector<304x33xbf16>
    %cst = arith.constant 1.000000e+00 : bf16
    %4 = vector.broadcast %cst : bf16 to vector<1x304xbf16>
    %c0_2 = arith.constant 0 : index
    %c0_3 = arith.constant 0 : index
    %5 = vector.load %arg7[%c0_2, %c0_3] : memref<1x33xf32, #tpu.memory_space<vmem>>, vector<1x33xf32>
    %cst_4 = arith.constant dense<0.000000e+00> : vector<1x33xf32>
    %6 = tpu.matmul %4, %3, %cst_4 {dimension_numbers = #tpu.dot_dimension_numbers<[1], [0], [0], [1], [0, 0, 1, 1], [], []>} : vector<1x304xbf16>, vector<304x33xbf16>, vector<1x33xf32> -> vector<1x33xf32>
    %7 = arith.addf %5, %6 : vector<1x33xf32>
    %c0_5 = arith.constant 0 : index
    %c0_6 = arith.constant 0 : index
    %8 = vector.load %arg7[%c0_5, %c0_6] : memref<1x33xf32, #tpu.memory_space<vmem>>, vector<1x33xf32>
    tpu.vector_store %arg7[%c0_5, %c0_6], %7 {strides = array<i32>} : memref<1x33xf32, #tpu.memory_space<vmem>>, vector<1x33xf32>,
    %c0_7 = arith.constant 0 : index
    %c0_8 = arith.constant 0 : index
    %9 = vector.load %arg8[%c0_7, %c0_8] : memref<33x33xf32, #tpu.memory_space<vmem>>, vector<33x33xf32>
    %cst_9 = arith.constant dense<0.000000e+00> : vector<33x33xf32>
    %10 = tpu.matmul %3, %3, %cst_9 {dimension_numbers = #tpu.dot_dimension_numbers<[0], [0], [1], [1], [0, 1, 1, 1], [], []>} : vector<304x33xbf16>, vector<304x33xbf16>, vector<33x33xf32> -> vector<33x33xf32>
    %11 = arith.addf %9, %10 : vector<33x33xf32>
    %c0_10 = arith.constant 0 : index
    %c0_11 = arith.constant 0 : index
    %12 = vector.load %arg8[%c0_10, %c0_11] : memref<33x33xf32, #tpu.memory_space<vmem>>, vector<33x33xf32>
    tpu.vector_store %arg8[%c0_10, %c0_11], %11 {strides = array<i32>} : memref<33x33xf32, #tpu.memory_space<vmem>>, vector<33x33xf32>,
    %c0_i32_12 = arith.constant 0 : i32
    %13 = arith.cmpi eq, %arg0, %c0_i32_12 : i32
    %14 = arith.extui %13 : i1 to i32
    %c0_i32_13 = arith.constant 0 : i32
    %15 = arith.cmpi ne, %14, %c0_i32_13 : i32
    scf.if %15 {
      %c0_14 = arith.constant 0 : index
      %c0_15 = arith.constant 0 : index
      %16 = vector.load %arg2[%c0_14, %c0_15] : memref<33x400xbf16, #tpu.memory_space<vmem>>, vector<33x400xbf16>
      %17 = arith.extf %16 : vector<33x400xbf16> to vector<33x400xf32>
      %c0_16 = arith.constant 0 : index
      %c0_17 = arith.constant 0 : index
      %18 = vector.load %arg7[%c0_16, %c0_17] : memref<1x33xf32, #tpu.memory_space<vmem>>, vector<1x33xf32>
      %cst_18 = arith.constant dense<0.000000e+00> : vector<1x400xf32>
      %19 = tpu.matmul %18, %17, %cst_18 {dimension_numbers = #tpu.dot_dimension_numbers<[1], [0], [0], [1], [0, 0, 1, 1], [], []>} : vector<1x33xf32>, vector<33x400xf32>, vector<1x400xf32> -> vector<1x400xf32>
      %cst_19 = arith.constant 0.00333333341 : f32
      %20 = vector.broadcast %cst_19 : f32 to vector<1x400xf32>
      %21 = arith.mulf %19, %20 : vector<1x400xf32>
      %c0_20 = arith.constant 0 : index
      %c0_21 = arith.constant 0 : index
      %22 = vector.load %arg8[%c0_20, %c0_21] : memref<33x33xf32, #tpu.memory_space<vmem>>, vector<33x33xf32>
      %cst_22 = arith.constant dense<0.000000e+00> : vector<33x400xf32>
      %23 = tpu.matmul %22, %17, %cst_22 {dimension_numbers = #tpu.dot_dimension_numbers<[1], [0], [0], [1], [0, 0, 1, 1], [], []>} : vector<33x33xf32>, vector<33x400xf32>, vector<33x400xf32> -> vector<33x400xf32>
      %24 = arith.mulf %23, %17 : vector<33x400xf32>
      %cst_23 = arith.constant dense<0.000000e+00> : vector<400xf32>
      %25 = vector.multi_reduction <add>, %24, %cst_23 [0] : vector<33x400xf32> to vector<400xf32>
      %26 = vector.shape_cast %25 : vector<400xf32> to vector<1x400xf32>
      %cst_24 = arith.constant 0.00333333341 : f32
      %27 = vector.broadcast %cst_24 : f32 to vector<1x400xf32>
      %28 = arith.mulf %26, %27 : vector<1x400xf32>
      %29 = arith.mulf %21, %21 : vector<1x400xf32>
      %30 = arith.subf %28, %29 : vector<1x400xf32>
      %cst_25 = arith.constant 0.000000e+00 : f32
      %31 = vector.broadcast %cst_25 : f32 to vector<1x400xf32>
      %32 = arith.maximumf %30, %31 : vector<1x400xf32>
      %c0_26 = arith.constant 0 : index
      %c0_27 = arith.constant 0 : index
      %33 = vector.load %arg3[%c0_26, %c0_27] : memref<1x400xf32, #tpu.memory_space<vmem>>, vector<1x400xf32>
      %cst_28 = arith.constant 9.99999974E-6 : f32
      %34 = vector.broadcast %cst_28 : f32 to vector<1x400xf32>
      %35 = arith.addf %32, %34 : vector<1x400xf32>
      %36 = math.rsqrt %35 : vector<1x400xf32>
      %37 = arith.mulf %33, %36 : vector<1x400xf32>
      %c0_29 = arith.constant 0 : index
      %c0_30 = arith.constant 0 : index
      %38 = vector.load %arg5[%c0_29, %c0_30] : memref<1x400xf32, #tpu.memory_space<vmem>>, vector<1x400xf32>
      tpu.vector_store %arg5[%c0_29, %c0_30], %37 {strides = array<i32>} : memref<1x400xf32, #tpu.memory_space<vmem>>, vector<1x400xf32>,
      %c0_31 = arith.constant 0 : index
      %c0_32 = arith.constant 0 : index
      %39 = vector.load %arg4[%c0_31, %c0_32] : memref<1x400xf32, #tpu.memory_space<vmem>>, vector<1x400xf32>
      %40 = arith.mulf %21, %37 : vector<1x400xf32>
      %41 = arith.subf %39, %40 : vector<1x400xf32>
      %c0_33 = arith.constant 0 : index
      %c0_34 = arith.constant 0 : index
      %42 = vector.load %arg6[%c0_33, %c0_34] : memref<1x400xf32, #tpu.memory_space<vmem>>, vector<1x400xf32>
      tpu.vector_store %arg6[%c0_33, %c0_34], %41 {strides = array<i32>} : memref<1x400xf32, #tpu.memory_space<vmem>>, vector<1x400xf32>,
    } else {
    }
    return
  }
  func.func @transform_0(%arg0: i32) -> (i32, i32) {
    %c0_i32 = arith.constant 0 : i32
    %c0_i32_0 = arith.constant 0 : i32
    return %arg0, %c0_i32 : i32, i32
  }
  func.func @transform_1(%arg0: i32) -> (i32, i32) {
    %c0_i32 = arith.constant 0 : i32
    %c0_i32_0 = arith.constant 0 : i32
    %c0_i32_1 = arith.constant 0 : i32
    return %c0_i32, %c0_i32_0 : i32, i32
  }
  func.func @transform_2(%arg0: i32) -> (i32, i32) {
    %c0_i32 = arith.constant 0 : i32
    %c0_i32_0 = arith.constant 0 : i32
    %c0_i32_1 = arith.constant 0 : i32
    return %c0_i32, %c0_i32_0 : i32, i32
  }
  func.func @transform_3(%arg0: i32) -> (i32, i32) {
    %c0_i32 = arith.constant 0 : i32
    %c0_i32_0 = arith.constant 0 : i32
    %c0_i32_1 = arith.constant 0 : i32
    return %c0_i32, %c0_i32_0 : i32, i32
  }
  func.func @transform_4(%arg0: i32) -> (i32, i32) {
    %c0_i32 = arith.constant 0 : i32
    %c0_i32_0 = arith.constant 0 : i32
    %c0_i32_1 = arith.constant 0 : i32
    return %c0_i32, %c0_i32_0 : i32, i32
  }
  func.func @transform_5(%arg0: i32) -> (i32, i32) {
    %c0_i32 = arith.constant 0 : i32
    %c0_i32_0 = arith.constant 0 : i32
    %c0_i32_1 = arith.constant 0 : i32
    return %c0_i32, %c0_i32_0 : i32, i32
  }
}

module attributes {stable_mosaic.version = 11 : i64} {
  func.func @actor_fwd_kernel(%arg0: i32, %arg1: memref<304x33xbf16, #tpu.memory_space<vmem>>, %arg2: memref<33x400xbf16, #tpu.memory_space<vmem>>, %arg3: memref<1x400xf32, #tpu.memory_space<vmem>>, %arg4: memref<1x400xf32, #tpu.memory_space<vmem>>, %arg5: memref<400x384xbf16, #tpu.memory_space<vmem>>, %arg6: memref<1x384xf32, #tpu.memory_space<vmem>>, %arg7: memref<384x128xbf16, #tpu.memory_space<vmem>>, %arg8: memref<1x128xf32, #tpu.memory_space<vmem>>, %arg9: memref<304x128xbf16, #tpu.memory_space<vmem>>) attributes {dimension_semantics = [#tpu.dimension_semantics<parallel>], iteration_bounds = array<i64: 1>, scalar_prefetch = 0 : i64, scratch_operands = 0 : i64, tpu.core_type = #tpu.core_type<tc>, window_params = [{transform_indices = @transform_0, window_bounds = array<i64: 304, 33>}, {pipeline_mode = #tpu.pipeline_mode<synchronous>, transform_indices = @transform_1, window_bounds = array<i64: 33, 400>}, {pipeline_mode = #tpu.pipeline_mode<synchronous>, transform_indices = @transform_2, window_bounds = array<i64: 1, 400>}, {pipeline_mode = #tpu.pipeline_mode<synchronous>, transform_indices = @transform_3, window_bounds = array<i64: 1, 400>}, {pipeline_mode = #tpu.pipeline_mode<synchronous>, transform_indices = @transform_4, window_bounds = array<i64: 400, 384>}, {pipeline_mode = #tpu.pipeline_mode<synchronous>, transform_indices = @transform_5, window_bounds = array<i64: 1, 384>}, {pipeline_mode = #tpu.pipeline_mode<synchronous>, transform_indices = @transform_6, window_bounds = array<i64: 384, 128>}, {pipeline_mode = #tpu.pipeline_mode<synchronous>, transform_indices = @transform_7, window_bounds = array<i64: 1, 128>}, {transform_indices = @transform_8, window_bounds = array<i64: 304, 128>}]} {
    %c0 = arith.constant 0 : index
    %c0_0 = arith.constant 0 : index
    %0 = vector.load %arg1[%c0, %c0_0] : memref<304x33xbf16, #tpu.memory_space<vmem>>, vector<304x33xbf16>
    %c0_1 = arith.constant 0 : index
    %c0_2 = arith.constant 0 : index
    %1 = vector.load %arg2[%c0_1, %c0_2] : memref<33x400xbf16, #tpu.memory_space<vmem>>, vector<33x400xbf16>
    %cst = arith.constant dense<0.000000e+00> : vector<304x400xf32>
    %2 = tpu.matmul %0, %1, %cst {dimension_numbers = #tpu.dot_dimension_numbers<[1], [0], [0], [1], [0, 0, 1, 1], [], []>} : vector<304x33xbf16>, vector<33x400xbf16>, vector<304x400xf32> -> vector<304x400xf32>
    %c0_3 = arith.constant 0 : index
    %c0_4 = arith.constant 0 : index
    %3 = vector.load %arg3[%c0_3, %c0_4] : memref<1x400xf32, #tpu.memory_space<vmem>>, vector<1x400xf32>
    %4 = vector.broadcast %3 : vector<1x400xf32> to vector<304x400xf32>
    %5 = arith.mulf %2, %4 : vector<304x400xf32>
    %c0_5 = arith.constant 0 : index
    %c0_6 = arith.constant 0 : index
    %6 = vector.load %arg4[%c0_5, %c0_6] : memref<1x400xf32, #tpu.memory_space<vmem>>, vector<1x400xf32>
    %7 = vector.broadcast %6 : vector<1x400xf32> to vector<304x400xf32>
    %8 = arith.addf %5, %7 : vector<304x400xf32>
    %cst_7 = arith.constant 0.000000e+00 : f32
    %9 = vector.broadcast %cst_7 : f32 to vector<304x400xf32>
    %10 = arith.maximumf %8, %9 : vector<304x400xf32>
    %11 = arith.truncf %10 : vector<304x400xf32> to vector<304x400xbf16>
    %c0_8 = arith.constant 0 : index
    %c0_9 = arith.constant 0 : index
    %12 = vector.load %arg5[%c0_8, %c0_9] : memref<400x384xbf16, #tpu.memory_space<vmem>>, vector<400x384xbf16>
    %cst_10 = arith.constant dense<0.000000e+00> : vector<304x384xf32>
    %13 = tpu.matmul %11, %12, %cst_10 {dimension_numbers = #tpu.dot_dimension_numbers<[1], [0], [0], [1], [0, 0, 1, 1], [], []>} : vector<304x400xbf16>, vector<400x384xbf16>, vector<304x384xf32> -> vector<304x384xf32>
    %c0_11 = arith.constant 0 : index
    %c0_12 = arith.constant 0 : index
    %14 = vector.load %arg6[%c0_11, %c0_12] : memref<1x384xf32, #tpu.memory_space<vmem>>, vector<1x384xf32>
    %15 = vector.broadcast %14 : vector<1x384xf32> to vector<304x384xf32>
    %16 = arith.addf %13, %15 : vector<304x384xf32>
    %cst_13 = arith.constant 0.000000e+00 : f32
    %17 = vector.broadcast %cst_13 : f32 to vector<304x384xf32>
    %18 = arith.maximumf %16, %17 : vector<304x384xf32>
    %19 = arith.truncf %18 : vector<304x384xf32> to vector<304x384xbf16>
    %c0_14 = arith.constant 0 : index
    %c0_15 = arith.constant 0 : index
    %20 = vector.load %arg7[%c0_14, %c0_15] : memref<384x128xbf16, #tpu.memory_space<vmem>>, vector<384x128xbf16>
    %cst_16 = arith.constant dense<0.000000e+00> : vector<304x128xf32>
    %21 = tpu.matmul %19, %20, %cst_16 {dimension_numbers = #tpu.dot_dimension_numbers<[1], [0], [0], [1], [0, 0, 1, 1], [], []>} : vector<304x384xbf16>, vector<384x128xbf16>, vector<304x128xf32> -> vector<304x128xf32>
    %c0_17 = arith.constant 0 : index
    %c0_18 = arith.constant 0 : index
    %22 = vector.load %arg8[%c0_17, %c0_18] : memref<1x128xf32, #tpu.memory_space<vmem>>, vector<1x128xf32>
    %23 = vector.broadcast %22 : vector<1x128xf32> to vector<304x128xf32>
    %24 = arith.addf %21, %23 : vector<304x128xf32>
    %25 = math.tanh %24 : vector<304x128xf32>
    %26 = arith.truncf %25 : vector<304x128xf32> to vector<304x128xbf16>
    %c0_19 = arith.constant 0 : index
    %c0_20 = arith.constant 0 : index
    %27 = vector.load %arg9[%c0_19, %c0_20] : memref<304x128xbf16, #tpu.memory_space<vmem>>, vector<304x128xbf16>
    tpu.vector_store %arg9[%c0_19, %c0_20], %26 {strides = array<i32>} : memref<304x128xbf16, #tpu.memory_space<vmem>>, vector<304x128xbf16>,
    return
  }
  func.func @transform_0(%arg0: i32) -> (i32, i32) {
    %c0_i32 = arith.constant 0 : i32
    %c0_i32_0 = arith.constant 0 : i32
    return %arg0, %c0_i32 : i32, i32
  }
  func.func @transform_1(%arg0: i32) -> (i32, i32) {
    %c0_i32 = arith.constant 0 : i32
    %c0_i32_0 = arith.constant 0 : i32
    %c0_i32_1 = arith.constant 0 : i32
    return %c0_i32, %c0_i32_0 : i32, i32
  }
  func.func @transform_2(%arg0: i32) -> (i32, i32) {
    %c0_i32 = arith.constant 0 : i32
    %c0_i32_0 = arith.constant 0 : i32
    %c0_i32_1 = arith.constant 0 : i32
    return %c0_i32, %c0_i32_0 : i32, i32
  }
  func.func @transform_3(%arg0: i32) -> (i32, i32) {
    %c0_i32 = arith.constant 0 : i32
    %c0_i32_0 = arith.constant 0 : i32
    %c0_i32_1 = arith.constant 0 : i32
    return %c0_i32, %c0_i32_0 : i32, i32
  }
  func.func @transform_4(%arg0: i32) -> (i32, i32) {
    %c0_i32 = arith.constant 0 : i32
    %c0_i32_0 = arith.constant 0 : i32
    %c0_i32_1 = arith.constant 0 : i32
    return %c0_i32, %c0_i32_0 : i32, i32
  }
  func.func @transform_5(%arg0: i32) -> (i32, i32) {
    %c0_i32 = arith.constant 0 : i32
    %c0_i32_0 = arith.constant 0 : i32
    %c0_i32_1 = arith.constant 0 : i32
    return %c0_i32, %c0_i32_0 : i32, i32
  }
  func.func @transform_6(%arg0: i32) -> (i32, i32) {
    %c0_i32 = arith.constant 0 : i32
    %c0_i32_0 = arith.constant 0 : i32
    %c0_i32_1 = arith.constant 0 : i32
    return %c0_i32, %c0_i32_0 : i32, i32
  }
  func.func @transform_7(%arg0: i32) -> (i32, i32) {
    %c0_i32 = arith.constant 0 : i32
    %c0_i32_0 = arith.constant 0 : i32
    %c0_i32_1 = arith.constant 0 : i32
    return %c0_i32, %c0_i32_0 : i32, i32
  }
  func.func @transform_8(%arg0: i32) -> (i32, i32) {
    %c0_i32 = arith.constant 0 : i32
    %c0_i32_0 = arith.constant 0 : i32
    return %arg0, %c0_i32 : i32, i32
  }
}

</mosaic_0001>

<bundles_post_ra>
// kernel: actor_forward.2
= control target key start
LH: loop header
LB: loop body
LE: loop exit
PB: predicated region body
PF: predicated region fallthrough
CT: control target
= control target key end

     0   :  { %v1284_v1 = vmov 0.0   ;;  %vm1285_vm0 = vmmov 0   ;;  %v1286_v15 = vmov 1065369472   ;;  %vm186_vm1 = vcmask 392192   ;;  %s1600_s0 = inlined_call_operand.vmem [shape: bf16[304,33], index: 0, kind: input, shape index: {}]   ;;  %s1601_s1 = inlined_call_operand.vmem [shape: bf16[33,400], index: 1, kind: input, shape index: {}]   ;;  %s1602_s2 = inlined_call_operand.vmem [shape: f32[1,400], index: 2, kind: input, shape index: {}]   ;;  %s1603_s4 = inlined_call_operand.vmem [shape: f32[1,400], index: 4, kind: output, shape index: {0}]   ;;  %s1604_s3 = inlined_call_operand.vmem [shape: f32[1,400], index: 3, kind: input, shape index: {}]   ;;  %s1605_s5 = inlined_call_operand.vmem [shape: f32[1,400], index: 5, kind: output, shape index: {1}]  }
   0x1   :  { %v1249_v0 = vld [vmem:[%s1600_s0 + $0x40] sm:$0xff]   ;;  %1168 = vmatprep.subr.bf16.mxu1 %v1284_v1  ;;  %1174 = vmatprep.mubr.msk.bf16.mxu1 %vm1285_vm0, %v1284_v1  ;;  %v1250_v2 = vld [vmem:[%s1600_s0 + $0x48] sm:$0xff]   ;;  %v1251_v4 = vld [vmem:[%s1600_s0 + $0x50] sm:$0xff]   ;;  %vm25_vm2 = vcmask 262144   ;;  %vm27_vm3 = vcmask 269312   ;;  %vm495_vm4 = vcmask 1040384  }
   0x2   :  { %294 = vxpose.xlu0.c.b16.start [1/8] (narrow) %v1249_v0, 48  ;;  %1102 = vmatprep.subr.bf16.mxu0 %v1249_v0  ;;  %v1254_v3 = vld [vmem:[%s1600_s0] sm:$0xff]   ;;  %v1256_v5 = vld [vmem:[%s1600_s0 + $0x8] sm:$0xff]   ;;  %v1252_v6 = vld [vmem:[%s1600_s0 + $0x58] sm:$0xff]   ;;  %26 = vst.msk [vmem:[#allocation2] sm:$0x1] %vm25_vm2, %v1284_v1 }
   0x3   :  { %278 = vxpose.xlu1.c.b16.start [1/8] (narrow) %v1254_v3, 48  ;;  %1103 = vmatpush3.bf16.msra.mxu0 %v1254_v3  ;;  %v1258_v7 = vld [vmem:[%s1600_s0 + $0x10] sm:$0xff]   ;;  %v1261_v8 = vld [vmem:[%s1600_s0 + $0x80] sm:$0xff]   ;;  %v1260_v10 = vld [vmem:[%s1600_s0 + $0x18] sm:$0xff]   ;;  %32 = vst.msk [vmem:[#allocation3 + $0x20] sm:$0x1] %vm25_vm2, %v1284_v1 }
   0x4   :  { %1104 = vmatprep.subr.bf16.mxu0 %v1250_v2  ;;  %v1253_v9 = vld [vmem:[%s1600_s0 + $0x60] sm:$0xff]   ;;  %1169 = vmatpush3.bf16.msra.mxu1 %v1261_v8  ;;  %v1263_v11 = vld [vmem:[%s1600_s0 + $0x88] sm:$0xff]   ;;  %v1265_v14 = vld [vmem:[%s1600_s0 + $0x90] sm:$0xff]   ;;  %28 = vst.msk [vmem:[#allocation3] sm:$0xff] %vm27_vm3, %v1284_v1  ;;  %vm917_vm5 = vcmask 130048   ;;  %vm925_vm6 = vcmask 122880  }
   0x5   :  { %1170 = vmatprep.subr.bf16.mxu1 %v1284_v1  ;;  %v1255_v12 = vld [vmem:[%s1600_s0 + $0x68] sm:$0xff]   ;;  %v1262_v13 = vld [vmem:[%s1600_s0 + $0x20] sm:$0xff]   ;;  %222 = vmatprep.mubr.bf16.mxu0 %v1286_v15  ;;  %v1257_v16 = vld [vmem:[%s1600_s0 + $0x70] sm:$0xff]   ;;  %29 = vst.msk [vmem:[#allocation3 + $0x8] sm:$0xff] %vm27_vm3, %v1284_v1 }
   0x6   :  { %295 = vxpose.xlu0.c.b16.cont [2/8] (narrow) %v1250_v2, 48  ;;  %v1264_v17 = vld [vmem:[%s1600_s0 + $0x28] sm:$0xff]   ;;  %v1259_v18 = vld [vmem:[%s1600_s0 + $0x78] sm:$0xff]   ;;  %v1266_v19 = vld [vmem:[%s1600_s0 + $0x30] sm:$0xff]   ;;  %30 = vst.msk [vmem:[#allocation3 + $0x10] sm:$0xff] %vm27_vm3, %v1284_v1 }
   0x7   :  { %279 = vxpose.xlu1.c.b16.cont [2/8] (narrow) %v1256_v5, 48  ;;  %1105 = vmatpush3.bf16.msra.mxu0 %v1256_v5  ;;  %v1267_v20 = vld [vmem:[%s1600_s0 + $0x38] sm:$0xff]   ;;  %v1394_v27 = vld [vmem:[%s1601_s1] sm:$0xff]  ;;  %v1399_v28 = vld [vmem:[%s1601_s1 + $0x10] sm:$0xff]  ;;  %31 = vst.msk [vmem:[#allocation3 + $0x18] sm:$0xff] %vm27_vm3, %v1284_v1 }
   0x8   :  { %1106 = vmatprep.subr.bf16.mxu0 %v1251_v4  ;;  %1171 = vmatpush3.bf16.msra.mxu1 %v1263_v11  ;;  %v1404_v29 = vld [vmem:[%s1601_s1 + $0x8] sm:$0xff]  ;;  %v1228_v30 = vcombine.high %v1394_v27, %v1399_v28  ;;  %v1419_v31 = vld [vmem:[%s1601_s1 + $0x18] sm:$0xff]  ;;  %v1424_v32 = vld [vmem:[%s1601_s1 + $0x20] sm:$0xff]  ;;  %v1229_v40 = vcombine.low %v1394_v27, %v1399_v28 }
   0x9   :  { %1172 = vmatprep.subr.bf16.mxu1 %v1284_v1  ;;  %v1232_v33 = vcombine.high %v1404_v29, %v1419_v31  ;;  %v1233_v34 = vcombine.low %v1404_v29, %v1419_v31  ;;  %v1433_v35 = vld [vmem:[%s1601_s1 + $0x30] sm:$0xff]  ;;  %v1438_v36 = vld [vmem:[%s1601_s1 + $0x28] sm:$0xff]  ;;  %v1443_v37 = vld [vmem:[%s1601_s1 + $0x38] sm:$0xff] }
   0xa   :  { %296 = vxpose.xlu0.c.b16.cont [3/8] (narrow) %v1251_v4, 48  ;;  %v1234_v38 = vcombine.high %v1438_v36, %v1443_v37  ;;  %v470_v39 = vld [vmem:[%s1601_s1 + $0x48] sm:$0x11]  ;;  %v1230_v41 = vcombine.high %v1424_v32, %v1433_v35  ;;  %v1235_v42 = vcombine.low %v1438_v36, %v1443_v37  ;;  %v469_v44 = vld [vmem:[%s1601_s1 + $0x40] sm:$0x11]  ;;  %v1231_v46 = vcombine.low %v1424_v32, %v1433_v35 }
   0xb   :  { %280 = vxpose.xlu1.c.b16.cont [3/8] (narrow) %v1258_v7, 48  ;;  %1107 = vmatpush3.bf16.msra.mxu0 %v1258_v7  ;;  %v1459_v45 = vunpack.c.h.bf16 %v470_v39  ;;  %v1466_v47 = vunpack.c.h.bf16 %v469_v44  ;;  %v1468_v48 = vunpack.c.l.bf16 %v470_v39  ;;  %v1472_v50 = vunpack.c.l.bf16 %v469_v44  ;;  %v71_v60 = vld [vmem:[#allocation2] sm:$0x1] }
   0xc   :  { %1108 = vmatprep.subr.bf16.mxu0 %v1252_v6  ;;  %1173 = vmatpush3.bf16.msra.mxu1 %v1265_v14 }
   0xd   :  { %1128 = vmatprep.subr.bf16.mxu1 %v1249_v0 }
   0xe   :  { %297 = vxpose.xlu0.c.b16.cont [4/8] (narrow) %v1252_v6, 48 }
   0xf   :  { %281 = vxpose.xlu1.c.b16.cont [4/8] (narrow) %v1260_v10, 48  ;;  %1109 = vmatpush3.bf16.msra.mxu0 %v1260_v10 }
  0x10   :  { %1110 = vmatprep.subr.bf16.mxu0 %v1253_v9  ;;  %1175 = vmatmul.mubr.msk.bf16.vlgmr.msra.gmra.mrb[0].mxu1 %vm186_vm1, %v1286_v15 }
  0x11   :  { %1129 = vmatpush3.bf16.msra.mxu1 %v1254_v3 }
  0x12   :  { %298 = vxpose.xlu0.c.b16.cont [5/8] (narrow) %v1253_v9, 48  ;;  %1130 = vmatprep.subr.bf16.mxu1 %v1250_v2 }
  0x13   :  { %282 = vxpose.xlu1.c.b16.cont [5/8] (narrow) %v1262_v13, 48  ;;  %1111 = vmatpush3.bf16.msra.mxu0 %v1262_v13 }
  0x14   :  { %1112 = vmatprep.subr.bf16.mxu0 %v1255_v12 }
  0x15   :  { %1131 = vmatpush3.bf16.msra.mxu1 %v1256_v5 }
  0x16   :  { %299 = vxpose.xlu0.c.b16.cont [6/8] (narrow) %v1255_v12, 48  ;;  %1132 = vmatprep.subr.bf16.mxu1 %v1251_v4 }
  0x17   :  { %283 = vxpose.xlu1.c.b16.cont [6/8] (narrow) %v1264_v17, 48  ;;  %1113 = vmatpush3.bf16.msra.mxu0 %v1264_v17 }
  0x18   :  { %1114 = vmatprep.subr.bf16.mxu0 %v1257_v16 }
  0x19   :  { %1133 = vmatpush3.bf16.msra.mxu1 %v1258_v7 }
  0x1a   :  { %300 = vxpose.xlu0.c.b16.cont [7/8] (narrow) %v1257_v16, 48  ;;  %1134 = vmatprep.subr.bf16.mxu1 %v1252_v6 }
  0x1b   :  { %284 = vxpose.xlu1.c.b16.cont [7/8] (narrow) %v1266_v19, 48  ;;  %1115 = vmatpush3.bf16.msra.mxu0 %v1266_v19 }
  0x1c   :  { %1116 = vmatprep.subr.bf16.mxu0 %v1259_v18 }
  0x1d   :  { %1135 = vmatpush3.bf16.msra.mxu1 %v1260_v10 }
  0x1e   :  { %301 = vxpose.xlu0.c.b16.end [8/8] (narrow) %v1259_v18, 48  ;;  %1136 = vmatprep.subr.bf16.mxu1 %v1253_v9 }
  0x1f   :  { %285 = vxpose.xlu1.c.b16.end [8/8] (narrow) %v1267_v20, 48  ;;  %1117 = vmatpush3.bf16.msra.mxu0 %v1267_v20 }
  0x20   :  { %1178 = vmatprep.subr.bf16.mxu0 %v1284_v1 }
  0x21   :  { %1137 = vmatpush3.bf16.msra.mxu1 %v1262_v13 }
  0x22   :  { %310 = vxpose.xlu0.c.b16.start [1/3] (short) (narrow) %v1261_v8, 48  ;;  %223 = vmatmul.mubr.bf16.vlgmr.msra.gmra.mrb[0].mxu0 %v1286_v15 }
  0x23   :  { %1179 = vmatpush3.bf16.msra.mxu0 %v1261_v8  ;;  %1184 = vmatprep.mubr.msk.bf16.mxu0 %vm1285_vm0, %v1284_v1 }
  0x24   :  { %1180 = vmatprep.subr.bf16.mxu0 %v1284_v1  ;;  %1138 = vmatprep.subr.bf16.mxu1 %v1255_v12 }
  0x25   :  { %1139 = vmatpush3.bf16.msra.mxu1 %v1264_v17 }
  0x26   :  { %311 = vxpose.xlu0.c.b16.cont [2/3] (short) (narrow) %v1263_v11, 48  ;;  %1140 = vmatprep.subr.bf16.mxu1 %v1257_v16 }
  0x27   :  { %1181 = vmatpush3.bf16.msra.mxu0 %v1263_v11 }
  0x28   :  { %1182 = vmatprep.subr.bf16.mxu0 %v1284_v1 }
  0x29   :  { %1141 = vmatpush3.bf16.msra.mxu1 %v1266_v19  ;;  %v273_v19 = vld [vmem:[#allocation3] sm:$0xff] }
  0x2a   :  { %312 = vxpose.xlu0.c.b16.end [3/3] (short) (narrow) %v1265_v14, 48  ;;  %1142 = vmatprep.subr.bf16.mxu1 %v1259_v18 }
  0x2b   :  { %1183 = vmatpush3.bf16.msra.mxu0 %v1265_v14 }
  0x2c   :  { %1197 = vmatprep.subr.bf16.mxu0 %v1228_v30 }
  0x2d   :  { %1143 = vmatpush3.bf16.msra.mxu1 %v1267_v20 }
  0x2e   :  { %1205 = vmatprep.subr.bf16.mxu1 %v1232_v33 }
  0x68   :  { %v302_v21 = vpop.trf.xlu0 }
  0x69   :  { %367 = vmatprep.mubr.bf16.mxu1 %v302_v21  ;;  %v286_v23 = vpop.trf.xlu1 }
  0x6a   :  { %368 = vmatmul.mubr.bf16.vlgmr.msra.gmra.mrb[4].mxu1 %v286_v23  ;;  %v274_v23 = vld [vmem:[#allocation3 + $0x8] sm:$0xff] }
  0x6b   :  { %1207 = vmatpush1.bf16.msra.mxu1 %v1233_v34 }
  0x6c   :  { %v303_v22 = vpop.trf.xlu0  ;;  %1209 = vmatprep.subr.bf16.mxu1 %v1234_v38 }
  0x6d   :  { %375 = vmatprep.mubr.bf16.mxu1 %v303_v22  ;;  %v287_v24 = vpop.trf.xlu1 }
  0x6f   :  { %1211 = vmatpush1.bf16.msra.mxu1 %v1235_v42 }
  0x70   :  { %v304_v25 = vpop.trf.xlu0  ;;  %1085 = vmatprep.subr.msk.mxu1 %vm495_vm4, %v1459_v45 }
  0x71   :  { %v288_v26 = vpop.trf.xlu1 }
  0x72   :  { %376 = vmatmul.mubr.bf16.gmra.mrb[8].mxu1 %v287_v24 }
  0x73   :  { %383 = vmatprep.mubr.bf16.mxu1 %v304_v25  ;;  %1086 = vmatpush1.msk.msra.mxu1 %vm495_vm4, %v1468_v48 }
  0x74   :  { %1221 = vmatprep.subr.bf16.mxu1 %v1232_v33 }
  0x7a   :  { %384 = vmatmul.mubr.bf16.gmra.mrb[12].mxu1 %v288_v26 }
  0x7b   :  { %643 = vmatprep.mubr.f32.mxu1 %v1284_v1 }
  0x88   :  { %v318_v43 = vpop.trf.xlu0 }
  0x89   :  { %1185 = vmatmul.mubr.msk.bf16.vlgmr.msra.gmra.mrb[4].mxu0 %vm186_vm1, %v318_v43 }
  0x8a   :  { %1188 = vmatprep.mubr.msk.bf16.mxu0 %vm1285_vm0, %v1284_v1  ;;  %1199 = vmatpush1.bf16.msra.mxu0 %v1229_v40 }
  0x8b   :  { %1201 = vmatprep.subr.bf16.mxu0 %v1230_v41 }
  0x8c   :  { %v319_v49 = vpop.trf.xlu0 }
  0x8e   :  { %1203 = vmatpush1.bf16.msra.mxu0 %v1231_v46 }
  0x8f   :  { %1082 = vmatprep.subr.msk.mxu0 %vm495_vm4, %v1466_v47 }
  0x90   :  { %v320_v51 = vpop.trf.xlu0 }
  0x91   :  { %1189 = vmatmul.mubr.msk.bf16.gmra.mrb[8].mxu0 %vm186_vm1, %v319_v49 }
  0x92   :  { %1192 = vmatprep.mubr.msk.bf16.mxu0 %vm1285_vm0, %v1284_v1  ;;  %1083 = vmatpush1.msk.msra.mxu0 %vm495_vm4, %v1472_v50 }
  0x93   :  { %1213 = vmatprep.subr.bf16.mxu0 %v1228_v30 }
  0x99   :  { %1193 = vmatmul.mubr.msk.bf16.gmra.mrb[12].mxu0 %vm186_vm1, %v320_v51 }
  0x9a   :  { %572 = vmatprep.mubr.f32.mxu0 %v1284_v1 }
  0xe3   :  { %v264_v52 = vpop.f32.mrb[0].mxu1 }
  0xe4   :  { %v1176_v53 = vpop.f32.mrb[1].mxu1 }
  0xe5   :  { %v267_v54 = vpop.f32.mrb[2].mxu1 }
  0xe6   :  { %v1177_v55 = vpop.f32.mrb[3].mxu1 }
  0xf5   :  { %v1118_v56 = vpop.f32.mrb[0].mxu0 }
  0xf6   :  { %v1119_v57 = vpop.f32.mrb[1].mxu0 }
  0xf7   :  { %v1120_v58 = vadd.f32 %v1119_v57, %v1118_v56  ;;  %v1121_v59 = vpop.f32.mrb[2].mxu0 }
  0xf8   :  { %v1122_v61 = vpop.f32.mrb[3].mxu0 }
  0xf9   :  { %v265_v62 = vadd.f32 %v1120_v58, %v264_v52  ;;  %v277_v52 = vld [vmem:[#allocation3 + $0x20] sm:$0x1] }
  0xfb   :  { %v270_v63 = vadd.f32 %v265_v62, %v71_v60 }
  0xfd   :  { %272 = vst.msk [vmem:[#allocation2] sm:$0x1] %vm25_vm2, %v270_v63 }
 0x104   :  { %v491_v0 = vld [vmem:[#allocation2] sm:$0x1] }
 0x105   :  { %1084 = vmatmul.mubr.msk.f32.vlgmr.msra.gmra.mrb[16].mxu0 %vm27_vm3, %v491_v0  ;;  %1087 = vmatmul.mubr.msk.f32.vlgmr.msra.gmra.mrb[16].mxu1 %vm27_vm3, %v491_v0 }
 0x106   :  { %1215 = vmatpush1.bf16.msra.mxu0 %v1229_v40  ;;  %1223 = vmatpush1.bf16.msra.mxu1 %v1233_v34  ;;  %v275_v34 = vld [vmem:[#allocation3 + $0x10] sm:$0xff] }
 0x107   :  { %1217 = vmatprep.subr.bf16.mxu0 %v1230_v41  ;;  %1225 = vmatprep.subr.bf16.mxu1 %v1234_v38  ;;  %v276_v41 = vld [vmem:[#allocation3 + $0x18] sm:$0xff] }
 0x108   :  { %738 = vmatprep.mubr.f32.mxu0 %v1284_v1  ;;  %833 = vmatprep.mubr.f32.mxu1 %v1284_v1 }
 0x10a   :  { %1219 = vmatpush1.bf16.msra.mxu0 %v1231_v46  ;;  %1227 = vmatpush1.bf16.msra.mxu1 %v1235_v42 }
 0x10b   :  { %1088 = vmatprep.subr.msk.mxu0 %vm495_vm4, %v1466_v47  ;;  %1095 = vmatprep.subr.msk.mxu1 %vm495_vm4, %v1459_v45 }
 0x10e   :  { %1089 = vmatpush1.msk.msra.mxu0 %vm495_vm4, %v1472_v50  ;;  %1096 = vmatpush1.msk.msra.mxu1 %vm495_vm4, %v1468_v48 }
 0x13d   :  { %v1144_v2 = vpop.f32.mrb[4].mxu1 }
 0x13e   :  { %v1145_v3 = vpop.f32.mrb[5].mxu1 }
 0x13f   :  { %v1146_v4 = vadd.f32 %v1145_v3, %v1144_v2  ;;  %v1147_v5 = vpop.f32.mrb[6].mxu1 }
 0x140   :  { %v1148_v6 = vpop.f32.mrb[7].mxu1 }
 0x141   :  { %v1149_v7 = vadd.f32 %v1148_v6, %v1147_v5  ;;  %v474_v6 = vunpack.c.h.bf16 %v1404_v29 }
 0x145   :  { %v1150_v8 = vpop.f32.mrb[8].mxu1 }
 0x146   :  { %v1151_v9 = vpop.f32.mrb[9].mxu1 }
 0x147   :  { %v1152_v10 = vadd.f32 %v1151_v9, %v1150_v8  ;;  %v1153_v11 = vpop.f32.mrb[10].mxu1 }
 0x148   :  { %v1154_v12 = vpop.f32.mrb[11].mxu1 }
 0x149   :  { %v1155_v13 = vadd.f32 %v1154_v12, %v1153_v11  ;;  %v477_v11 = vunpack.c.l.bf16 %v1419_v31  ;;  %v472_v12 = vunpack.c.h.bf16 %v1394_v27 }
 0x14d   :  { %v1156_v14 = vpop.f32.mrb[12].mxu1 }
 0x14e   :  { %v1157_v15 = vpop.f32.mrb[13].mxu1 }
 0x14f   :  { %v1158_v16 = vadd.f32 %v1157_v15, %v1156_v14  ;;  %v1159_v17 = vpop.f32.mrb[14].mxu1  ;;  %v478_v14 = vunpack.c.h.bf16 %v1419_v31  ;;  %v482_v31 = vunpack.c.h.bf16 %v1438_v36 }
 0x150   :  { %v1160_v18 = vpop.f32.mrb[15].mxu1 }
 0x151   :  { %v479_v18 = vunpack.c.l.bf16 %v1424_v32 }
 0x15c   :  { %v425_v20 = vpop.f32.mrb[4].mxu0 }
 0x15d   :  { %v426_v21 = vadd.f32 %v1146_v4, %v425_v20  ;;  %v1186_v22 = vpop.f32.mrb[5].mxu0 }
 0x15e   :  { %v428_v24 = vpop.f32.mrb[6].mxu0 }
 0x15f   :  { %v447_v25 = vadd.f32 %v426_v21, %v273_v19  ;;  %v429_v26 = vadd.f32 %v1149_v7, %v428_v24  ;;  %v1187_v30 = vpop.f32.mrb[7].mxu0  ;;  %v471_v7 = vunpack.c.l.bf16 %v1394_v27  ;;  %v480_v19 = vunpack.c.h.bf16 %v1424_v32 }
 0x161   :  { %453 = vst.msk [vmem:[#allocation3] sm:$0xff] %vm27_vm3, %v447_v25  ;;  %v448_v33 = vadd.f32 %v429_v26, %v274_v23 }
 0x163   :  { %454 = vst.msk [vmem:[#allocation3 + $0x8] sm:$0xff] %vm27_vm3, %v448_v33 }
 0x164   :  { %v433_v38 = vpop.f32.mrb[8].mxu0 }
 0x165   :  { %v434_v39 = vadd.f32 %v1152_v10, %v433_v38  ;;  %v1190_v40 = vpop.f32.mrb[9].mxu0  ;;  %v475_v10 = vunpack.c.l.bf16 %v1399_v28 }
 0x166   :  { %v436_v42 = vpop.f32.mrb[10].mxu0 }
 0x167   :  { %v449_v43 = vadd.f32 %v434_v39, %v275_v34  ;;  %v437_v44 = vadd.f32 %v1155_v13, %v436_v42  ;;  %v1191_v46 = vpop.f32.mrb[11].mxu0  ;;  %v476_v13 = vunpack.c.h.bf16 %v1399_v28 }
 0x168   :  { %v654_v49 = vld [vmem:[#allocation3] sm:$0xff] }
 0x169   :  { %455 = vst.msk [vmem:[#allocation3 + $0x10] sm:$0xff] %vm27_vm3, %v449_v43  ;;  %v450_v51 = vadd.f32 %v437_v44, %v276_v41  ;;  %1090 = vmatmul.mubr.msk.f32.vlgmr.msra.gmra.mrb[18].mxu0 %vm27_vm3, %v654_v49  ;;  %1097 = vmatmul.mubr.msk.f32.vlgmr.msra.gmra.mrb[18].mxu1 %vm27_vm3, %v654_v49  ;;  %v483_v41 = vunpack.c.l.bf16 %v1433_v35 }
 0x16a   :  { %744 = vmatprep.mubr.f32.mxu0 %v1284_v1  ;;  %839 = vmatprep.mubr.f32.mxu1 %v1284_v1  ;;  %v655_v54 = vld [vmem:[#allocation3 + $0x8] sm:$0xff] }
 0x16b   :  { %456 = vst.msk [vmem:[#allocation3 + $0x18] sm:$0xff] %vm27_vm3, %v450_v51  ;;  %v485_v51 = vunpack.c.l.bf16 %v1443_v37 }
 0x16c   :  { %v441_v53 = vpop.f32.mrb[12].mxu0 }
 0x16d   :  { %v442_v55 = vadd.f32 %v1158_v16, %v441_v53  ;;  %v1194_v56 = vpop.f32.mrb[13].mxu0  ;;  %1091 = vmatmul.mubr.msk.f32.gmra.mrb[20].mxu0 %vm27_vm3, %v655_v54  ;;  %1098 = vmatmul.mubr.msk.f32.gmra.mrb[20].mxu1 %vm27_vm3, %v655_v54  ;;  %v484_v53 = vunpack.c.h.bf16 %v1433_v35  ;;  %v486_v54 = vunpack.c.h.bf16 %v1443_v37 }
 0x16e   :  { %v444_v57 = vpop.f32.mrb[14].mxu0  ;;  %750 = vmatprep.mubr.f32.mxu0 %v1284_v1  ;;  %845 = vmatprep.mubr.f32.mxu1 %v1284_v1 }
 0x16f   :  { %v451_v58 = vadd.f32 %v442_v55, %v277_v52  ;;  %v1195_v59 = vpop.f32.mrb[15].mxu0 }
 0x170   :  { %v656_v60 = vld [vmem:[#allocation3 + $0x10] sm:$0xff] }
 0x171   :  { %457 = vst.msk [vmem:[#allocation3 + $0x20] sm:$0x1] %vm25_vm2, %v451_v58  ;;  %1092 = vmatmul.mubr.msk.f32.gmra.mrb[22].mxu0 %vm27_vm3, %v656_v60  ;;  %1099 = vmatmul.mubr.msk.f32.gmra.mrb[22].mxu1 %vm27_vm3, %v656_v60 }
 0x172   :  { %756 = vmatprep.mubr.f32.mxu0 %v1284_v1  ;;  %851 = vmatprep.mubr.f32.mxu1 %v1284_v1  ;;  %v657_v61 = vld [vmem:[#allocation3 + $0x18] sm:$0xff] }
 0x175   :  { %1093 = vmatmul.mubr.msk.f32.gmra.mrb[24].mxu0 %vm27_vm3, %v657_v61  ;;  %1100 = vmatmul.mubr.msk.f32.gmra.mrb[24].mxu1 %vm27_vm3, %v657_v61 }
 0x176   :  { %762 = vmatprep.mubr.f32.mxu0 %v1284_v1  ;;  %857 = vmatprep.mubr.f32.mxu1 %v1284_v1  ;;  %v473_v1 = vunpack.c.l.bf16 %v1404_v29  ;;  %v481_v29 = vunpack.c.l.bf16 %v1438_v36 }
 0x178   :  { %v658_v62 = vld [vmem:[#allocation3 + $0x20] sm:$0x1] }
 0x179   :  { %1094 = vmatmul.mubr.msk.f32.gmra.mrb[26].mxu0 %vm27_vm3, %v658_v62  ;;  %1101 = vmatmul.mubr.msk.f32.gmra.mrb[26].mxu1 %vm27_vm3, %v658_v62 }
 0x1d8   :  { %v1521_v63 = vpop.f32.mrb[16].mxu0  ;;  %v1523_v0 = vpop.f32.mrb[16].mxu1 }
 0x1d9   :  { %v1525_v2 = vpop.f32.mrb[17].mxu0  ;;  %v1527_v3 = vpop.f32.mrb[17].mxu1 }
 0x23c   :  { %v740_v4 = vpop.f32.mrb[18].mxu0  ;;  %v835_v5 = vpop.f32.mrb[18].mxu1 }
 0x23d   :  { %v742_v8 = vpop.f32.mrb[19].mxu0  ;;  %v837_v9 = vpop.f32.mrb[19].mxu1  ;;  %v864_v20 = vmul.f32 %v740_v4, %v471_v7  ;;  %v866_v21 = vmul.f32 %v835_v5, %v473_v1 }
 0x23e   :  { %v867_v15 = vmul.f32 %v837_v9, %v474_v6  ;;  %v865_v25 = vmul.f32 %v742_v8, %v472_v12 }
 0x240   :  { %v746_v16 = vpop.f32.mrb[20].mxu0  ;;  %v841_v17 = vpop.f32.mrb[20].mxu1  ;;  %v918_v34 = vsel %vm917_vm5, %v867_v15, 0.0 }
 0x241   :  { %v868_v22 = vmul.f32 %v746_v16, %v475_v10  ;;  %v870_v23 = vmul.f32 %v841_v17, %v477_v11  ;;  %v748_v24 = vpop.f32.mrb[21].mxu0  ;;  %v843_v27 = vpop.f32.mrb[21].mxu1 }
 0x242   :  { %v869_v28 = vmul.f32 %v748_v24, %v476_v13  ;;  %v871_v26 = vmul.f32 %v843_v27, %v478_v14 }
 0x243   :  { %v884_v30 = vadd.f32 %v868_v22, %v864_v20  ;;  %v906_v33 = vadd.f32 %v870_v23, %v866_v21 }
 0x244   :  { %v895_v38 = vadd.f32 %v869_v28, %v865_v25  ;;  %v919_v39 = vsel %vm917_vm5, %v871_v26, 0.0  ;;  %v752_v40 = vpop.f32.mrb[22].mxu0  ;;  %v847_v32 = vpop.f32.mrb[22].mxu1 }
 0x245   :  { %v920_v42 = vadd.f32 %v919_v39, %v918_v34  ;;  %v872_v43 = vmul.f32 %v752_v40, %v479_v18  ;;  %v874_v44 = vmul.f32 %v847_v32, %v481_v29  ;;  %v754_v46 = vpop.f32.mrb[23].mxu0  ;;  %v849_v49 = vpop.f32.mrb[23].mxu1 }
 0x246   :  { %v873_v52 = vmul.f32 %v754_v46, %v480_v19  ;;  %v875_v36 = vmul.f32 %v849_v49, %v482_v31  ;;  %v1563_v49 = vmul.f32 0.0033333334, %v1525_v2 }
 0x247   :  { %v885_v55 = vadd.f32 %v884_v30, %v872_v43  ;;  %v907_v56 = vadd.f32 %v906_v33, %v874_v44  ;;  %v1560_v43 = vmul.f32 0.0033333334, %v1523_v0 }
 0x248   :  { %v896_v57 = vadd.f32 %v895_v38, %v873_v52  ;;  %v921_v58 = vsel %vm917_vm5, %v875_v36, 0.0  ;;  %v758_v59 = vpop.f32.mrb[24].mxu0  ;;  %v853_v60 = vpop.f32.mrb[24].mxu1  ;;  %v939_v2 = vmul.f32 %v1563_v49, %v1563_v49 }
 0x249   :  { %v922_v61 = vadd.f32 %v921_v58, %v920_v42  ;;  %v876_v62 = vmul.f32 %v758_v59, %v483_v41  ;;  %v878_v4 = vmul.f32 %v853_v60, %v485_v51  ;;  %v760_v5 = vpop.f32.mrb[25].mxu0  ;;  %v855_v6 = vpop.f32.mrb[25].mxu1  ;;  %v1557_v42 = vmul.f32 0.0033333334, %v1521_v63 }
 0x24a   :  { %v877_v7 = vmul.f32 %v760_v5, %v484_v53  ;;  %v879_v1 = vmul.f32 %v855_v6, %v486_v54  ;;  %v1566_v51 = vmul.f32 0.0033333334, %v1527_v3  ;;  %v940_v0 = vmul.f32 %v1560_v43, %v1560_v43 }
 0x24b   :  { %v886_v8 = vadd.f32 %v885_v55, %v876_v62  ;;  %v908_v9 = vadd.f32 %v907_v56, %v878_v4  ;;  %v938_v63 = vmul.f32 %v1557_v42, %v1557_v42 }
 0x24c   :  { %v897_v10 = vadd.f32 %v896_v57, %v877_v7  ;;  %v923_v35 = vsel %vm917_vm5, %v879_v1, 0.0  ;;  %v764_v37 = vpop.f32.mrb[26].mxu0  ;;  %v859_v11 = vpop.f32.mrb[26].mxu1  ;;  %v941_v3 = vmul.f32 %v1566_v51, %v1566_v51 }
 0x24d   :  { %v924_v12 = vadd.f32 %v923_v35, %v922_v61  ;;  %v880_v13 = vmul.f32 %v764_v37, %v1472_v50  ;;  %v882_v14 = vmul.f32 %v859_v11, %v1468_v48  ;;  %v766_v15 = vpop.f32.mrb[27].mxu0  ;;  %v861_v16 = vpop.f32.mrb[27].mxu1  ;;  %v1287_v11 = vmov 1966171168  }
 0x24e   :  { %v881_v17 = vmul.f32 %v766_v15, %v1466_v47  ;;  %v883_v18 = vmul.f32 %v861_v16, %v1459_v45 }
 0x24f   :  { %v887_v29 = vsel %vm495_vm4, %v880_v13, 0.0  ;;  %v909_v19 = vsel %vm495_vm4, %v882_v14, 0.0  ;;  %v968_v13 = vlaneseq }
 0x250   :  { %v888_v20 = vadd.f32 %v887_v29, %v886_v8  ;;  %v910_v21 = vadd.f32 %v909_v19, %v908_v9  ;;  %v898_v22 = vsel %vm495_vm4, %v881_v17, 0.0  ;;  %v926_v23 = vsel %vm925_vm6, %v883_v18, 0.0 }
 0x251   :  { %v899_v24 = vadd.f32 %v898_v22, %v897_v10  ;;  %v927_v50 = vadd.f32 %v926_v23, %v924_v12  ;;  %v966_v12 = vunpack.c.l.s4 %v1287_v11  ;;  %v969_v15 = vshrl.u32 %v968_v13, 7 }
 0x252   :  { %v889_v27 = vrot.slane %v888_v20, 4  ;;  %v911_v48 = vrot.slane %v910_v21, 4  ;;  %vm1579_vm7 = vcmp.lt.s32.totalorder %v968_v13, 400 }
 0x253   :  { %v900_v25 = vrot.slane %v899_v24, 4  ;;  %v928_v28 = vrot.slane %v927_v50, 4  ;;  %v967_v14 = vunpack.c.0.s8 %v966_v12 }
 0x254   :  { %v890_v26 = vadd.f32 %v889_v27, %v888_v20  ;;  %v912_v31 = vadd.f32 %v911_v48, %v910_v21  ;;  %v998_v27 = vsub.s32 0, %v969_v15 }
 0x255   :  { %v901_v47 = vadd.f32 %v900_v25, %v899_v24  ;;  %v929_v30 = vadd.f32 %v928_v28, %v927_v50  ;;  %v970_v18 = vsub.s32 %v967_v14, %v969_v15  ;;  %v950_v50 = vld [vmem:[%s1602_s2] sm:$0xf]  ;;  %v1002_v25 = vsub.s32 1, %v969_v15 }
 0x256   :  { %v891_v45 = vrot.slane %v890_v26, 2  ;;  %v913_v33 = vrot.slane %v912_v31, 2  ;;  %v1006_v28 = vsub.s32 2, %v969_v15 }
 0x257   :  { %v902_v34 = vrot.slane %v901_v47, 2  ;;  %v930_v38 = vrot.slane %v929_v30, 2 }
 0x258   :  { %v892_v39 = vadd.f32 %v891_v45, %v890_v26  ;;  %v914_v40 = vadd.f32 %v913_v33, %v912_v31  ;;  %v1010_v26 = vsub.s32 3, %v969_v15 }
 0x259   :  { %v903_v32 = vadd.f32 %v902_v34, %v901_v47  ;;  %v931_v41 = vadd.f32 %v930_v38, %v929_v30 }
 0x25a   :  { %v893_v44 = vrot.slane %v892_v39, 1  ;;  %v915_v46 = vrot.slane %v914_v40, 1 }
 0x25b   :  { %v904_v52 = vrot.slane %v903_v32, 1  ;;  %v932_v36 = vrot.slane %v931_v41, 1 }
 0x25c   :  { %v894_v53 = vadd.f32 %v893_v44, %v892_v39  ;;  %v916_v54 = vadd.f32 %v915_v46, %v914_v40 }
 0x25d   :  { %v905_v55 = vadd.f32 %v904_v52, %v903_v32  ;;  %v933_v56 = vadd.f32 %v932_v36, %v931_v41 }
 0x25e   :  { %v934_v57 = vmul.f32 0.0033333334, %v894_v53  ;;  %v936_v58 = vmul.f32 0.0033333334, %v916_v54  ;;  %v994_v53 = vld [vmem:[%s1604_s3] sm:$0xf] }
 0x25f   :  { %v935_v59 = vmul.f32 0.0033333334, %v905_v55  ;;  %v937_v60 = vmul.f32 0.0033333334, %v933_v56 }
 0x260   :  { %v942_v61 = vsub.f32 %v934_v57, %v938_v63  ;;  %v944_v62 = vsub.f32 %v936_v58, %v940_v0 }
 0x261   :  { %v943_v4 = vsub.f32 %v935_v59, %v939_v2  ;;  %v945_v5 = vsub.f32 %v937_v60, %v941_v3 }
 0x262   :  { %v946_v6 = vmax.f32 %v942_v61, 0.0  ;;  %v948_v7 = vmax.f32 %v944_v62, 0.0 }
 0x263   :  { %v947_v1 = vmax.f32 %v943_v4, 0.0  ;;  %v949_v8 = vmax.f32 %v945_v5, 0.0 }
 0x264   :  { %v951_v9 = vadd.f32 1e-05, %v946_v6  ;;  %v953_v10 = vadd.f32 1e-05, %v948_v7 }
 0x265   :  { %v952_v35 = vadd.f32 1e-05, %v947_v1  ;;  %v954_v37 = vadd.f32 1e-05, %v949_v8 }
 0x266   :  { %1276 = vrsqrt.f32 %v951_v9 }
 0x267   :  { %1278 = vrsqrt.f32 %v953_v10 }
 0x268   :  { %1280 = vrsqrt.f32 %v952_v35 }
 0x269   :  { %1282 = vrsqrt.f32 %v954_v37 }
 0x270   :  { %v1277_v16 = vpop.eup %1276 }
 0x271   :  { %v1279_v17 = vpop.eup %1278 }
 0x272   :  { %v1281_v29 = vpop.eup %1280 }
 0x273   :  { %v1283_v19 = vpop.eup %1282  ;;  %v963_v20 = vcombine.low %v1277_v16, %v1281_v29 }
 0x274   :  { %v964_v21 = vcombine.low %v1279_v17, %v1283_v19 }
 0x275   :  { %v971_v22 = vrot.slane %v963_v20, %v970_v18 }
 0x276   :  { %v978_v23 = vrot.slane %v964_v21, %v970_v18 }
 0x278   :  { %v979_v24 = vcombine.low %v971_v22, %v978_v23 }
 0x27a   :  { %v986_v48 = vrot.slane %v979_v24, %v970_v18 }
 0x27c   :  { %v988_v47 = vmul.f32 %v986_v48, %v950_v50 }
 0x27e   :  { %993 = vst.msk [vmem:[%s1603_s4] sm:$0xf] %vm1579_vm7, %v988_v47  ;;  %v999_v30 = vrot.slane %v988_v47, %v998_v27  ;;  %v1003_v45 = vrot.slane %v988_v47, %v1002_v25  ;;  %v1007_v33 = vrot.slane %v988_v47, %v1006_v28  ;;  %v1011_v34 = vrot.slane %v988_v47, %v1010_v26 }
 0x280   :  { %v1016_v38 = vmul.f32 %v999_v30, %v1557_v42  ;;  %v1017_v39 = vmul.f32 %v1003_v45, %v1563_v49  ;;  %v1018_v40 = vmul.f32 %v1007_v33, %v1560_v43  ;;  %v1019_v32 = vmul.f32 %v1011_v34, %v1566_v51 }
 0x282   :  { %v1024_v41 = vcombine.low %v1016_v38, %v1017_v39  ;;  %v1025_v44 = vcombine.low %v1018_v40, %v1019_v32 }
 0x284   :  { %v1032_v46 = vrot.slane %v1024_v41, %v970_v18  ;;  %v1039_v52 = vrot.slane %v1025_v44, %v970_v18 }
 0x286   :  { %v1040_v36 = vcombine.low %v1032_v46, %v1039_v52 }
 0x288   :  { %v1047_v54 = vrot.slane %v1040_v36, %v970_v18 }
 0x28a   :  { %v1049_v55 = vsub.f32 %v994_v53, %v1047_v54 }
 0x28c   :  { %1050 = vst.msk [vmem:[%s1605_s5] sm:$0xf] %vm1579_vm7, %v1049_v55 }

// kernel: actor_forward.3
= control target key start
LH: loop header
LB: loop body
LE: loop exit
PB: predicated region body
PF: predicated region fallthrough
CT: control target
= control target key end

     0   :  { %v6335_v1 = vmov 0   ;;  %vm281_vm0 = vcmask 1040384   ;;  %vm223_vm1 = vcmask 269312   ;;  %vm1835_vm2 = vcmask 130048   ;;  %s6320_s1 = inlined_call_operand.vmem [shape: bf16[33,400], index: 1, kind: input, shape index: {}]   ;;  %s6321_s0 = inlined_call_operand.vmem [shape: bf16[304,33], index: 0, kind: input, shape index: {}]   ;;  %s6322_s4 = inlined_call_operand.vmem [shape: bf16[400,384], index: 4, kind: input, shape index: {}]   ;;  %s6323_s2 = inlined_call_operand.vmem [shape: f32[1,400], index: 2, kind: input, shape index: {}]   ;;  %s6324_s3 = inlined_call_operand.vmem [shape: f32[1,400], index: 3, kind: input, shape index: {}]   ;;  %s6325_s6 = inlined_call_operand.vmem [shape: bf16[384,128], index: 6, kind: input, shape index: {}]   ;;  %s6326_s5 = inlined_call_operand.vmem [shape: f32[1,384], index: 5, kind: input, shape index: {}]   ;;  %s6327_s7 = inlined_call_operand.vmem [shape: f32[1,128], index: 7, kind: input, shape index: {}]   ;;  %s6328_s8 = inlined_call_operand.vmem [shape: bf16[304,128], index: 8, kind: output, shape index: {}]  }
   0x1   :  { %v4579_v0 = vld [vmem:[%s6320_s1 + $0x4] ss:$16 sps:$4 sm:$0xff]   ;;  %328 = vmatprep.mubr.bf16.mxu0 %v6335_v1  ;;  %551 = vmatprep.mubr.bf16.mxu1 %v6335_v1  ;;  %v4581_v2 = vld [vmem:[%s6320_s1] ss:$16 sps:$4 sm:$0xff]   ;;  %v4582_v3 = vld [vmem:[%s6320_s1 + $0xc] ss:$16 sps:$4 sm:$0xff]  }
   0x2   :  { %296 = vmatprep.subr.bf16.mxu0 %v4579_v0  ;;  %v4584_v4 = vld [vmem:[%s6320_s1 + $0x8] ss:$16 sps:$4 sm:$0xff]   ;;  %v4585_v5 = vld [vmem:[%s6320_s1 + $0x24] ss:$16 sps:$4 sm:$0xff]   ;;  %v4587_v6 = vld [vmem:[%s6320_s1 + $0x20] ss:$16 sps:$4 sm:$0xff]   ;;  %519 = vmatprep.subr.bf16.mxu1 %v4582_v3 }
   0x3   :  { %297 = vmatpush1.bf16.msra.mxu0 %v4581_v2  ;;  %v4588_v7 = vld [vmem:[%s6320_s1 + $0x2c] ss:$16 sps:$4 sm:$0xff]   ;;  %v283_v8 = vsel %vm281_vm0, 65535, %v6335_v1  ;;  %520 = vmatpush1.bf16.msra.mxu1 %v4584_v4  ;;  %v4590_v9 = vld [vmem:[%s6320_s1 + $0x28] ss:$16 sps:$4 sm:$0xff]   ;;  %v4595_v20 = vld [vmem:[%s6321_s0] sm:$0xff]  }
   0x4   :  { %298 = vmatprep.subr.bf16.mxu0 %v4585_v5  ;;  %v76_v10 = vld [vmem:[%s6320_s1 + $0x40] sm:$0x11]  ;;  %v77_v11 = vld [vmem:[%s6320_s1 + $0x48] sm:$0x11]  ;;  %521 = vmatprep.subr.bf16.mxu1 %v4588_v7  ;;  %v4613_v27 = vld [vmem:[%s6322_s4 + $0x30] ss:$12 sps:$4 sm:$0xff]  }
   0x5   :  { %v3709_v12 = vcombine.high %v76_v10, %v76_v10  ;;  %v3708_v13 = vcombine.low %v76_v10, %v76_v10  ;;  %v3711_v14 = vcombine.high %v77_v11, %v77_v11  ;;  %v3710_v15 = vcombine.low %v77_v11, %v77_v11  ;;  %v4604_v21 = vld [vmem:[%s6322_s4] ss:$12 sps:$4 sm:$0xff]   ;;  %v4606_v22 = vld [vmem:[%s6322_s4 + $0x4] ss:$12 sps:$4 sm:$0xff]   ;;  %v4611_v25 = vld [vmem:[%s6322_s4 + $0x1c] ss:$12 sps:$4 sm:$0xff]  }
   0x6   :  { %v4596_v23 = vld [vmem:[%s6321_s0 + $0x8] sm:$0xff]   ;;  %v4609_v24 = vld [vmem:[%s6322_s4 + $0x18] ss:$12 sps:$4 sm:$0xff]   ;;  %v4615_v26 = vld [vmem:[%s6322_s4 + $0x34] ss:$12 sps:$4 sm:$0xff]   ;;  %vm4817_vm3 = vmmov 0  }
   0x7   :  { %299 = vmatpush1.bf16.msra.mxu0 %v4587_v6  ;;  %v288_v16 = vand.u32 %v3709_v12, %v283_v8  ;;  %v285_v17 = vand.u32 %v3708_v13, %v283_v8  ;;  %v294_v18 = vand.u32 %v3711_v14, %v283_v8  ;;  %522 = vmatpush1.bf16.msra.mxu1 %v4590_v9  ;;  %v4619_v28 = vld [vmem:[%s6322_s4 + $0x4c] ss:$12 sps:$4 sm:$0xff]   ;;  %v4597_v29 = vld [vmem:[%s6321_s0 + $0x10] sm:$0xff]   ;;  %v4627_v33 = vld [vmem:[%s6322_s4 + $0x7c] ss:$12 sps:$4 sm:$0xff]  }
   0x8   :  { %v291_v19 = vand.u32 %v3710_v15, %v283_v8  ;;  %v4617_v30 = vld [vmem:[%s6322_s4 + $0x48] ss:$12 sps:$4 sm:$0xff]   ;;  %v4623_v31 = vld [vmem:[%s6322_s4 + $0x64] ss:$12 sps:$4 sm:$0xff]   ;;  %v4621_v32 = vld [vmem:[%s6322_s4 + $0x60] ss:$12 sps:$4 sm:$0xff]  }
   0x9   :  { %300 = vmatprep.subr.bf16.mxu0 %v288_v16  ;;  %523 = vmatprep.subr.bf16.mxu1 %v294_v18  ;;  %v4598_v34 = vld [vmem:[%s6321_s0 + $0x18] sm:$0xff]   ;;  %v4632_v36 = vld [vmem:[%s6322_s4 + $0x94] ss:$12 sps:$4 sm:$0xff]   ;;  %v4655_v41 = vld [vmem:[%s6322_s4 + $0x184] ss:$12 sps:$4 sm:$0xff]  }
   0xa   :  { %v4625_v35 = vld [vmem:[%s6322_s4 + $0x78] ss:$12 sps:$4 sm:$0xff]   ;;  %v4630_v37 = vld [vmem:[%s6322_s4 + $0x90] ss:$12 sps:$4 sm:$0xff]   ;;  %v4634_v40 = vld [vmem:[%s6322_s4 + $0xa8] ss:$12 sps:$4 sm:$0xff]  }
   0xb   :  { %301 = vmatpush1.bf16.msra.mxu0 %v285_v17  ;;  %524 = vmatpush1.bf16.msra.mxu1 %v291_v19  ;;  %v4636_v38 = vld [vmem:[%s6322_s4 + $0xac] ss:$12 sps:$4 sm:$0xff]   ;;  %v4599_v39 = vld [vmem:[%s6321_s0 + $0x20] sm:$0xff]   ;;  %v4658_v44 = vld [vmem:[%s6322_s4 + $0x19c] ss:$12 sps:$4 sm:$0xff]  }
   0xc   :  { %1893 = vmatprep.subr.bf16.mxu1 %v4606_v22  ;;  %v4640_v42 = vld [vmem:[%s6322_s4 + $0xc4] ss:$12 sps:$4 sm:$0xff]   ;;  %v4653_v43 = vld [vmem:[%s6322_s4 + $0x180] ss:$12 sps:$4 sm:$0xff]   ;;  %2116 = vmatprep.subr.bf16.mxu0 %v4655_v41  ;;  %v4643_v47 = vld [vmem:[%s6322_s4 + $0xdc] ss:$12 sps:$4 sm:$0xff]  }
   0xd   :  { %v4638_v45 = vld [vmem:[%s6322_s4 + $0xc0] ss:$12 sps:$4 sm:$0xff]   ;;  %v4656_v48 = vld [vmem:[%s6322_s4 + $0x198] ss:$12 sps:$4 sm:$0xff]   ;;  %v4662_v52 = vld [vmem:[%s6322_s4 + $0x1b0] ss:$12 sps:$4 sm:$0xff]  }
   0xe   :  { %3712 = vmatmul.mubr.msk.bf16.vlgmr.msra.gmra.mrb[0].mxu0 %vm223_vm1, %v4595_v20  ;;  %3731 = vmatmul.mubr.msk.bf16.vlgmr.msra.gmra.mrb[0].mxu1 %vm223_vm1, %v4595_v20  ;;  %v4600_v46 = vld [vmem:[%s6321_s0 + $0x28] sm:$0xff]   ;;  %v4664_v49 = vld [vmem:[%s6322_s4 + $0x1b4] ss:$12 sps:$4 sm:$0xff]   ;;  %v4641_v50 = vld [vmem:[%s6322_s4 + $0xd8] ss:$12 sps:$4 sm:$0xff]  }
   0xf   :  { %338 = vmatprep.mubr.bf16.mxu0 %v6335_v1  ;;  %561 = vmatprep.mubr.bf16.mxu1 %v6335_v1  ;;  %v4646_v51 = vld [vmem:[%s6322_s4 + $0xf4] ss:$12 sps:$4 sm:$0xff]   ;;  %v4667_v53 = vld [vmem:[%s6322_s4 + $0x1cc] ss:$12 sps:$4 sm:$0xff]   ;;  %v4644_v54 = vld [vmem:[%s6322_s4 + $0xf0] ss:$12 sps:$4 sm:$0xff]  }
  0x10   :  { %1894 = vmatpush1.bf16.msra.mxu1 %v4604_v21  ;;  %2117 = vmatpush1.bf16.msra.mxu0 %v4653_v43  ;;  %v4649_v55 = vld [vmem:[%s6322_s4 + $0x10c] ss:$12 sps:$4 sm:$0xff]   ;;  %v4665_v56 = vld [vmem:[%s6322_s4 + $0x1c8] ss:$12 sps:$4 sm:$0xff]   ;;  %v4673_v58 = vld [vmem:[%s6322_s4 + $0x1e4] ss:$12 sps:$4 sm:$0xff]  }
  0x11   :  { %1895 = vmatprep.subr.bf16.mxu1 %v4611_v25  ;;  %2118 = vmatprep.subr.bf16.mxu0 %v4658_v44  ;;  %v4601_v57 = vld [vmem:[%s6321_s0 + $0x30] sm:$0xff]   ;;  %v4671_v61 = vld [vmem:[%s6322_s4 + $0x1e0] ss:$12 sps:$4 sm:$0xff]   ;;  %v4676_v62 = vld [vmem:[%s6322_s4 + $0x1fc] ss:$12 sps:$4 sm:$0xff]  }
  0x12   :  { %v4647_v59 = vld [vmem:[%s6322_s4 + $0x108] ss:$12 sps:$4 sm:$0xff]   ;;  %v4652_v60 = vld [vmem:[%s6322_s4 + $0x124] ss:$12 sps:$4 sm:$0xff]   ;;  %v4650_v63 = vld [vmem:[%s6322_s4 + $0x120] ss:$12 sps:$4 sm:$0xff]  }
  0x13   :  { %v4661_v0 = vld [vmem:[%s6322_s4 + $0x13c] ss:$12 sps:$4 sm:$0xff]   ;;  %v4674_v2 = vld [vmem:[%s6322_s4 + $0x1f8] ss:$12 sps:$4 sm:$0xff]   ;;  %v4670_v5 = vld [vmem:[%s6322_s4 + $0x154] ss:$12 sps:$4 sm:$0xff]  }
  0x14   :  { %1896 = vmatpush1.bf16.msra.mxu1 %v4609_v24  ;;  %2119 = vmatpush1.bf16.msra.mxu0 %v4656_v48  ;;  %v4602_v3 = vld [vmem:[%s6321_s0 + $0x38] sm:$0xff]   ;;  %v4603_v7 = vld [vmem:[%s6321_s0 + $0x40] sm:$0xff]   ;;  %v4607_v8 = vld [vmem:[%s6321_s0 + $0x48] sm:$0xff]  }
  0x15   :  { %1897 = vmatprep.subr.bf16.mxu1 %v4615_v26  ;;  %2120 = vmatprep.subr.bf16.mxu0 %v4664_v49  ;;  %v4659_v4 = vld [vmem:[%s6322_s4 + $0x138] ss:$12 sps:$4 sm:$0xff]   ;;  %v4668_v6 = vld [vmem:[%s6322_s4 + $0x150] ss:$12 sps:$4 sm:$0xff]   ;;  %v4682_v11 = vld [vmem:[%s6322_s4 + $0x214] ss:$12 sps:$4 sm:$0xff]   ;;  %v744_v26 = vlaneseq }
  0x16   :  { %3713 = vmatmul.mubr.msk.bf16.gmra.mrb[4].mxu0 %vm223_vm1, %v4596_v23  ;;  %3732 = vmatmul.mubr.msk.bf16.gmra.mrb[4].mxu1 %vm223_vm1, %v4596_v23  ;;  %v4608_v9 = vld [vmem:[%s6321_s0 + $0x50] sm:$0xff]   ;;  %v4612_v10 = vld [vmem:[%s6321_s0 + $0x58] sm:$0xff]   ;;  %v4616_v17 = vld [vmem:[%s6321_s0 + $0x60] sm:$0xff]  }
  0x17   :  { %348 = vmatprep.mubr.bf16.mxu0 %v6335_v1  ;;  %571 = vmatprep.mubr.bf16.mxu1 %v6335_v1  ;;  %v4680_v12 = vld [vmem:[%s6322_s4 + $0x210] ss:$12 sps:$4 sm:$0xff]   ;;  %v4685_v13 = vld [vmem:[%s6322_s4 + $0x22c] ss:$12 sps:$4 sm:$0xff]   ;;  %v4683_v14 = vld [vmem:[%s6322_s4 + $0x228] ss:$12 sps:$4 sm:$0xff]  }
  0x18   :  { %1898 = vmatpush1.bf16.msra.mxu1 %v4613_v27  ;;  %2121 = vmatpush1.bf16.msra.mxu0 %v4662_v52  ;;  %v4679_v15 = vld [vmem:[%s6322_s4 + $0x16c] ss:$12 sps:$4 sm:$0xff]   ;;  %v4677_v16 = vld [vmem:[%s6322_s4 + $0x168] ss:$12 sps:$4 sm:$0xff]   ;;  %v4688_v18 = vld [vmem:[%s6322_s4 + $0x244] ss:$12 sps:$4 sm:$0xff]  }
  0x19   :  { %1899 = vmatprep.subr.bf16.mxu1 %v4619_v28  ;;  %2122 = vmatprep.subr.bf16.mxu0 %v4667_v53  ;;  %v4686_v19 = vld [vmem:[%s6322_s4 + $0x240] ss:$12 sps:$4 sm:$0xff]   ;;  %v4624_v21 = vld [vmem:[%s6321_s0 + $0x70] sm:$0xff]   ;;  %v4628_v22 = vld [vmem:[%s6321_s0 + $0x78] sm:$0xff]   ;;  %v745_v27 = vshrl.u32 %v744_v26, 7 }
  0x1a   :  { %v4620_v20 = vld [vmem:[%s6321_s0 + $0x68] sm:$0xff]   ;;  %v4629_v23 = vld [vmem:[%s6321_s0 + $0x80] sm:$0xff]   ;;  %v4637_v25 = vld [vmem:[%s6321_s0 + $0x90] sm:$0xff]  }
  0x1b   :  { %v4633_v24 = vld [vmem:[%s6321_s0 + $0x88] sm:$0xff]   ;;  %v5179_v28 = vsub.s32 0, %v745_v27 }
  0x1c   :  { %1900 = vmatpush1.bf16.msra.mxu1 %v4617_v30  ;;  %2123 = vmatpush1.bf16.msra.mxu0 %v4665_v56  ;;  %v5184_v30 = vsub.s32 1, %v745_v27 }
  0x1d   :  { %1901 = vmatprep.subr.bf16.mxu1 %v4623_v31  ;;  %2124 = vmatprep.subr.bf16.mxu0 %v4673_v58  ;;  %v5186_v31 = vsub.s32 2, %v745_v27 }
  0x1e   :  { %3714 = vmatmul.mubr.msk.bf16.gmra.mrb[8].mxu0 %vm223_vm1, %v4597_v29  ;;  %3733 = vmatmul.mubr.msk.bf16.gmra.mrb[8].mxu1 %vm223_vm1, %v4597_v29  ;;  %v742_v29 = vld [vmem:[%s6323_s2] sm:$0xf] }
  0x1f   :  { %358 = vmatprep.mubr.bf16.mxu0 %v6335_v1  ;;  %581 = vmatprep.mubr.bf16.mxu1 %v6335_v1  ;;  %6370 = vst [vmem:[#allocation2_spill] sm:$0xff] %v5186_v31 }
  0x20   :  { %1902 = vmatpush1.bf16.msra.mxu1 %v4621_v32  ;;  %2125 = vmatpush1.bf16.msra.mxu0 %v4671_v61  ;;  %v916_v32 = vld [vmem:[%s6324_s3] sm:$0xf] }
  0x21   :  { %1903 = vmatprep.subr.bf16.mxu1 %v4627_v33  ;;  %2126 = vmatprep.subr.bf16.mxu0 %v4676_v62  ;;  %v758_v33 = vsub.s32 3, %v745_v27  ;;  %v5210_v43 = vrot.slane %v916_v32, %v5186_v31 }
  0x24   :  { %1904 = vmatpush1.bf16.msra.mxu1 %v4625_v35  ;;  %2127 = vmatpush1.bf16.msra.mxu0 %v4674_v2  ;;  %v5195_v35 = vrot.slane %v742_v29, %v5184_v30 }
  0x25   :  { %1905 = vmatprep.subr.bf16.mxu1 %v4632_v36  ;;  %2128 = vmatprep.subr.bf16.mxu0 %v4682_v11  ;;  %v5198_v36 = vrot.slane %v916_v32, %v5179_v28 }
  0x26   :  { %3715 = vmatmul.mubr.msk.bf16.gmra.mrb[12].mxu0 %vm223_vm1, %v4598_v34  ;;  %3734 = vmatmul.mubr.msk.bf16.gmra.mrb[12].mxu1 %vm223_vm1, %v4598_v34  ;;  %v5192_v34 = vrot.slane %v742_v29, %v5179_v28 }
  0x27   :  { %368 = vmatprep.mubr.bf16.mxu0 %v6335_v1  ;;  %591 = vmatprep.mubr.bf16.mxu1 %v6335_v1 }
  0x28   :  { %1906 = vmatpush1.bf16.msra.mxu1 %v4630_v37  ;;  %2129 = vmatpush1.bf16.msra.mxu0 %v4680_v12  ;;  %v5201_v37 = vrot.slane %v742_v29, %v5186_v31 }
  0x29   :  { %1907 = vmatprep.subr.bf16.mxu1 %v4636_v38  ;;  %2130 = vmatprep.subr.bf16.mxu0 %v4685_v13 }
  0x2c   :  { %1908 = vmatpush1.bf16.msra.mxu1 %v4634_v40  ;;  %2131 = vmatpush1.bf16.msra.mxu0 %v4683_v14  ;;  %v5206_v40 = vrot.slane %v742_v29, %v758_v33 }
  0x2d   :  { %1909 = vmatprep.subr.bf16.mxu1 %v4640_v42  ;;  %2132 = vmatprep.subr.bf16.mxu0 %v4688_v18 }
  0x2e   :  { %3716 = vmatmul.mubr.msk.bf16.gmra.mrb[16].mxu0 %vm223_vm1, %v4599_v39  ;;  %3735 = vmatmul.mubr.msk.bf16.gmra.mrb[16].mxu1 %vm223_vm1, %v4599_v39  ;;  %v5204_v39 = vrot.slane %v916_v32, %v5184_v30 }
  0x2f   :  { %378 = vmatprep.mubr.bf16.mxu0 %v6335_v1  ;;  %601 = vmatprep.mubr.bf16.mxu1 %v6335_v1 }
  0x30   :  { %1910 = vmatpush1.bf16.msra.mxu1 %v4638_v45  ;;  %2133 = vmatpush1.bf16.msra.mxu0 %v4686_v19  ;;  %v4689_v19 = vld [vmem:[%s6322_s4 + $0x8] ss:$12 sps:$4 sm:$0xff]  }
  0x31   :  { %1911 = vmatprep.subr.bf16.mxu1 %v4643_v47  ;;  %3079 = vmatprep.subr.bf16.mxu0 %v6335_v1  ;;  %v5213_v47 = vrot.slane %v916_v32, %v758_v33 }
  0x34   :  { %1912 = vmatpush1.bf16.msra.mxu1 %v4641_v50 }
  0x35   :  { %1913 = vmatprep.subr.bf16.mxu1 %v4646_v51 }
  0x36   :  { %3717 = vmatmul.mubr.msk.bf16.gmra.mrb[20].mxu0 %vm223_vm1, %v4600_v46  ;;  %3736 = vmatmul.mubr.msk.bf16.gmra.mrb[20].mxu1 %vm223_vm1, %v4600_v46 }
  0x37   :  { %388 = vmatprep.mubr.bf16.mxu0 %v6335_v1  ;;  %611 = vmatprep.mubr.bf16.mxu1 %v6335_v1 }
  0x38   :  { %1914 = vmatpush1.bf16.msra.mxu1 %v4644_v54 }
  0x39   :  { %1915 = vmatprep.subr.bf16.mxu1 %v4649_v55 }
  0x3c   :  { %1916 = vmatpush1.bf16.msra.mxu1 %v4647_v59 }
  0x3d   :  { %1917 = vmatprep.subr.bf16.mxu1 %v4652_v60 }
  0x3e   :  { %3718 = vmatmul.mubr.msk.bf16.gmra.mrb[24].mxu0 %vm223_vm1, %v4601_v57  ;;  %3737 = vmatmul.mubr.msk.bf16.gmra.mrb[24].mxu1 %vm223_vm1, %v4601_v57 }
  0x3f   :  { %398 = vmatprep.mubr.bf16.mxu0 %v6335_v1  ;;  %621 = vmatprep.mubr.bf16.mxu1 %v6335_v1 }
  0x40   :  { %1918 = vmatpush1.bf16.msra.mxu1 %v4650_v63 }
  0x41   :  { %1919 = vmatprep.subr.bf16.mxu1 %v4661_v0 }
  0x44   :  { %1920 = vmatpush1.bf16.msra.mxu1 %v4659_v4 }
  0x45   :  { %1921 = vmatprep.subr.bf16.mxu1 %v4670_v5 }
  0x46   :  { %3719 = vmatmul.mubr.msk.bf16.gmra.mrb[28].mxu0 %vm223_vm1, %v4602_v3  ;;  %3738 = vmatmul.mubr.msk.bf16.gmra.mrb[28].mxu1 %vm223_vm1, %v4602_v3 }
  0x47   :  { %408 = vmatprep.mubr.bf16.mxu0 %v6335_v1  ;;  %631 = vmatprep.mubr.bf16.mxu1 %v6335_v1 }
  0x48   :  { %1922 = vmatpush1.bf16.msra.mxu1 %v4668_v6 }
  0x49   :  { %1923 = vmatprep.subr.bf16.mxu1 %v4679_v15 }
  0x4c   :  { %1924 = vmatpush1.bf16.msra.mxu1 %v4677_v16 }
  0x4d   :  { %2339 = vmatprep.subr.bf16.mxu1 %v6335_v1 }
  0x4e   :  { %3720 = vmatmul.mubr.msk.bf16.gmra.mrb[32].mxu0 %vm223_vm1, %v4603_v7  ;;  %3739 = vmatmul.mubr.msk.bf16.gmra.mrb[32].mxu1 %vm223_vm1, %v4603_v7 }
  0x4f   :  { %418 = vmatprep.mubr.bf16.mxu0 %v6335_v1  ;;  %641 = vmatprep.mubr.bf16.mxu1 %v6335_v1 }
  0x56   :  { %3721 = vmatmul.mubr.msk.bf16.gmra.mrb[36].mxu0 %vm223_vm1, %v4607_v8  ;;  %3740 = vmatmul.mubr.msk.bf16.gmra.mrb[36].mxu1 %vm223_vm1, %v4607_v8 }
  0x57   :  { %428 = vmatprep.mubr.bf16.mxu0 %v6335_v1  ;;  %651 = vmatprep.mubr.bf16.mxu1 %v6335_v1 }
  0x5e   :  { %3722 = vmatmul.mubr.msk.bf16.gmra.mrb[40].mxu0 %vm223_vm1, %v4608_v9  ;;  %3741 = vmatmul.mubr.msk.bf16.gmra.mrb[40].mxu1 %vm223_vm1, %v4608_v9 }
  0x5f   :  { %438 = vmatprep.mubr.bf16.mxu0 %v6335_v1  ;;  %661 = vmatprep.mubr.bf16.mxu1 %v6335_v1 }
  0x66   :  { %3723 = vmatmul.mubr.msk.bf16.gmra.mrb[44].mxu0 %vm223_vm1, %v4612_v10  ;;  %3742 = vmatmul.mubr.msk.bf16.gmra.mrb[44].mxu1 %vm223_vm1, %v4612_v10 }
  0x67   :  { %448 = vmatprep.mubr.bf16.mxu0 %v6335_v1  ;;  %671 = vmatprep.mubr.bf16.mxu1 %v6335_v1 }
  0x6e   :  { %3724 = vmatmul.mubr.msk.bf16.gmra.mrb[48].mxu0 %vm223_vm1, %v4616_v17  ;;  %3743 = vmatmul.mubr.msk.bf16.gmra.mrb[48].mxu1 %vm223_vm1, %v4616_v17 }
  0x6f   :  { %458 = vmatprep.mubr.bf16.mxu0 %v6335_v1  ;;  %681 = vmatprep.mubr.bf16.mxu1 %v6335_v1 }
  0x76   :  { %3725 = vmatmul.mubr.msk.bf16.gmra.mrb[52].mxu0 %vm223_vm1, %v4620_v20  ;;  %3744 = vmatmul.mubr.msk.bf16.gmra.mrb[52].mxu1 %vm223_vm1, %v4620_v20 }
  0x77   :  { %468 = vmatprep.mubr.bf16.mxu0 %v6335_v1  ;;  %691 = vmatprep.mubr.bf16.mxu1 %v6335_v1 }
  0x7e   :  { %3726 = vmatmul.mubr.msk.bf16.gmra.mrb[56].mxu0 %vm223_vm1, %v4624_v21  ;;  %3745 = vmatmul.mubr.msk.bf16.gmra.mrb[56].mxu1 %vm223_vm1, %v4624_v21 }
  0x7f   :  { %478 = vmatprep.mubr.bf16.mxu0 %v6335_v1  ;;  %701 = vmatprep.mubr.bf16.mxu1 %v6335_v1 }
  0x86   :  { %3727 = vmatmul.mubr.msk.bf16.gmra.mrb[60].mxu0 %vm223_vm1, %v4628_v22  ;;  %3746 = vmatmul.mubr.msk.bf16.gmra.mrb[60].mxu1 %vm223_vm1, %v4628_v22 }
  0x87   :  { %488 = vmatprep.mubr.bf16.mxu0 %v6335_v1  ;;  %711 = vmatprep.mubr.bf16.mxu1 %v6335_v1 }
  0x8e   :  { %3728 = vmatmul.mubr.msk.bf16.gmra.mrb[64].mxu0 %vm223_vm1, %v4629_v23  ;;  %3747 = vmatmul.mubr.msk.bf16.gmra.mrb[64].mxu1 %vm223_vm1, %v4629_v23 }
  0x8f   :  { %498 = vmatprep.mubr.bf16.mxu0 %v6335_v1  ;;  %721 = vmatprep.mubr.bf16.mxu1 %v6335_v1 }
  0x96   :  { %3729 = vmatmul.mubr.msk.bf16.gmra.mrb[68].mxu0 %vm223_vm1, %v4633_v24  ;;  %3748 = vmatmul.mubr.msk.bf16.gmra.mrb[68].mxu1 %vm223_vm1, %v4633_v24 }
  0x97   :  { %508 = vmatprep.mubr.bf16.mxu0 %v6335_v1  ;;  %731 = vmatprep.mubr.bf16.mxu1 %v6335_v1 }
  0x9e   :  { %3730 = vmatmul.mubr.msk.bf16.gmra.mrb[72].mxu0 %vm223_vm1, %v4637_v25  ;;  %3749 = vmatmul.mubr.msk.bf16.gmra.mrb[72].mxu1 %vm223_vm1, %v4637_v25 }
  0xe1   :  { %v330_v38 = vpop.f32.mrb[0].mxu0  ;;  %v553_v46 = vpop.f32.mrb[0].mxu1 }
  0xe2   :  { %v764_v41 = vmul.f32 %v5192_v34, %v330_v38  ;;  %v332_v42 = vpop.f32.mrb[1].mxu0  ;;  %v766_v50 = vmul.f32 %v5201_v37, %v553_v46  ;;  %v555_v52 = vpop.f32.mrb[1].mxu1 }
  0xe3   :  { %v765_v44 = vmul.f32 %v5195_v35, %v332_v42  ;;  %v334_v45 = vpop.f32.mrb[2].mxu0  ;;  %v767_v55 = vmul.f32 %v5206_v40, %v555_v52  ;;  %v557_v56 = vpop.f32.mrb[2].mxu1 }
  0xe4   :  { %v938_v48 = vadd.f32 %v5198_v36, %v764_v41  ;;  %v768_v49 = vmul.f32 %v5192_v34, %v334_v45  ;;  %v336_v51 = vpop.f32.mrb[3].mxu0  ;;  %v940_v58 = vadd.f32 %v5210_v43, %v766_v50  ;;  %v770_v59 = vmul.f32 %v5201_v37, %v557_v56  ;;  %v559_v60 = vpop.f32.mrb[3].mxu1 }
  0xe5   :  { %v939_v53 = vadd.f32 %v5204_v39, %v765_v44  ;;  %v769_v54 = vmul.f32 %v5195_v35, %v336_v51  ;;  %v941_v62 = vadd.f32 %v5213_v47, %v767_v55  ;;  %v771_v63 = vmul.f32 %v5206_v40, %v559_v60 }
  0xe6   :  { %v942_v57 = vadd.f32 %v5198_v36, %v768_v49  ;;  %v1090_v0 = vmax.f32 %v938_v48, 0.0  ;;  %v1092_v3 = vmax.f32 %v940_v58, 0.0  ;;  %v944_v4 = vadd.f32 %v5210_v43, %v770_v59  ;;  %v4690_v49 = vld [vmem:[%s6322_s4 + $0x20] ss:$12 sps:$4 sm:$0xff]  }
  0xe7   :  { %v943_v61 = vadd.f32 %v5204_v39, %v769_v54  ;;  %v1091_v5 = vmax.f32 %v939_v53, 0.0  ;;  %v1093_v7 = vmax.f32 %v941_v62, 0.0  ;;  %v945_v8 = vadd.f32 %v5213_v47, %v771_v63 }
  0xe8   :  { %v1094_v2 = vmax.f32 %v942_v57, 0.0  ;;  %v1096_v11 = vmax.f32 %v944_v4, 0.0 }
  0xe9   :  { %v1095_v6 = vmax.f32 %v943_v61, 0.0  ;;  %v340_v9 = vpop.f32.mrb[4].mxu0  ;;  %v1097_v14 = vmax.f32 %v945_v8, 0.0  ;;  %v563_v17 = vpop.f32.mrb[4].mxu1 }
  0xea   :  { %v5229_v10 = vpack.c.bf16 %v1094_v2, %v1090_v0  ;;  %v772_v12 = vmul.f32 %v5192_v34, %v340_v9  ;;  %v342_v13 = vpop.f32.mrb[5].mxu0  ;;  %v5238_v20 = vpack.c.bf16 %v1096_v11, %v1092_v3  ;;  %v774_v23 = vmul.f32 %v5201_v37, %v563_v17  ;;  %v565_v25 = vpop.f32.mrb[5].mxu1 }
  0xeb   :  { %v773_v15 = vmul.f32 %v5195_v35, %v342_v13  ;;  %v344_v16 = vpop.f32.mrb[6].mxu0  ;;  %v5233_v18 = vpack.c.bf16 %v1095_v6, %v1091_v5  ;;  %v5243_v26 = vpack.c.bf16 %v1097_v14, %v1093_v7  ;;  %v775_v32 = vmul.f32 %v5206_v40, %v565_v25  ;;  %v567_v33 = vpop.f32.mrb[6].mxu1  ;;  %v4691_v5 = vld [vmem:[%s6322_s4 + $0x38] ss:$12 sps:$4 sm:$0xff]  }
  0xec   :  { %6371 = vst [vmem:[#allocation3_spill] sm:$0xff] %v5238_v20  ;;  %v946_v21 = vadd.f32 %v5198_v36, %v772_v12  ;;  %v776_v22 = vmul.f32 %v5192_v34, %v344_v16  ;;  %v346_v24 = vpop.f32.mrb[7].mxu0  ;;  %v948_v41 = vadd.f32 %v5210_v43, %v774_v23  ;;  %v778_v42 = vmul.f32 %v5201_v37, %v567_v33  ;;  %v569_v44 = vpop.f32.mrb[7].mxu1 }
  0xed   :  { %6372 = vst [vmem:[#allocation4_spill] sm:$0xff] %v5243_v26  ;;  %v947_v27 = vadd.f32 %v5204_v39, %v773_v15  ;;  %v777_v29 = vmul.f32 %v5195_v35, %v346_v24  ;;  %1925 = vmatprep.mubr.bf16.mxu1 %v5233_v18  ;;  %v949_v46 = vadd.f32 %v5213_v47, %v775_v32 }
  0xee   :  { %v950_v38 = vadd.f32 %v5198_v36, %v776_v22  ;;  %1926 = vmatmul.mubr.bf16.vlgmr.msra.gmra.mrb[76].mxu1 %v5229_v10  ;;  %v779_v48 = vmul.f32 %v5206_v40, %v569_v44  ;;  %3825 = vmatprep.mubr.msk.bf16.mxu0 %vm1835_vm2, %v5243_v26  ;;  %v1098_v50 = vmax.f32 %v946_v21, 0.0  ;;  %v1100_v52 = vmax.f32 %v948_v41, 0.0 }
  0xef   :  { %v951_v45 = vadd.f32 %v5204_v39, %v777_v29  ;;  %2340 = vmatpush1.bf16.msra.mxu1 %v4689_v19  ;;  %v952_v53 = vadd.f32 %v5210_v43, %v778_v42  ;;  %2149 = vmatmul.mubr.bf16.vlgmr.msra.gmra.mrb[76].mxu0 %v5238_v20  ;;  %v1099_v54 = vmax.f32 %v947_v27, 0.0  ;;  %v1101_v56 = vmax.f32 %v949_v46, 0.0  ;;  %v4692_v29 = vld [vmem:[%s6322_s4 + $0x50] ss:$12 sps:$4 sm:$0xff]  }
  0xf0   :  { %v1102_v51 = vmax.f32 %v950_v38, 0.0  ;;  %2341 = vmatprep.subr.bf16.mxu1 %v6335_v1  ;;  %v953_v57 = vadd.f32 %v5213_v47, %v779_v48 }
  0xf1   :  { %v1103_v55 = vmax.f32 %v951_v45, 0.0  ;;  %v350_v58 = vpop.f32.mrb[8].mxu0  ;;  %v1104_v59 = vmax.f32 %v952_v53, 0.0  ;;  %v573_v3 = vpop.f32.mrb[8].mxu1 }
  0xf2   :  { %v780_v60 = vmul.f32 %v5192_v34, %v350_v58  ;;  %v352_v61 = vpop.f32.mrb[9].mxu0  ;;  %v5266_v62 = vpack.c.bf16 %v1102_v51, %v1098_v50  ;;  %v1105_v63 = vmax.f32 %v953_v57, 0.0  ;;  %v782_v8 = vmul.f32 %v5201_v37, %v573_v3  ;;  %v575_v11 = vpop.f32.mrb[9].mxu1  ;;  %v4693_v58 = vld [vmem:[%s6322_s4 + $0x68] ss:$12 sps:$4 sm:$0xff]  }
  0xf3   :  { %v781_v0 = vmul.f32 %v5195_v35, %v352_v61  ;;  %v354_v2 = vpop.f32.mrb[10].mxu0  ;;  %v5269_v4 = vpack.c.bf16 %v1103_v55, %v1099_v54  ;;  %2342 = vmatpush1.bf16.msra.mxu1 %v4690_v49  ;;  %v5277_v12 = vpack.c.bf16 %v1104_v59, %v1100_v52  ;;  %v783_v16 = vmul.f32 %v5206_v40, %v575_v11  ;;  %v577_v17 = vpop.f32.mrb[10].mxu1 }
  0xf4   :  { %v954_v6 = vadd.f32 %v5198_v36, %v780_v60  ;;  %v784_v7 = vmul.f32 %v5192_v34, %v354_v2  ;;  %v356_v9 = vpop.f32.mrb[11].mxu0  ;;  %2343 = vmatprep.subr.bf16.mxu1 %v6335_v1  ;;  %v5280_v13 = vpack.c.bf16 %v1105_v63, %v1101_v56  ;;  %v956_v21 = vadd.f32 %v5210_v43, %v782_v8  ;;  %v579_v23 = vpop.f32.mrb[11].mxu1 }
  0xf5   :  { %6373 = vst [vmem:[#allocation5_spill] sm:$0xff] %v5277_v12  ;;  %v955_v14 = vadd.f32 %v5204_v39, %v781_v0  ;;  %v785_v15 = vmul.f32 %v5195_v35, %v356_v9  ;;  %1935 = vmatprep.mubr.bf16.mxu1 %v5269_v4  ;;  %v786_v22 = vmul.f32 %v5201_v37, %v577_v17 }
  0xf6   :  { %6374 = vst [vmem:[#allocation6_spill] sm:$0xff] %v5280_v13  ;;  %v958_v19 = vadd.f32 %v5198_v36, %v784_v7  ;;  %1936 = vmatmul.mubr.bf16.gmra.mrb[80].mxu1 %v5266_v62  ;;  %v957_v25 = vadd.f32 %v5213_v47, %v783_v16  ;;  %v787_v27 = vmul.f32 %v5206_v40, %v579_v23  ;;  %v1106_v32 = vmax.f32 %v954_v6, 0.0 }
  0xf7   :  { %v959_v24 = vadd.f32 %v5204_v39, %v785_v15  ;;  %3826 = vmatprep.mubr.msk.bf16.mxu0 %vm1835_vm2, %v5280_v13  ;;  %2344 = vmatpush1.bf16.msra.mxu1 %v4691_v5  ;;  %v1108_v38 = vmax.f32 %v956_v21, 0.0  ;;  %v960_v41 = vadd.f32 %v5210_v43, %v786_v22  ;;  %v1107_v42 = vmax.f32 %v955_v14, 0.0  ;;  %v4694_v21 = vld [vmem:[%s6322_s4 + $0x80] ss:$12 sps:$4 sm:$0xff]  }
  0xf8   :  { %v1110_v33 = vmax.f32 %v958_v19, 0.0  ;;  %2159 = vmatmul.mubr.bf16.gmra.mrb[80].mxu0 %v5277_v12  ;;  %2345 = vmatprep.subr.bf16.mxu1 %v6335_v1  ;;  %v1109_v45 = vmax.f32 %v957_v25, 0.0  ;;  %v961_v46 = vadd.f32 %v5213_v47, %v787_v27 }
  0xf9   :  { %v1111_v44 = vmax.f32 %v959_v24, 0.0  ;;  %v360_v48 = vpop.f32.mrb[12].mxu0  ;;  %v1112_v49 = vmax.f32 %v960_v41, 0.0  ;;  %v583_v56 = vpop.f32.mrb[12].mxu1 }
  0xfa   :  { %v788_v50 = vmul.f32 %v5192_v34, %v360_v48  ;;  %v362_v51 = vpop.f32.mrb[13].mxu0  ;;  %v5303_v52 = vpack.c.bf16 %v1110_v33, %v1106_v32  ;;  %v1113_v53 = vmax.f32 %v961_v46, 0.0  ;;  %v790_v61 = vmul.f32 %v5201_v37, %v583_v56  ;;  %v585_v0 = vpop.f32.mrb[13].mxu1 }
  0xfb   :  { %v789_v54 = vmul.f32 %v5195_v35, %v362_v51  ;;  %v364_v55 = vpop.f32.mrb[14].mxu0  ;;  %v5306_v57 = vpack.c.bf16 %v1111_v44, %v1107_v42  ;;  %2346 = vmatpush1.bf16.msra.mxu1 %v4692_v29  ;;  %v5314_v2 = vpack.c.bf16 %v1112_v49, %v1108_v38  ;;  %v791_v7 = vmul.f32 %v5206_v40, %v585_v0  ;;  %v587_v8 = vpop.f32.mrb[14].mxu1 }
  0xfc   :  { %v962_v59 = vadd.f32 %v5198_v36, %v788_v50  ;;  %v792_v60 = vmul.f32 %v5192_v34, %v364_v55  ;;  %v366_v63 = vpop.f32.mrb[15].mxu0  ;;  %2347 = vmatprep.subr.bf16.mxu1 %v6335_v1  ;;  %v5317_v3 = vpack.c.bf16 %v1113_v53, %v1109_v45  ;;  %v964_v11 = vadd.f32 %v5210_v43, %v790_v61  ;;  %v589_v15 = vpop.f32.mrb[15].mxu1  ;;  %v4695_v53 = vld [vmem:[%s6322_s4 + $0x98] ss:$12 sps:$4 sm:$0xff]  }
  0xfd   :  { %6375 = vst [vmem:[#allocation7_spill] sm:$0xff] %v5314_v2  ;;  %v963_v5 = vadd.f32 %v5204_v39, %v789_v54  ;;  %v793_v6 = vmul.f32 %v5195_v35, %v366_v63  ;;  %1945 = vmatprep.mubr.bf16.mxu1 %v5306_v57  ;;  %v794_v14 = vmul.f32 %v5201_v37, %v587_v8 }
  0xfe   :  { %6376 = vst [vmem:[#allocation8_spill] sm:$0xff] %v5317_v3  ;;  %v966_v9 = vadd.f32 %v5198_v36, %v792_v60  ;;  %1946 = vmatmul.mubr.bf16.gmra.mrb[84].mxu1 %v5303_v52  ;;  %v965_v17 = vadd.f32 %v5213_v47, %v791_v7  ;;  %v795_v19 = vmul.f32 %v5206_v40, %v589_v15  ;;  %v1114_v22 = vmax.f32 %v962_v59, 0.0 }
  0xff   :  { %v967_v16 = vadd.f32 %v5204_v39, %v793_v6  ;;  %3827 = vmatprep.mubr.msk.bf16.mxu0 %vm1835_vm2, %v5317_v3  ;;  %2348 = vmatpush1.bf16.msra.mxu1 %v4693_v58  ;;  %v1116_v24 = vmax.f32 %v964_v11, 0.0  ;;  %v968_v25 = vadd.f32 %v5210_v43, %v794_v14  ;;  %v1115_v27 = vmax.f32 %v963_v5, 0.0 }
 0x100   :  { %v1118_v23 = vmax.f32 %v966_v9, 0.0  ;;  %2169 = vmatmul.mubr.bf16.gmra.mrb[84].mxu0 %v5314_v2  ;;  %2349 = vmatprep.subr.bf16.mxu1 %v6335_v1  ;;  %v1117_v32 = vmax.f32 %v965_v17, 0.0  ;;  %v969_v33 = vadd.f32 %v5213_v47, %v795_v19  ;;  %v4696_v17 = vld [vmem:[%s6322_s4 + $0xb0] ss:$12 sps:$4 sm:$0xff]  }
 0x101   :  { %v1119_v29 = vmax.f32 %v967_v16, 0.0  ;;  %v370_v38 = vpop.f32.mrb[16].mxu0  ;;  %v1120_v41 = vmax.f32 %v968_v25, 0.0  ;;  %v593_v50 = vpop.f32.mrb[16].mxu1 }
 0x102   :  { %v796_v42 = vmul.f32 %v5192_v34, %v370_v38  ;;  %v372_v44 = vpop.f32.mrb[17].mxu0  ;;  %v5340_v45 = vpack.c.bf16 %v1118_v23, %v1114_v22  ;;  %v1121_v46 = vmax.f32 %v969_v33, 0.0  ;;  %v798_v56 = vmul.f32 %v5201_v37, %v593_v50  ;;  %v595_v59 = vpop.f32.mrb[17].mxu1 }
 0x103   :  { %v797_v48 = vmul.f32 %v5195_v35, %v372_v44  ;;  %v374_v49 = vpop.f32.mrb[18].mxu0  ;;  %v5343_v51 = vpack.c.bf16 %v1119_v29, %v1115_v27  ;;  %2350 = vmatpush1.bf16.msra.mxu1 %v4694_v21  ;;  %v5351_v60 = vpack.c.bf16 %v1120_v41, %v1116_v24  ;;  %v799_v5 = vmul.f32 %v5206_v40, %v595_v59  ;;  %v597_v6 = vpop.f32.mrb[18].mxu1 }
 0x104   :  { %v970_v54 = vadd.f32 %v5198_v36, %v796_v42  ;;  %v800_v55 = vmul.f32 %v5192_v34, %v374_v49  ;;  %v376_v58 = vpop.f32.mrb[19].mxu0  ;;  %2351 = vmatprep.subr.bf16.mxu1 %v6335_v1  ;;  %v5354_v61 = vpack.c.bf16 %v1121_v46, %v1117_v32  ;;  %v972_v8 = vadd.f32 %v5210_v43, %v798_v56  ;;  %v599_v11 = vpop.f32.mrb[19].mxu1 }
 0x105   :  { %6377 = vst [vmem:[#allocation9_spill] sm:$0xff] %v5351_v60  ;;  %v971_v63 = vadd.f32 %v5204_v39, %v797_v48  ;;  %v801_v0 = vmul.f32 %v5195_v35, %v376_v58  ;;  %1955 = vmatprep.mubr.bf16.mxu1 %v5343_v51  ;;  %v802_v9 = vmul.f32 %v5201_v37, %v597_v6 }
 0x106   :  { %6378 = vst [vmem:[#allocation10_spill] sm:$0xff] %v5354_v61  ;;  %v974_v7 = vadd.f32 %v5198_v36, %v800_v55  ;;  %1956 = vmatmul.mubr.bf16.gmra.mrb[88].mxu1 %v5340_v45  ;;  %v973_v15 = vadd.f32 %v5213_v47, %v799_v5  ;;  %v803_v16 = vmul.f32 %v5206_v40, %v599_v11  ;;  %v1122_v19 = vmax.f32 %v970_v54, 0.0  ;;  %v4706_v11 = vld [vmem:[%s6325_s6] sm:$0xff]  }
 0x107   :  { %v975_v14 = vadd.f32 %v5204_v39, %v801_v0  ;;  %3828 = vmatprep.mubr.msk.bf16.mxu0 %vm1835_vm2, %v5354_v61  ;;  %2352 = vmatpush1.bf16.msra.mxu1 %v4695_v53  ;;  %v1124_v22 = vmax.f32 %v972_v8, 0.0  ;;  %v976_v23 = vadd.f32 %v5210_v43, %v802_v9  ;;  %v1123_v24 = vmax.f32 %v971_v63, 0.0  ;;  %v4697_v53 = vld [vmem:[%s6322_s4 + $0xc8] ss:$12 sps:$4 sm:$0xff]   ;;  %v4698_v9 = vld [vmem:[%s6322_s4 + $0xe0] ss:$12 sps:$4 sm:$0xff]  }
 0x108   :  { %v1126_v21 = vmax.f32 %v974_v7, 0.0  ;;  %2179 = vmatmul.mubr.bf16.gmra.mrb[88].mxu0 %v5351_v60  ;;  %2353 = vmatprep.subr.bf16.mxu1 %v6335_v1  ;;  %v1125_v27 = vmax.f32 %v973_v15, 0.0  ;;  %v977_v29 = vadd.f32 %v5213_v47, %v803_v16 }
 0x109   :  { %v1127_v25 = vmax.f32 %v975_v14, 0.0  ;;  %v380_v32 = vpop.f32.mrb[20].mxu0  ;;  %v1128_v33 = vmax.f32 %v976_v23, 0.0  ;;  %v603_v49 = vpop.f32.mrb[20].mxu1  ;;  %3080 = vmatpush1.bf16.msra.mxu0 %v4706_v11 }
 0x10a   :  { %v804_v38 = vmul.f32 %v5192_v34, %v380_v32  ;;  %v382_v41 = vpop.f32.mrb[21].mxu0  ;;  %v5377_v42 = vpack.c.bf16 %v1126_v21, %v1122_v19  ;;  %v1129_v44 = vmax.f32 %v977_v29, 0.0  ;;  %v806_v56 = vmul.f32 %v5201_v37, %v603_v49  ;;  %v605_v59 = vpop.f32.mrb[21].mxu1  ;;  %3081 = vmatprep.subr.bf16.mxu0 %v6335_v1 }
 0x10b   :  { %v805_v46 = vmul.f32 %v5195_v35, %v382_v41  ;;  %v384_v48 = vpop.f32.mrb[22].mxu0  ;;  %v5380_v50 = vpack.c.bf16 %v1127_v25, %v1123_v24  ;;  %2354 = vmatpush1.bf16.msra.mxu1 %v4696_v17  ;;  %v5388_v63 = vpack.c.bf16 %v1128_v33, %v1124_v22  ;;  %v807_v7 = vmul.f32 %v5206_v40, %v605_v59  ;;  %v607_v8 = vpop.f32.mrb[22].mxu1 }
 0x10c   :  { %v978_v54 = vadd.f32 %v5198_v36, %v804_v38  ;;  %v808_v55 = vmul.f32 %v5192_v34, %v384_v48  ;;  %v386_v58 = vpop.f32.mrb[23].mxu0  ;;  %2355 = vmatprep.subr.bf16.mxu1 %v6335_v1  ;;  %v5391_v0 = vpack.c.bf16 %v1129_v44, %v1125_v27  ;;  %v980_v16 = vadd.f32 %v5210_v43, %v806_v56  ;;  %v609_v19 = vpop.f32.mrb[23].mxu1  ;;  %v4699_v44 = vld [vmem:[%s6322_s4 + $0xf8] ss:$12 sps:$4 sm:$0xff]  }
 0x10d   :  { %6379 = vst [vmem:[#allocation11_spill] sm:$0xff] %v5388_v63  ;;  %v979_v5 = vadd.f32 %v5204_v39, %v805_v46  ;;  %v809_v6 = vmul.f32 %v5195_v35, %v386_v58  ;;  %1965 = vmatprep.mubr.bf16.mxu1 %v5380_v50  ;;  %v810_v17 = vmul.f32 %v5201_v37, %v607_v8  ;;  %v4707_v46 = vld [vmem:[%s6325_s6 + $0x8] sm:$0xff]  }
 0x10e   :  { %6380 = vst [vmem:[#allocation12_spill] sm:$0xff] %v5391_v0  ;;  %v1130_v14 = vmax.f32 %v978_v54, 0.0  ;;  %v982_v15 = vadd.f32 %v5198_v36, %v808_v55  ;;  %1966 = vmatmul.mubr.bf16.gmra.mrb[92].mxu1 %v5377_v42  ;;  %v981_v23 = vadd.f32 %v5213_v47, %v807_v7  ;;  %v811_v24 = vmul.f32 %v5206_v40, %v609_v19 }
 0x10f   :  { %v1131_v21 = vmax.f32 %v979_v5, 0.0  ;;  %v983_v22 = vadd.f32 %v5204_v39, %v809_v6  ;;  %3829 = vmatprep.mubr.msk.bf16.mxu0 %vm1835_vm2, %v5391_v0  ;;  %2356 = vmatpush1.bf16.msra.mxu1 %v4697_v53  ;;  %v1132_v27 = vmax.f32 %v980_v16, 0.0  ;;  %v984_v29 = vadd.f32 %v5210_v43, %v810_v17 }
 0x110   :  { %v1134_v25 = vmax.f32 %v982_v15, 0.0  ;;  %2189 = vmatmul.mubr.bf16.gmra.mrb[92].mxu0 %v5388_v63  ;;  %2357 = vmatprep.subr.bf16.mxu1 %v6335_v1  ;;  %v1133_v33 = vmax.f32 %v981_v23, 0.0  ;;  %v985_v38 = vadd.f32 %v5213_v47, %v811_v24 }
 0x111   :  { %v1135_v32 = vmax.f32 %v983_v22, 0.0  ;;  %v390_v41 = vpop.f32.mrb[24].mxu0  ;;  %v1136_v48 = vmax.f32 %v984_v29, 0.0  ;;  %v613_v59 = vpop.f32.mrb[24].mxu1  ;;  %v4709_v22 = vld [vmem:[%s6325_s6 + $0x10] sm:$0xff]   ;;  %3082 = vmatpush1.bf16.msra.mxu0 %v4707_v46 }
 0x112   :  { %v812_v49 = vmul.f32 %v5192_v34, %v390_v41  ;;  %v392_v53 = vpop.f32.mrb[25].mxu0  ;;  %v5423_v54 = vpack.c.bf16 %v1134_v25, %v1130_v14  ;;  %v1137_v55 = vmax.f32 %v985_v38, 0.0  ;;  %v814_v8 = vmul.f32 %v5201_v37, %v613_v59  ;;  %v615_v15 = vpop.f32.mrb[25].mxu1  ;;  %3083 = vmatprep.subr.bf16.mxu0 %v6335_v1 }
 0x113   :  { %v813_v56 = vmul.f32 %v5195_v35, %v392_v53  ;;  %v394_v58 = vpop.f32.mrb[26].mxu0  ;;  %v5427_v5 = vpack.c.bf16 %v1135_v32, %v1131_v21  ;;  %2358 = vmatpush1.bf16.msra.mxu1 %v4698_v9  ;;  %v5432_v14 = vpack.c.bf16 %v1136_v48, %v1132_v27  ;;  %v815_v9 = vmul.f32 %v5206_v40, %v615_v15  ;;  %v617_v21 = vpop.f32.mrb[26].mxu1  ;;  %v4700_v48 = vld [vmem:[%s6322_s4 + $0x110] ss:$12 sps:$4 sm:$0xff]  }
 0x114   :  { %v986_v6 = vadd.f32 %v5198_v36, %v812_v49  ;;  %v816_v7 = vmul.f32 %v5192_v34, %v394_v58  ;;  %v396_v11 = vpop.f32.mrb[27].mxu0  ;;  %2359 = vmatprep.subr.bf16.mxu1 %v6335_v1  ;;  %v5435_v16 = vpack.c.bf16 %v1137_v55, %v1133_v33  ;;  %v988_v25 = vadd.f32 %v5210_v43, %v814_v8  ;;  %v619_v29 = vpop.f32.mrb[27].mxu1 }
 0x115   :  { %6381 = vst [vmem:[#allocation13_spill] sm:$0xff] %v5432_v14  ;;  %v987_v17 = vadd.f32 %v5204_v39, %v813_v56  ;;  %v817_v19 = vmul.f32 %v5195_v35, %v396_v11  ;;  %1975 = vmatprep.mubr.bf16.mxu1 %v5427_v5  ;;  %v818_v27 = vmul.f32 %v5201_v37, %v617_v21 }
 0x116   :  { %6382 = vst [vmem:[#allocation14_spill] sm:$0xff] %v5435_v16  ;;  %v1138_v23 = vmax.f32 %v986_v6, 0.0  ;;  %v990_v24 = vadd.f32 %v5198_v36, %v816_v7  ;;  %1976 = vmatmul.mubr.bf16.gmra.mrb[96].mxu1 %v5423_v54  ;;  %v989_v38 = vadd.f32 %v5213_v47, %v815_v9  ;;  %v819_v41 = vmul.f32 %v5206_v40, %v619_v29  ;;  %v4710_v6 = vld [vmem:[%s6325_s6 + $0x18] sm:$0xff]  }
 0x117   :  { %v1139_v32 = vmax.f32 %v987_v17, 0.0  ;;  %v991_v33 = vadd.f32 %v5204_v39, %v817_v19  ;;  %3830 = vmatprep.mubr.msk.bf16.mxu0 %vm1835_vm2, %v5435_v16  ;;  %2360 = vmatpush1.bf16.msra.mxu1 %v4699_v44  ;;  %v1140_v53 = vmax.f32 %v988_v25, 0.0  ;;  %v992_v55 = vadd.f32 %v5210_v43, %v818_v27  ;;  %v4701_v44 = vld [vmem:[%s6322_s4 + $0x128] ss:$12 sps:$4 sm:$0xff]  }
 0x118   :  { %v1142_v49 = vmax.f32 %v990_v24, 0.0  ;;  %2199 = vmatmul.mubr.bf16.gmra.mrb[96].mxu0 %v5432_v14  ;;  %2361 = vmatprep.subr.bf16.mxu1 %v6335_v1  ;;  %v1141_v56 = vmax.f32 %v989_v38, 0.0  ;;  %v993_v58 = vadd.f32 %v5213_v47, %v819_v41 }
 0x119   :  { %v1143_v46 = vmax.f32 %v991_v33, 0.0  ;;  %v400_v59 = vpop.f32.mrb[28].mxu0  ;;  %v1144_v7 = vmax.f32 %v992_v55, 0.0  ;;  %3084 = vmatpush1.bf16.msra.mxu0 %v4709_v22  ;;  %v623_v21 = vpop.f32.mrb[28].mxu1  ;;  %v4702_v55 = vld [vmem:[%s6322_s4 + $0x140] ss:$12 sps:$4 sm:$0xff]  }
 0x11a   :  { %v820_v8 = vmul.f32 %v5192_v34, %v400_v59  ;;  %v402_v11 = vpop.f32.mrb[29].mxu0  ;;  %v5468_v15 = vpack.c.bf16 %v1142_v49, %v1138_v23  ;;  %v1145_v17 = vmax.f32 %v993_v58, 0.0  ;;  %3085 = vmatprep.subr.bf16.mxu0 %v6335_v1  ;;  %v822_v29 = vmul.f32 %v5201_v37, %v623_v21  ;;  %v625_v23 = vpop.f32.mrb[29].mxu1 }
 0x11b   :  { %v821_v19 = vmul.f32 %v5195_v35, %v402_v11  ;;  %v404_v9 = vpop.f32.mrb[30].mxu0  ;;  %v5471_v24 = vpack.c.bf16 %v1143_v46, %v1139_v32  ;;  %2362 = vmatpush1.bf16.msra.mxu1 %v4700_v48  ;;  %v5477_v38 = vpack.c.bf16 %v1144_v7, %v1140_v53  ;;  %v823_v48 = vmul.f32 %v5206_v40, %v625_v23  ;;  %v627_v49 = vpop.f32.mrb[30].mxu1  ;;  %v4711_v53 = vld [vmem:[%s6325_s6 + $0x20] sm:$0xff]  }
 0x11c   :  { %v994_v25 = vadd.f32 %v5198_v36, %v820_v8  ;;  %v824_v27 = vmul.f32 %v5192_v34, %v404_v9  ;;  %v406_v33 = vpop.f32.mrb[31].mxu0  ;;  %2363 = vmatprep.subr.bf16.mxu1 %v6335_v1  ;;  %v5480_v22 = vpack.c.bf16 %v1145_v17, %v1141_v56  ;;  %v996_v58 = vadd.f32 %v5210_v43, %v822_v29  ;;  %v629_v7 = vpop.f32.mrb[31].mxu1  ;;  %v4703_v23 = vld [vmem:[%s6322_s4 + $0x158] ss:$12 sps:$4 sm:$0xff]  }
 0x11d   :  { %6383 = vst [vmem:[#allocation15_spill] sm:$0xff] %v5477_v38  ;;  %v995_v32 = vadd.f32 %v5204_v39, %v821_v19  ;;  %v825_v41 = vmul.f32 %v5195_v35, %v406_v33  ;;  %1985 = vmatprep.mubr.bf16.mxu1 %v5471_v24  ;;  %v826_v59 = vmul.f32 %v5201_v37, %v627_v49 }
 0x11e   :  { %6384 = vst [vmem:[#allocation16_spill] sm:$0xff] %v5480_v22  ;;  %v1146_v46 = vmax.f32 %v994_v25, 0.0  ;;  %v998_v56 = vadd.f32 %v5198_v36, %v824_v27  ;;  %1986 = vmatmul.mubr.bf16.gmra.mrb[100].mxu1 %v5468_v15  ;;  %3086 = vmatpush1.bf16.msra.mxu0 %v4710_v6  ;;  %v997_v17 = vadd.f32 %v5213_v47, %v823_v48  ;;  %v1148_v21 = vmax.f32 %v996_v58, 0.0 }
 0x11f   :  { %v1147_v8 = vmax.f32 %v995_v32, 0.0  ;;  %v999_v11 = vadd.f32 %v5204_v39, %v825_v41  ;;  %v827_v19 = vmul.f32 %v5206_v40, %v629_v7  ;;  %3831 = vmatprep.mubr.msk.bf16.mxu0 %vm1835_vm2, %v5480_v22  ;;  %2364 = vmatpush1.bf16.msra.mxu1 %v4701_v44  ;;  %v1000_v25 = vadd.f32 %v5210_v43, %v826_v59  ;;  %v4712_v44 = vld [vmem:[%s6325_s6 + $0x28] sm:$0xff]  }
 0x120   :  { %v1150_v9 = vmax.f32 %v998_v56, 0.0  ;;  %2209 = vmatmul.mubr.bf16.gmra.mrb[100].mxu0 %v5477_v38  ;;  %2365 = vmatprep.subr.bf16.mxu1 %v6335_v1  ;;  %v1149_v27 = vmax.f32 %v997_v17, 0.0 }
 0x121   :  { %v1151_v6 = vmax.f32 %v999_v11, 0.0  ;;  %v1001_v29 = vadd.f32 %v5213_v47, %v827_v19  ;;  %v410_v33 = vpop.f32.mrb[32].mxu0  ;;  %3087 = vmatprep.subr.bf16.mxu0 %v6335_v1  ;;  %v1152_v32 = vmax.f32 %v1000_v25, 0.0  ;;  %v633_v7 = vpop.f32.mrb[32].mxu1 }
 0x122   :  { %v828_v41 = vmul.f32 %v5192_v34, %v410_v33  ;;  %v412_v48 = vpop.f32.mrb[33].mxu0  ;;  %v5513_v49 = vpack.c.bf16 %v1150_v9, %v1146_v46  ;;  %3088 = vmatpush1.bf16.msra.mxu0 %v4711_v53  ;;  %v830_v25 = vmul.f32 %v5201_v37, %v633_v7  ;;  %v635_v46 = vpop.f32.mrb[33].mxu1 }
 0x123   :  { %v1153_v56 = vmax.f32 %v1001_v29, 0.0  ;;  %v829_v58 = vmul.f32 %v5195_v35, %v412_v48  ;;  %v414_v59 = vpop.f32.mrb[34].mxu0  ;;  %v5516_v11 = vpack.c.bf16 %v1151_v6, %v1147_v8  ;;  %2366 = vmatpush1.bf16.msra.mxu1 %v4702_v55  ;;  %3089 = vmatprep.subr.bf16.mxu0 %v6335_v1  ;;  %v5522_v9 = vpack.c.bf16 %v1152_v32, %v1148_v21  ;;  %v637_v29 = vpop.f32.mrb[34].mxu1 }
 0x124   :  { %v1002_v17 = vadd.f32 %v5198_v36, %v828_v41  ;;  %v832_v19 = vmul.f32 %v5192_v34, %v414_v59  ;;  %v416_v33 = vpop.f32.mrb[35].mxu0  ;;  %2367 = vmatprep.subr.bf16.mxu1 %v6335_v1  ;;  %v831_v6 = vmul.f32 %v5206_v40, %v635_v46  ;;  %v1004_v48 = vadd.f32 %v5210_v43, %v830_v25  ;;  %v639_v32 = vpop.f32.mrb[35].mxu1 }
 0x125   :  { %6385 = vst [vmem:[#allocation17_spill] sm:$0xff] %v5522_v9  ;;  %v5525_v53 = vpack.c.bf16 %v1153_v56, %v1149_v27  ;;  %v1003_v8 = vadd.f32 %v5204_v39, %v829_v58  ;;  %v833_v55 = vmul.f32 %v5195_v35, %v416_v33  ;;  %1995 = vmatprep.mubr.bf16.mxu1 %v5516_v11  ;;  %v4713_v27 = vld [vmem:[%s6325_s6 + $0x30] sm:$0xff]  }
 0x126   :  { %v1006_v41 = vadd.f32 %v5198_v36, %v832_v19  ;;  %v834_v21 = vmul.f32 %v5201_v37, %v637_v29  ;;  %1996 = vmatmul.mubr.bf16.gmra.mrb[104].mxu1 %v5513_v49  ;;  %3090 = vmatpush1.bf16.msra.mxu0 %v4712_v44  ;;  %v1154_v56 = vmax.f32 %v1002_v17, 0.0  ;;  %v1005_v59 = vadd.f32 %v5213_v47, %v831_v6  ;;  %v4704_v19 = vld [vmem:[%s6322_s4 + $0x170] ss:$12 sps:$4 sm:$0xff]  }
 0x127   :  { %6386 = vst [vmem:[#allocation18_spill] sm:$0xff] %v5525_v53  ;;  %v1007_v58 = vadd.f32 %v5204_v39, %v833_v55  ;;  %v835_v7 = vmul.f32 %v5206_v40, %v639_v32  ;;  %3832 = vmatprep.mubr.msk.bf16.mxu0 %vm1835_vm2, %v5525_v53  ;;  %2368 = vmatpush1.bf16.msra.mxu1 %v4703_v23  ;;  %v1156_v25 = vmax.f32 %v1004_v48, 0.0  ;;  %v1155_v17 = vmax.f32 %v1003_v8, 0.0  ;;  %v4715_v48 = vld [vmem:[%s6325_s6 + $0x38] sm:$0xff]  }
 0x128   :  { %v1158_v44 = vmax.f32 %v1006_v41, 0.0  ;;  %v1008_v33 = vadd.f32 %v5210_v43, %v834_v21  ;;  %2219 = vmatmul.mubr.bf16.gmra.mrb[104].mxu0 %v5522_v9  ;;  %2369 = vmatprep.subr.bf16.mxu1 %v6335_v1  ;;  %v1157_v55 = vmax.f32 %v1005_v59, 0.0 }
 0x129   :  { %v1159_v46 = vmax.f32 %v1007_v58, 0.0  ;;  %v1009_v6 = vadd.f32 %v5213_v47, %v835_v7  ;;  %v420_v29 = vpop.f32.mrb[36].mxu0  ;;  %3091 = vmatprep.subr.bf16.mxu0 %v6335_v1  ;;  %v643_v59 = vpop.f32.mrb[36].mxu1 }
 0x12a   :  { %v1160_v23 = vmax.f32 %v1008_v33, 0.0  ;;  %v836_v32 = vmul.f32 %v5192_v34, %v420_v29  ;;  %v422_v31 = vpop.f32.mrb[37].mxu0  ;;  %v5552_v41 = vpack.c.bf16 %v1158_v44, %v1154_v56  ;;  %3092 = vmatpush1.bf16.msra.mxu0 %v4713_v27  ;;  %v838_v27 = vmul.f32 %v5201_v37, %v643_v59  ;;  %v645_v29 = vpop.f32.mrb[37].mxu1 }
 0x12b   :  { %v1161_v21 = vmax.f32 %v1009_v6, 0.0  ;;  %v837_v8 = vmul.f32 %v5195_v35, %v422_v31  ;;  %v424_v58 = vpop.f32.mrb[38].mxu0  ;;  %v5558_v7 = vpack.c.bf16 %v1159_v46, %v1155_v17  ;;  %2370 = vmatpush1.bf16.msra.mxu1 %v4704_v19  ;;  %3093 = vmatprep.subr.bf16.mxu0 %v6335_v1  ;;  %v839_v46 = vmul.f32 %v5206_v40, %v645_v29  ;;  %v647_v6 = vpop.f32.mrb[38].mxu1 }
 0x12c   :  { %v1010_v33 = vadd.f32 %v5198_v36, %v836_v32  ;;  %v840_v56 = vmul.f32 %v5192_v34, %v424_v58  ;;  %v426_v44 = vpop.f32.mrb[39].mxu0  ;;  %v5564_v9 = vpack.c.bf16 %v1160_v23, %v1156_v25  ;;  %2524 = vmatprep.subr.bf16.mxu1 %v6335_v1  ;;  %v1012_v58 = vadd.f32 %v5210_v43, %v838_v27  ;;  %v649_v23 = vpop.f32.mrb[39].mxu1 }
 0x12d   :  { %v5567_v31 = vpack.c.bf16 %v1161_v21, %v1157_v55  ;;  %v1011_v17 = vadd.f32 %v5204_v39, %v837_v8  ;;  %v841_v19 = vmul.f32 %v5195_v35, %v426_v44  ;;  %2005 = vmatprep.mubr.bf16.mxu1 %v5558_v7  ;;  %v842_v25 = vmul.f32 %v5201_v37, %v647_v6  ;;  %v4716_v55 = vld [vmem:[%s6325_s6 + $0x40] sm:$0xff]  }
 0x12e   :  { %6387 = vst [vmem:[#allocation19_spill] sm:$0xff] %v5564_v9  ;;  %v1014_v32 = vadd.f32 %v5198_v36, %v840_v56  ;;  %2006 = vmatmul.mubr.bf16.gmra.mrb[108].mxu1 %v5552_v41  ;;  %3094 = vmatpush1.bf16.msra.mxu0 %v4715_v48  ;;  %v1013_v8 = vadd.f32 %v5213_v47, %v839_v46  ;;  %v1162_v56 = vmax.f32 %v1010_v33, 0.0  ;;  %v1164_v44 = vmax.f32 %v1012_v58, 0.0  ;;  %v4717_v33 = vld [vmem:[%s6325_s6 + $0x48] sm:$0xff]  }
 0x12f   :  { %6388 = vst [vmem:[#allocation20_spill] sm:$0xff] %v5567_v31  ;;  %v1015_v21 = vadd.f32 %v5204_v39, %v841_v19  ;;  %v843_v59 = vmul.f32 %v5206_v40, %v649_v23  ;;  %3833 = vmatprep.mubr.msk.bf16.mxu0 %vm1835_vm2, %v5567_v31  ;;  %3095 = vmatprep.subr.bf16.mxu0 %v6335_v1  ;;  %v1163_v29 = vmax.f32 %v1011_v17, 0.0 }
 0x130   :  { %v1166_v27 = vmax.f32 %v1014_v32, 0.0  ;;  %v1016_v48 = vadd.f32 %v5210_v43, %v842_v25  ;;  %2229 = vmatmul.mubr.bf16.gmra.mrb[108].mxu0 %v5564_v9  ;;  %v1165_v53 = vmax.f32 %v1013_v8, 0.0 }
 0x131   :  { %v1167_v6 = vmax.f32 %v1015_v21, 0.0  ;;  %v1017_v19 = vadd.f32 %v5213_v47, %v843_v59  ;;  %v430_v46 = vpop.f32.mrb[40].mxu0  ;;  %v653_v25 = vpop.f32.mrb[40].mxu1 }
 0x132   :  { %v1168_v38 = vmax.f32 %v1016_v48, 0.0  ;;  %v844_v23 = vmul.f32 %v5192_v34, %v430_v46  ;;  %v432_v22 = vpop.f32.mrb[41].mxu0  ;;  %v5590_v31 = vpack.c.bf16 %v1166_v27, %v1162_v56  ;;  %3096 = vmatpush1.bf16.msra.mxu0 %v4716_v55  ;;  %v846_v56 = vmul.f32 %v5201_v37, %v653_v25  ;;  %v655_v27 = vpop.f32.mrb[41].mxu1 }
 0x133   :  { %v1169_v32 = vmax.f32 %v1017_v19, 0.0  ;;  %v845_v58 = vmul.f32 %v5195_v35, %v432_v22  ;;  %v434_v17 = vpop.f32.mrb[42].mxu0  ;;  %v5596_v21 = vpack.c.bf16 %v1167_v6, %v1163_v29  ;;  %3097 = vmatprep.subr.bf16.mxu0 %v6335_v1  ;;  %v847_v29 = vmul.f32 %v5206_v40, %v655_v27  ;;  %v657_v6 = vpop.f32.mrb[42].mxu1 }
 0x134   :  { %v1018_v8 = vadd.f32 %v5198_v36, %v844_v23  ;;  %v848_v59 = vmul.f32 %v5192_v34, %v434_v17  ;;  %v436_v55 = vpop.f32.mrb[43].mxu0  ;;  %v5602_v48 = vpack.c.bf16 %v1168_v38, %v1164_v44  ;;  %v1020_v17 = vadd.f32 %v5210_v43, %v846_v56  ;;  %v659_v1 = vpop.f32.mrb[43].mxu1  ;;  %v4718_v38 = vld [vmem:[%s6325_s6 + $0x50] sm:$0xff]  }
 0x135   :  { %v5604_v46 = vpack.c.bf16 %v1169_v32, %v1165_v53  ;;  %v1019_v22 = vadd.f32 %v5204_v39, %v845_v58  ;;  %v849_v19 = vmul.f32 %v5195_v35, %v436_v55  ;;  %2015 = vmatprep.mubr.bf16.mxu1 %v5596_v21  ;;  %v850_v25 = vmul.f32 %v5201_v37, %v657_v6 }
 0x136   :  { %6389 = vst [vmem:[#allocation21_spill] sm:$0xff] %v5602_v48  ;;  %v1022_v23 = vadd.f32 %v5198_v36, %v848_v59  ;;  %2016 = vmatmul.mubr.bf16.gmra.mrb[112].mxu1 %v5590_v31  ;;  %3098 = vmatpush1.bf16.msra.mxu0 %v4717_v33  ;;  %v1021_v44 = vadd.f32 %v5213_v47, %v847_v29  ;;  %v6391_v58 = vmov 0   ;;  %v1170_v59 = vmax.f32 %v1018_v8, 0.0  ;;  %v4720_v8 = vld [vmem:[%s6325_s6 + $0x58] sm:$0xff]  }
 0x137   :  { %6390 = vst [vmem:[#allocation22_spill] sm:$0xff] %v5604_v46  ;;  %v1023_v53 = vadd.f32 %v5204_v39, %v849_v19  ;;  %v851_v32 = vmul.f32 %v5206_v40, %v659_v1  ;;  %3834 = vmatprep.mubr.msk.bf16.mxu0 %vm1835_vm2, %v5604_v46  ;;  %3099 = vmatprep.subr.bf16.mxu0 %v6391_v58  ;;  %v1172_v55 = vmax.f32 %v1020_v17, 0.0  ;;  %v1171_v27 = vmax.f32 %v1019_v22, 0.0 }
 0x138   :  { %v1174_v56 = vmax.f32 %v1022_v23, 0.0  ;;  %v1024_v33 = vadd.f32 %v5210_v43, %v850_v25  ;;  %2239 = vmatmul.mubr.bf16.gmra.mrb[112].mxu0 %v5602_v48  ;;  %v1173_v9 = vmax.f32 %v1021_v44, 0.0 }
 0x139   :  { %v1175_v6 = vmax.f32 %v1023_v53, 0.0  ;;  %v1025_v19 = vadd.f32 %v5213_v47, %v851_v32  ;;  %v440_v29 = vpop.f32.mrb[44].mxu0  ;;  %v663_v25 = vpop.f32.mrb[44].mxu1 }
 0x13a   :  { %v1176_v14 = vmax.f32 %v1024_v33, 0.0  ;;  %v852_v1 = vmul.f32 %v5192_v34, %v440_v29  ;;  %v442_v16 = vpop.f32.mrb[45].mxu0  ;;  %v5627_v46 = vpack.c.bf16 %v1174_v56, %v1170_v59  ;;  %3100 = vmatpush1.bf16.msra.mxu0 %v4718_v38  ;;  %v854_v59 = vmul.f32 %v5201_v37, %v663_v25  ;;  %v665_v56 = vpop.f32.mrb[45].mxu1 }
 0x13b   :  { %v1177_v23 = vmax.f32 %v1025_v19, 0.0  ;;  %v853_v17 = vmul.f32 %v5195_v35, %v442_v16  ;;  %v444_v22 = vpop.f32.mrb[46].mxu0  ;;  %v5633_v53 = vpack.c.bf16 %v1175_v6, %v1171_v27  ;;  %3101 = vmatprep.subr.bf16.mxu0 %v6391_v58  ;;  %v855_v27 = vmul.f32 %v5206_v40, %v665_v56  ;;  %v667_v6 = vpop.f32.mrb[46].mxu1 }
 0x13c   :  { %v1026_v44 = vadd.f32 %v5198_v36, %v852_v1  ;;  %v856_v32 = vmul.f32 %v5192_v34, %v444_v22  ;;  %v446_v38 = vpop.f32.mrb[47].mxu0  ;;  %v5639_v33 = vpack.c.bf16 %v1176_v14, %v1172_v55  ;;  %v1028_v22 = vadd.f32 %v5210_v43, %v854_v59  ;;  %v669_v48 = vpop.f32.mrb[47].mxu1  ;;  %v4721_v14 = vld [vmem:[%s6325_s6 + $0x60] sm:$0xff]  }
 0x13d   :  { %v5641_v29 = vpack.c.bf16 %v1177_v23, %v1173_v9  ;;  %v1027_v16 = vadd.f32 %v5204_v39, %v853_v17  ;;  %v857_v19 = vmul.f32 %v5195_v35, %v446_v38  ;;  %2025 = vmatprep.mubr.bf16.mxu1 %v5633_v53  ;;  %v858_v25 = vmul.f32 %v5201_v37, %v667_v6 }
 0x13e   :  { %6392 = vst [vmem:[#allocation23_spill] sm:$0xff] %v5639_v33  ;;  %v1030_v1 = vadd.f32 %v5198_v36, %v856_v32  ;;  %2026 = vmatmul.mubr.bf16.gmra.mrb[116].mxu1 %v5627_v46  ;;  %3102 = vmatpush1.bf16.msra.mxu0 %v4720_v8  ;;  %v1029_v55 = vadd.f32 %v5213_v47, %v855_v27  ;;  %v1178_v17 = vmax.f32 %v1026_v44, 0.0  ;;  %v1180_v59 = vmax.f32 %v1028_v22, 0.0  ;;  %v4722_v44 = vld [vmem:[%s6325_s6 + $0x68] sm:$0xff]  }
 0x13f   :  { %6393 = vst [vmem:[#allocation24_spill] sm:$0xff] %v5641_v29  ;;  %v1031_v9 = vadd.f32 %v5204_v39, %v857_v19  ;;  %v859_v23 = vmul.f32 %v5206_v40, %v669_v48  ;;  %3835 = vmatprep.mubr.msk.bf16.mxu0 %vm1835_vm2, %v5641_v29  ;;  %3103 = vmatprep.subr.bf16.mxu0 %v6391_v58  ;;  %v1179_v38 = vmax.f32 %v1027_v16, 0.0 }
 0x140   :  { %v1182_v32 = vmax.f32 %v1030_v1, 0.0  ;;  %v1032_v8 = vadd.f32 %v5210_v43, %v858_v25  ;;  %2249 = vmatmul.mubr.bf16.gmra.mrb[116].mxu0 %v5639_v33  ;;  %v1181_v6 = vmax.f32 %v1029_v55, 0.0 }
 0x141   :  { %v1183_v56 = vmax.f32 %v1031_v9, 0.0  ;;  %v1033_v19 = vadd.f32 %v5213_v47, %v859_v23  ;;  %v450_v27 = vpop.f32.mrb[48].mxu0  ;;  %v673_v25 = vpop.f32.mrb[48].mxu1 }
 0x142   :  { %v1184_v63 = vmax.f32 %v1032_v8, 0.0  ;;  %v860_v48 = vmul.f32 %v5192_v34, %v450_v27  ;;  %v452_v0 = vpop.f32.mrb[49].mxu0  ;;  %v5664_v29 = vpack.c.bf16 %v1182_v32, %v1178_v17  ;;  %3104 = vmatpush1.bf16.msra.mxu0 %v4721_v14  ;;  %v862_v17 = vmul.f32 %v5201_v37, %v673_v25  ;;  %v675_v32 = vpop.f32.mrb[49].mxu1 }
 0x143   :  { %v1185_v1 = vmax.f32 %v1033_v19, 0.0  ;;  %v861_v22 = vmul.f32 %v5195_v35, %v452_v0  ;;  %v454_v16 = vpop.f32.mrb[50].mxu0  ;;  %v5670_v9 = vpack.c.bf16 %v1183_v56, %v1179_v38  ;;  %3105 = vmatprep.subr.bf16.mxu0 %v6391_v58  ;;  %v863_v38 = vmul.f32 %v5206_v40, %v675_v32  ;;  %v677_v56 = vpop.f32.mrb[50].mxu1 }
 0x144   :  { %v1034_v55 = vadd.f32 %v5198_v36, %v860_v48  ;;  %v864_v23 = vmul.f32 %v5192_v34, %v454_v16  ;;  %v456_v14 = vpop.f32.mrb[51].mxu0  ;;  %v5676_v8 = vpack.c.bf16 %v1184_v63, %v1180_v59  ;;  %v1036_v16 = vadd.f32 %v5210_v43, %v862_v17  ;;  %v679_v33 = vpop.f32.mrb[51].mxu1  ;;  %v4723_v63 = vld [vmem:[%s6325_s6 + $0x70] sm:$0xff]  }
 0x145   :  { %v5678_v27 = vpack.c.bf16 %v1185_v1, %v1181_v6  ;;  %v1035_v0 = vadd.f32 %v5204_v39, %v861_v22  ;;  %v865_v19 = vmul.f32 %v5195_v35, %v456_v14  ;;  %2035 = vmatprep.mubr.bf16.mxu1 %v5670_v9  ;;  %v866_v25 = vmul.f32 %v5201_v37, %v677_v56 }
 0x146   :  { %6394 = vst [vmem:[#allocation25_spill] sm:$0xff] %v5676_v8  ;;  %v1038_v48 = vadd.f32 %v5198_v36, %v864_v23  ;;  %2036 = vmatmul.mubr.bf16.gmra.mrb[120].mxu1 %v5664_v29  ;;  %3106 = vmatpush1.bf16.msra.mxu0 %v4722_v44  ;;  %v1037_v6 = vadd.f32 %v5213_v47, %v863_v38  ;;  %v1186_v22 = vmax.f32 %v1034_v55, 0.0  ;;  %v1188_v17 = vmax.f32 %v1036_v16, 0.0  ;;  %v4725_v55 = vld [vmem:[%s6325_s6 + $0x78] sm:$0xff]  }
 0x147   :  { %6395 = vst [vmem:[#allocation26_spill] sm:$0xff] %v5678_v27  ;;  %v1039_v59 = vadd.f32 %v5204_v39, %v865_v19  ;;  %v867_v1 = vmul.f32 %v5206_v40, %v679_v33  ;;  %3836 = vmatprep.mubr.msk.bf16.mxu0 %vm1835_vm2, %v5678_v27  ;;  %3107 = vmatprep.subr.bf16.mxu0 %v6391_v58  ;;  %v1187_v14 = vmax.f32 %v1035_v0, 0.0 }
 0x148   :  { %v1190_v23 = vmax.f32 %v1038_v48, 0.0  ;;  %v1040_v44 = vadd.f32 %v5210_v43, %v866_v25  ;;  %2259 = vmatmul.mubr.bf16.gmra.mrb[120].mxu0 %v5676_v8  ;;  %v1189_v56 = vmax.f32 %v1037_v6, 0.0 }
 0x149   :  { %v1191_v32 = vmax.f32 %v1039_v59, 0.0  ;;  %v1041_v19 = vadd.f32 %v5213_v47, %v867_v1  ;;  %v460_v38 = vpop.f32.mrb[52].mxu0  ;;  %v683_v25 = vpop.f32.mrb[52].mxu1 }
 0x14a   :  { %v1192_v60 = vmax.f32 %v1040_v44, 0.0  ;;  %v868_v33 = vmul.f32 %v5192_v34, %v460_v38  ;;  %v462_v61 = vpop.f32.mrb[53].mxu0  ;;  %v5701_v27 = vpack.c.bf16 %v1190_v23, %v1186_v22  ;;  %3108 = vmatpush1.bf16.msra.mxu0 %v4723_v63  ;;  %v870_v22 = vmul.f32 %v5201_v37, %v683_v25  ;;  %v685_v23 = vpop.f32.mrb[53].mxu1 }
 0x14b   :  { %v1193_v48 = vmax.f32 %v1041_v19, 0.0  ;;  %v869_v16 = vmul.f32 %v5195_v35, %v462_v61  ;;  %v464_v0 = vpop.f32.mrb[54].mxu0  ;;  %v5707_v59 = vpack.c.bf16 %v1191_v32, %v1187_v14  ;;  %3109 = vmatprep.subr.bf16.mxu0 %v6391_v58  ;;  %v871_v14 = vmul.f32 %v5206_v40, %v685_v23  ;;  %v687_v32 = vpop.f32.mrb[54].mxu1 }
 0x14c   :  { %v1042_v6 = vadd.f32 %v5198_v36, %v868_v33  ;;  %v872_v1 = vmul.f32 %v5192_v34, %v464_v0  ;;  %v466_v63 = vpop.f32.mrb[55].mxu0  ;;  %v5713_v44 = vpack.c.bf16 %v1192_v60, %v1188_v17  ;;  %v1044_v0 = vadd.f32 %v5210_v43, %v870_v22  ;;  %v689_v8 = vpop.f32.mrb[55].mxu1 }
 0x14d   :  { %v5715_v38 = vpack.c.bf16 %v1193_v48, %v1189_v56  ;;  %v1043_v61 = vadd.f32 %v5204_v39, %v869_v16  ;;  %v873_v19 = vmul.f32 %v5195_v35, %v466_v63  ;;  %2045 = vmatprep.mubr.bf16.mxu1 %v5707_v59  ;;  %v874_v25 = vmul.f32 %v5201_v37, %v687_v32 }
 0x14e   :  { %6396 = vst [vmem:[#allocation27_spill] sm:$0xff] %v5713_v44  ;;  %v1046_v33 = vadd.f32 %v5198_v36, %v872_v1  ;;  %2046 = vmatmul.mubr.bf16.gmra.mrb[124].mxu1 %v5701_v27  ;;  %3110 = vmatpush1.bf16.msra.mxu0 %v4725_v55  ;;  %v1045_v17 = vadd.f32 %v5213_v47, %v871_v14  ;;  %v1194_v48 = vmax.f32 %v1042_v6, 0.0  ;;  %v1196_v1 = vmax.f32 %v1044_v0, 0.0 }
 0x14f   :  { %6397 = vst [vmem:[#allocation28_spill] sm:$0xff] %v5715_v38  ;;  %v1047_v60 = vadd.f32 %v5204_v39, %v873_v19  ;;  %v875_v56 = vmul.f32 %v5206_v40, %v689_v8  ;;  %3837 = vmatprep.mubr.msk.bf16.mxu0 %vm1835_vm2, %v5715_v38  ;;  %v1048_v22 = vadd.f32 %v5210_v43, %v874_v25  ;;  %v1195_v63 = vmax.f32 %v1043_v61, 0.0 }
 0x150   :  { %v1198_v16 = vmax.f32 %v1046_v33, 0.0  ;;  %2269 = vmatmul.mubr.bf16.gmra.mrb[124].mxu0 %v5713_v44  ;;  %v1197_v32 = vmax.f32 %v1045_v17, 0.0 }
 0x151   :  { %v1199_v23 = vmax.f32 %v1047_v60, 0.0  ;;  %v1049_v55 = vadd.f32 %v5213_v47, %v875_v56  ;;  %v470_v19 = vpop.f32.mrb[56].mxu0  ;;  %v1200_v2 = vmax.f32 %v1048_v22, 0.0  ;;  %v693_v0 = vpop.f32.mrb[56].mxu1 }
 0x152   :  { %v876_v14 = vmul.f32 %v5192_v34, %v470_v19  ;;  %v472_v8 = vpop.f32.mrb[57].mxu0  ;;  %v5734_v3 = vpack.c.bf16 %v1198_v16, %v1194_v48  ;;  %v878_v17 = vmul.f32 %v5201_v37, %v693_v0  ;;  %v695_v22 = vpop.f32.mrb[57].mxu1 }
 0x153   :  { %v1201_v38 = vmax.f32 %v1049_v55, 0.0  ;;  %v877_v6 = vmul.f32 %v5195_v35, %v472_v8  ;;  %v474_v33 = vpop.f32.mrb[58].mxu0  ;;  %v5737_v25 = vpack.c.bf16 %v1199_v23, %v1195_v63  ;;  %v5742_v44 = vpack.c.bf16 %v1200_v2, %v1196_v1  ;;  %v697_v63 = vpop.f32.mrb[58].mxu1 }
 0x154   :  { %v1050_v61 = vadd.f32 %v5198_v36, %v876_v14  ;;  %v880_v60 = vmul.f32 %v5192_v34, %v474_v33  ;;  %v476_v56 = vpop.f32.mrb[59].mxu0  ;;  %v879_v55 = vmul.f32 %v5206_v40, %v695_v22  ;;  %v1052_v14 = vadd.f32 %v5210_v43, %v878_v17  ;;  %v699_v33 = vpop.f32.mrb[59].mxu1 }
 0x155   :  { %6398 = vst [vmem:[#allocation29_spill] sm:$0xff] %v5742_v44  ;;  %v5744_v19 = vpack.c.bf16 %v1201_v38, %v1197_v32  ;;  %v1051_v48 = vadd.f32 %v5204_v39, %v877_v6  ;;  %v881_v16 = vmul.f32 %v5195_v35, %v476_v56  ;;  %2055 = vmatprep.mubr.bf16.mxu1 %v5737_v25 }
 0x156   :  { %v1054_v23 = vadd.f32 %v5198_v36, %v880_v60  ;;  %v882_v8 = vmul.f32 %v5201_v37, %v697_v63  ;;  %2056 = vmatmul.mubr.bf16.gmra.mrb[128].mxu1 %v5734_v3  ;;  %v1053_v38 = vadd.f32 %v5213_v47, %v879_v55  ;;  %v883_v1 = vmul.f32 %v5206_v40, %v699_v33 }
 0x157   :  { %6399 = vst [vmem:[#allocation30_spill] sm:$0xff] %v5744_v19  ;;  %v1055_v2 = vadd.f32 %v5204_v39, %v881_v16  ;;  %3838 = vmatprep.mubr.msk.bf16.mxu0 %vm1835_vm2, %v5744_v19  ;;  %v1202_v32 = vmax.f32 %v1050_v61, 0.0  ;;  %v1204_v0 = vmax.f32 %v1052_v14, 0.0  ;;  %v1203_v17 = vmax.f32 %v1051_v48, 0.0 }
 0x158   :  { %v1206_v6 = vmax.f32 %v1054_v23, 0.0  ;;  %v1056_v60 = vadd.f32 %v5210_v43, %v882_v8  ;;  %2279 = vmatmul.mubr.bf16.gmra.mrb[128].mxu0 %v5742_v44  ;;  %v1205_v22 = vmax.f32 %v1053_v38, 0.0  ;;  %v1057_v63 = vadd.f32 %v5213_v47, %v883_v1 }
 0x159   :  { %v1207_v56 = vmax.f32 %v1055_v2, 0.0  ;;  %v480_v16 = vpop.f32.mrb[60].mxu0  ;;  %v703_v14 = vpop.f32.mrb[60].mxu1 }
 0x15a   :  { %v1208_v12 = vmax.f32 %v1056_v60, 0.0  ;;  %v884_v55 = vmul.f32 %v5192_v34, %v480_v16  ;;  %v482_v33 = vpop.f32.mrb[61].mxu0  ;;  %v5763_v13 = vpack.c.bf16 %v1206_v6, %v1202_v32  ;;  %v1209_v19 = vmax.f32 %v1057_v63, 0.0  ;;  %v705_v60 = vpop.f32.mrb[61].mxu1 }
 0x15b   :  { %v885_v61 = vmul.f32 %v5195_v35, %v482_v33  ;;  %v484_v23 = vpop.f32.mrb[62].mxu0  ;;  %v5766_v8 = vpack.c.bf16 %v1207_v56, %v1203_v17  ;;  %v886_v38 = vmul.f32 %v5201_v37, %v703_v14  ;;  %v887_v63 = vmul.f32 %v5206_v40, %v705_v60  ;;  %v707_v17 = vpop.f32.mrb[62].mxu1 }
 0x15c   :  { %v1058_v48 = vadd.f32 %v5198_v36, %v884_v55  ;;  %v888_v2 = vmul.f32 %v5192_v34, %v484_v23  ;;  %v486_v1 = vpop.f32.mrb[63].mxu0  ;;  %v5771_v44 = vpack.c.bf16 %v1208_v12, %v1204_v0  ;;  %v5773_v16 = vpack.c.bf16 %v1209_v19, %v1205_v22  ;;  %v709_v23 = vpop.f32.mrb[63].mxu1 }
 0x15d   :  { %v1059_v32 = vadd.f32 %v5204_v39, %v885_v61  ;;  %v889_v6 = vmul.f32 %v5195_v35, %v486_v1  ;;  %2065 = vmatprep.mubr.bf16.mxu1 %v5766_v8  ;;  %v1060_v55 = vadd.f32 %v5210_v43, %v886_v38  ;;  %v890_v33 = vmul.f32 %v5201_v37, %v707_v17 }
 0x15e   :  { %6400 = vst [vmem:[#allocation31_spill] sm:$0xff] %v5771_v44  ;;  %6401 = vst [vmem:[#allocation32_spill] sm:$0xff] %v5773_v16  ;;  %v1062_v56 = vadd.f32 %v5198_v36, %v888_v2  ;;  %2066 = vmatmul.mubr.bf16.gmra.mrb[132].mxu1 %v5763_v13  ;;  %v1061_v19 = vadd.f32 %v5213_v47, %v887_v63  ;;  %v891_v0 = vmul.f32 %v5206_v40, %v709_v23 }
 0x15f   :  { %v1063_v12 = vadd.f32 %v5204_v39, %v889_v6  ;;  %3839 = vmatprep.mubr.msk.bf16.mxu0 %vm1835_vm2, %v5773_v16  ;;  %v1210_v22 = vmax.f32 %v1058_v48, 0.0  ;;  %v1212_v14 = vmax.f32 %v1060_v55, 0.0  ;;  %v1064_v2 = vadd.f32 %v5210_v43, %v890_v33 }
 0x160   :  { %v1214_v61 = vmax.f32 %v1062_v56, 0.0  ;;  %2289 = vmatmul.mubr.bf16.gmra.mrb[132].mxu0 %v5771_v44  ;;  %v1211_v38 = vmax.f32 %v1059_v32, 0.0  ;;  %v1213_v60 = vmax.f32 %v1061_v19, 0.0  ;;  %v1065_v17 = vadd.f32 %v5213_v47, %v891_v0 }
 0x161   :  { %v1215_v1 = vmax.f32 %v1063_v12, 0.0  ;;  %v490_v6 = vpop.f32.mrb[64].mxu0  ;;  %v1216_v20 = vmax.f32 %v1064_v2, 0.0  ;;  %v713_v55 = vpop.f32.mrb[64].mxu1 }
 0x162   :  { %v892_v63 = vmul.f32 %v5192_v34, %v490_v6  ;;  %v492_v23 = vpop.f32.mrb[65].mxu0  ;;  %v5792_v26 = vpack.c.bf16 %v1214_v61, %v1210_v22  ;;  %v1217_v16 = vmax.f32 %v1065_v17, 0.0  ;;  %v894_v19 = vmul.f32 %v5201_v37, %v713_v55  ;;  %v715_v2 = vpop.f32.mrb[65].mxu1 }
 0x163   :  { %v893_v48 = vmul.f32 %v5195_v35, %v492_v23  ;;  %v494_v56 = vpop.f32.mrb[66].mxu0  ;;  %v5795_v33 = vpack.c.bf16 %v1215_v1, %v1211_v38  ;;  %v5800_v44 = vpack.c.bf16 %v1216_v20, %v1212_v14  ;;  %v895_v17 = vmul.f32 %v5206_v40, %v715_v2  ;;  %v717_v38 = vpop.f32.mrb[66].mxu1 }
 0x164   :  { %6402 = vst [vmem:[#allocation33_spill] sm:$0xff] %v5792_v26  ;;  %v1066_v32 = vadd.f32 %v5198_v36, %v892_v63  ;;  %v896_v12 = vmul.f32 %v5192_v34, %v494_v56  ;;  %v496_v0 = vpop.f32.mrb[67].mxu0  ;;  %v5802_v6 = vpack.c.bf16 %v1217_v16, %v1213_v60  ;;  %v1068_v63 = vadd.f32 %v5210_v43, %v894_v19  ;;  %v719_v56 = vpop.f32.mrb[67].mxu1 }
 0x165   :  { %6403 = vst [vmem:[#allocation34_spill] sm:$0xff] %v5795_v33  ;;  %6404 = vst [vmem:[#allocation35_spill] sm:$0xff] %v5800_v44  ;;  %v1067_v22 = vadd.f32 %v5204_v39, %v893_v48  ;;  %v897_v61 = vmul.f32 %v5195_v35, %v496_v0  ;;  %2075 = vmatprep.mubr.bf16.mxu1 %v5795_v33  ;;  %v898_v23 = vmul.f32 %v5201_v37, %v717_v38 }
 0x166   :  { %6405 = vst [vmem:[#allocation36_spill] sm:$0xff] %v5802_v6  ;;  %v1070_v1 = vadd.f32 %v5198_v36, %v896_v12  ;;  %2076 = vmatmul.mubr.bf16.gmra.mrb[136].mxu1 %v5792_v26  ;;  %v1069_v16 = vadd.f32 %v5213_v47, %v895_v17  ;;  %v899_v14 = vmul.f32 %v5206_v40, %v719_v56  ;;  %v1218_v60 = vmax.f32 %v1066_v32, 0.0 }
 0x167   :  { %v1071_v20 = vadd.f32 %v5204_v39, %v897_v61  ;;  %3840 = vmatprep.mubr.msk.bf16.mxu0 %vm1835_vm2, %v5802_v6  ;;  %v1220_v55 = vmax.f32 %v1068_v63, 0.0  ;;  %v1072_v12 = vadd.f32 %v5210_v43, %v898_v23  ;;  %v1219_v19 = vmax.f32 %v1067_v22, 0.0 }
 0x168   :  { %v1222_v48 = vmax.f32 %v1070_v1, 0.0  ;;  %2299 = vmatmul.mubr.bf16.gmra.mrb[136].mxu0 %v5800_v44  ;;  %v1221_v2 = vmax.f32 %v1069_v16, 0.0  ;;  %v1073_v38 = vadd.f32 %v5213_v47, %v899_v14 }
 0x169   :  { %v1223_v0 = vmax.f32 %v1071_v20, 0.0  ;;  %v500_v61 = vpop.f32.mrb[68].mxu0  ;;  %v1224_v26 = vmax.f32 %v1072_v12, 0.0  ;;  %v723_v63 = vpop.f32.mrb[68].mxu1 }
 0x16a   :  { %v900_v17 = vmul.f32 %v5192_v34, %v500_v61  ;;  %v502_v56 = vpop.f32.mrb[69].mxu0  ;;  %v5821_v33 = vpack.c.bf16 %v1222_v48, %v1218_v60  ;;  %v1225_v6 = vmax.f32 %v1073_v38, 0.0  ;;  %v902_v16 = vmul.f32 %v5201_v37, %v723_v63  ;;  %v725_v12 = vpop.f32.mrb[69].mxu1 }
 0x16b   :  { %v901_v32 = vmul.f32 %v5195_v35, %v502_v56  ;;  %v504_v1 = vpop.f32.mrb[70].mxu0  ;;  %v5824_v23 = vpack.c.bf16 %v1223_v0, %v1219_v19  ;;  %v5829_v44 = vpack.c.bf16 %v1224_v26, %v1220_v55  ;;  %v903_v38 = vmul.f32 %v5206_v40, %v725_v12  ;;  %v727_v19 = vpop.f32.mrb[70].mxu1 }
 0x16c   :  { %6406 = vst [vmem:[#allocation37_spill] sm:$0xff] %v5821_v33  ;;  %v1074_v22 = vadd.f32 %v5198_v36, %v900_v17  ;;  %v904_v20 = vmul.f32 %v5192_v34, %v504_v1  ;;  %v506_v14 = vpop.f32.mrb[71].mxu0  ;;  %v5831_v61 = vpack.c.bf16 %v1225_v6, %v1221_v2  ;;  %v1076_v17 = vadd.f32 %v5210_v43, %v902_v16  ;;  %v729_v1 = vpop.f32.mrb[71].mxu1 }
 0x16d   :  { %6407 = vst [vmem:[#allocation38_spill] sm:$0xff] %v5824_v23  ;;  %6408 = vst [vmem:[#allocation39_spill] sm:$0xff] %v5829_v44  ;;  %v1075_v60 = vadd.f32 %v5204_v39, %v901_v32  ;;  %v905_v48 = vmul.f32 %v5195_v35, %v506_v14  ;;  %2085 = vmatprep.mubr.bf16.mxu1 %v5824_v23  ;;  %v906_v56 = vmul.f32 %v5201_v37, %v727_v19 }
 0x16e   :  { %6409 = vst [vmem:[#allocation40_spill] sm:$0xff] %v5831_v61  ;;  %v1078_v0 = vadd.f32 %v5198_v36, %v904_v20  ;;  %2086 = vmatmul.mubr.bf16.gmra.mrb[140].mxu1 %v5821_v33  ;;  %v1077_v6 = vadd.f32 %v5213_v47, %v903_v38  ;;  %v907_v55 = vmul.f32 %v5206_v40, %v729_v1  ;;  %v1226_v2 = vmax.f32 %v1074_v22, 0.0 }
 0x16f   :  { %v1079_v26 = vadd.f32 %v5204_v39, %v905_v48  ;;  %3841 = vmatprep.mubr.msk.bf16.mxu0 %vm1835_vm2, %v5831_v61  ;;  %v1228_v63 = vmax.f32 %v1076_v17, 0.0  ;;  %v1080_v20 = vadd.f32 %v5210_v43, %v906_v56  ;;  %v1227_v16 = vmax.f32 %v1075_v60, 0.0 }
 0x170   :  { %v1230_v32 = vmax.f32 %v1078_v0, 0.0  ;;  %2309 = vmatmul.mubr.bf16.gmra.mrb[140].mxu0 %v5829_v44  ;;  %v1229_v12 = vmax.f32 %v1077_v6, 0.0  ;;  %v1081_v19 = vadd.f32 %v5213_v47, %v907_v55 }
 0x171   :  { %v1231_v14 = vmax.f32 %v1079_v26, 0.0  ;;  %v510_v48 = vpop.f32.mrb[72].mxu0  ;;  %v1232_v33 = vmax.f32 %v1080_v20, 0.0  ;;  %v733_v17 = vpop.f32.mrb[72].mxu1 }
 0x172   :  { %v908_v38 = vmul.f32 %v5192_v34, %v510_v48  ;;  %v512_v1 = vpop.f32.mrb[73].mxu0  ;;  %v5850_v23 = vpack.c.bf16 %v1230_v32, %v1226_v2  ;;  %v1233_v61 = vmax.f32 %v1081_v19, 0.0  ;;  %v910_v6 = vmul.f32 %v5201_v37, %v733_v17  ;;  %v735_v20 = vpop.f32.mrb[73].mxu1 }
 0x173   :  { %v909_v22 = vmul.f32 %v5195_v35, %v512_v1  ;;  %v514_v0 = vpop.f32.mrb[74].mxu0  ;;  %v5853_v56 = vpack.c.bf16 %v1231_v14, %v1227_v16  ;;  %v5858_v44 = vpack.c.bf16 %v1232_v33, %v1228_v63  ;;  %v911_v19 = vmul.f32 %v5206_v40, %v735_v20  ;;  %v737_v16 = vpop.f32.mrb[74].mxu1 }
 0x174   :  { %v1082_v60 = vadd.f32 %v5198_v36, %v908_v38  ;;  %v912_v26 = vmul.f32 %v5192_v34, %v514_v0  ;;  %v516_v55 = vpop.f32.mrb[75].mxu0  ;;  %v5860_v48 = vpack.c.bf16 %v1233_v61, %v1229_v12  ;;  %v1084_v34 = vadd.f32 %v5210_v43, %v910_v6  ;;  %v739_v1 = vpop.f32.mrb[75].mxu1 }
 0x175   :  { %v1083_v2 = vadd.f32 %v5204_v39, %v909_v22  ;;  %v913_v32 = vmul.f32 %v5195_v35, %v516_v55  ;;  %2095 = vmatprep.mubr.bf16.mxu1 %v5853_v56  ;;  %v914_v38 = vmul.f32 %v5201_v37, %v737_v16  ;;  %v1085_v61 = vadd.f32 %v5213_v47, %v911_v19 }
 0x176   :  { %v1086_v14 = vadd.f32 %v5198_v36, %v912_v26  ;;  %2096 = vmatmul.mubr.bf16.gmra.mrb[144].mxu1 %v5850_v23  ;;  %v915_v35 = vmul.f32 %v5206_v40, %v739_v1  ;;  %3842 = vmatprep.mubr.msk.bf16.mxu0 %vm1835_vm2, %v5860_v48  ;;  %v1234_v63 = vmax.f32 %v1082_v60, 0.0  ;;  %v1236_v22 = vmax.f32 %v1084_v34, 0.0 }
 0x177   :  { %v1087_v33 = vadd.f32 %v5204_v39, %v913_v32  ;;  %v1088_v36 = vadd.f32 %v5210_v43, %v914_v38  ;;  %v1235_v37 = vmax.f32 %v1083_v2, 0.0  ;;  %v1237_v17 = vmax.f32 %v1085_v61, 0.0  ;;  %v4705_v43 = vld [vmem:[%s6322_s4 + $0x188] ss:$12 sps:$4 sm:$0xff]  }
 0x178   :  { %v1238_v12 = vmax.f32 %v1086_v14, 0.0  ;;  %2319 = vmatmul.mubr.bf16.gmra.mrb[144].mxu0 %v5858_v44  ;;  %v1089_v26 = vadd.f32 %v5213_v47, %v915_v35  ;;  %v4708_v47 = vld [vmem:[%s6322_s4 + $0x1a0] ss:$12 sps:$4 sm:$0xff]  }
 0x179   :  { %v1239_v0 = vmax.f32 %v1087_v33, 0.0  ;;  %v1240_v39 = vmax.f32 %v1088_v36, 0.0 }
 0x17a   :  { %v5878_v6 = vpack.c.bf16 %v1238_v12, %v1234_v63  ;;  %v1241_v55 = vmax.f32 %v1089_v26, 0.0 }
 0x17b   :  { %v5880_v40 = vpack.c.bf16 %v1239_v0, %v1235_v37  ;;  %v5882_v20 = vpack.c.bf16 %v1240_v39, %v1236_v22 }
 0x17c   :  { %v5884_v60 = vpack.c.bf16 %v1241_v55, %v1237_v17 }
 0x17d   :  { %2105 = vmatprep.mubr.bf16.mxu1 %v5880_v40 }
 0x17e   :  { %2106 = vmatmul.mubr.bf16.gmra.mrb[148].mxu1 %v5878_v6  ;;  %3843 = vmatprep.mubr.msk.bf16.mxu0 %vm1835_vm2, %v5884_v60 }
 0x17f   :  { %2371 = vmatprep.mubr.bf16.mxu1 %v5233_v18  ;;  %v4714_v18 = vld [vmem:[%s6322_s4 + $0x1b8] ss:$12 sps:$4 sm:$0xff]  }
 0x180   :  { %2329 = vmatmul.mubr.bf16.gmra.mrb[148].mxu0 %v5882_v20 }
 0x186   :  { %2372 = vmatmul.mubr.bf16.vlgmr.msra.gmra.mrb[152].mxu1 %v5229_v10  ;;  %v4719_v10 = vld [vmem:[%s6322_s4 + $0x1d0] ss:$12 sps:$4 sm:$0xff]  }
 0x187   :  { %2525 = vmatpush1.bf16.msra.mxu1 %v4705_v43  ;;  %2379 = vmatprep.mubr.bf16.mxu1 %v5269_v4  ;;  %v4724_v4 = vld [vmem:[%s6322_s4 + $0x1e8] ss:$12 sps:$4 sm:$0xff]  }
 0x188   :  { %2526 = vmatprep.subr.bf16.mxu1 %v6391_v58 }
 0x18b   :  { %2527 = vmatpush1.bf16.msra.mxu1 %v4708_v47 }
 0x18c   :  { %2528 = vmatprep.subr.bf16.mxu1 %v6391_v58 }
 0x18e   :  { %2380 = vmatmul.mubr.bf16.gmra.mrb[156].mxu1 %v5266_v62  ;;  %v4726_v62 = vld [vmem:[%s6322_s4 + $0x200] ss:$12 sps:$4 sm:$0xff]  }
 0x18f   :  { %2387 = vmatprep.mubr.bf16.mxu1 %v5306_v57  ;;  %2529 = vmatpush1.bf16.msra.mxu1 %v4714_v18  ;;  %v4727_v57 = vld [vmem:[%s6322_s4 + $0x218] ss:$12 sps:$4 sm:$0xff]  }
 0x190   :  { %2530 = vmatprep.subr.bf16.mxu1 %v6391_v58 }
 0x193   :  { %2531 = vmatpush1.bf16.msra.mxu1 %v4719_v10 }
 0x194   :  { %2532 = vmatprep.subr.bf16.mxu1 %v6391_v58 }
 0x196   :  { %2388 = vmatmul.mubr.bf16.gmra.mrb[160].mxu1 %v5303_v52  ;;  %v4728_v52 = vld [vmem:[%s6322_s4 + $0x230] ss:$12 sps:$4 sm:$0xff]  }
 0x197   :  { %2395 = vmatprep.mubr.bf16.mxu1 %v5343_v51  ;;  %2533 = vmatpush1.bf16.msra.mxu1 %v4724_v4  ;;  %v4729_v51 = vld [vmem:[%s6322_s4 + $0x248] ss:$12 sps:$4 sm:$0xff]  }
 0x198   :  { %2534 = vmatprep.subr.bf16.mxu1 %v6391_v58 }
 0x19b   :  { %2535 = vmatpush1.bf16.msra.mxu1 %v4726_v62 }
 0x19c   :  { %2536 = vmatprep.subr.bf16.mxu1 %v6391_v58 }
 0x19e   :  { %2396 = vmatmul.mubr.bf16.gmra.mrb[164].mxu1 %v5340_v45  ;;  %v1418_v45 = vld [vmem:[%s6326_s5] sm:$0x7] }
 0x19f   :  { %2403 = vmatprep.mubr.bf16.mxu1 %v5380_v50  ;;  %2537 = vmatpush1.bf16.msra.mxu1 %v4727_v57  ;;  %v5946_v50 = vrot.slane %v1418_v45, %v5179_v28 }
 0x1a0   :  { %2538 = vmatprep.subr.bf16.mxu1 %v6391_v58 }
 0x1a3   :  { %2539 = vmatpush1.bf16.msra.mxu1 %v4728_v52 }
 0x1a4   :  { %2540 = vmatprep.subr.bf16.mxu1 %v6391_v58 }
 0x1a6   :  { %2404 = vmatmul.mubr.bf16.gmra.mrb[168].mxu1 %v5377_v42  ;;  %v5950_v42 = vrot.slane %v1418_v45, %v5184_v30 }
 0x1a7   :  { %2411 = vmatprep.mubr.bf16.mxu1 %v5427_v5  ;;  %2541 = vmatpush1.bf16.msra.mxu1 %v4729_v51 }
 0x1ae   :  { %2412 = vmatmul.mubr.bf16.gmra.mrb[172].mxu1 %v5423_v54 }
 0x1af   :  { %2419 = vmatprep.mubr.bf16.mxu1 %v5471_v24 }
 0x1b6   :  { %2420 = vmatmul.mubr.bf16.gmra.mrb[176].mxu1 %v5468_v15 }
 0x1b7   :  { %2427 = vmatprep.mubr.bf16.mxu1 %v5516_v11 }
 0x1be   :  { %2428 = vmatmul.mubr.bf16.gmra.mrb[180].mxu1 %v5513_v49 }
 0x1bf   :  { %2435 = vmatprep.mubr.bf16.mxu1 %v5558_v7 }
 0x1c1   :  { %v1927_v54 = vpop.f32.mrb[76].mxu1 }
 0x1c2   :  { %v1928_v5 = vadd.f32 %v1927_v54, %v5946_v50  ;;  %v1929_v15 = vpop.f32.mrb[77].mxu1  ;;  %v2150_v58 = vpop.f32.mrb[76].mxu0 }
 0x1c3   :  { %v1930_v24 = vadd.f32 %v1929_v15, %v5950_v42  ;;  %v1931_v11 = vpop.f32.mrb[78].mxu1  ;;  %v2152_v19 = vpop.f32.mrb[77].mxu0 }
 0x1c4   :  { %v1932_v2 = vadd.f32 %v1931_v11, %v5946_v50  ;;  %v2151_v32 = vadd.f32 %v2150_v58, %v1928_v5  ;;  %v1933_v49 = vpop.f32.mrb[79].mxu1  ;;  %v2154_v7 = vpop.f32.mrb[78].mxu0 }
 0x1c5   :  { %v1934_v28 = vadd.f32 %v1933_v49, %v5950_v42  ;;  %v2153_v16 = vadd.f32 %v2152_v19, %v1930_v24  ;;  %v2156_v30 = vpop.f32.mrb[79].mxu0 }
 0x1c6   :  { %v2155_v14 = vadd.f32 %v2154_v7, %v1932_v2  ;;  %2436 = vmatmul.mubr.bf16.gmra.mrb[184].mxu1 %v5552_v41  ;;  %v2709_v38 = vmax.f32 %v2151_v32, 0.0 }
 0x1c7   :  { %v2157_v34 = vadd.f32 %v2156_v30, %v1934_v28  ;;  %2443 = vmatprep.mubr.bf16.mxu1 %v5596_v21  ;;  %v2710_v33 = vmax.f32 %v2153_v16, 0.0 }
 0x1c8   :  { %v2712_v1 = vmax.f32 %v2155_v14, 0.0 }
 0x1c9   :  { %v2713_v61 = vmax.f32 %v2157_v34, 0.0  ;;  %v1937_v35 = vpop.f32.mrb[80].mxu1 }
 0x1ca   :  { %v2823_v63 = vpack.c.bf16 %v2712_v1, %v2709_v38  ;;  %v1938_v12 = vadd.f32 %v1937_v35, %v5946_v50  ;;  %v1939_v22 = vpop.f32.mrb[81].mxu1 }
 0x1cb   :  { %v2824_v36 = vpack.c.bf16 %v2713_v61, %v2710_v33  ;;  %v1940_v37 = vadd.f32 %v1939_v22, %v5950_v42  ;;  %v1941_v0 = vpop.f32.mrb[82].mxu1  ;;  %v2160_v17 = vpop.f32.mrb[80].mxu0 }
 0x1cc   :  { %v1942_v26 = vadd.f32 %v1941_v0, %v5946_v50  ;;  %v2161_v41 = vadd.f32 %v2160_v17, %v1938_v12  ;;  %v1943_v39 = vpop.f32.mrb[83].mxu1  ;;  %v2162_v55 = vpop.f32.mrb[81].mxu0 }
 0x1cd   :  { %v1944_v21 = vadd.f32 %v1943_v39, %v5950_v42  ;;  %v2163_v43 = vadd.f32 %v2162_v55, %v1940_v37  ;;  %v2164_v47 = vpop.f32.mrb[82].mxu0  ;;  %3111 = vmatprep.mubr.bf16.mxu0 %v2824_v36 }
 0x1ce   :  { %v2165_v18 = vadd.f32 %v2164_v47, %v1942_v26  ;;  %v2166_v10 = vpop.f32.mrb[83].mxu0  ;;  %2444 = vmatmul.mubr.bf16.gmra.mrb[188].mxu1 %v5590_v31  ;;  %3112 = vmatmul.mubr.bf16.vlgmr.msra.gmra.mrb[152].mxu0 %v2823_v63  ;;  %v2715_v62 = vmax.f32 %v2161_v41, 0.0 }
 0x1cf   :  { %v2167_v4 = vadd.f32 %v2166_v10, %v1944_v21  ;;  %2451 = vmatprep.mubr.bf16.mxu1 %v5633_v53  ;;  %v2716_v52 = vmax.f32 %v2163_v43, 0.0 }
 0x1d0   :  { %v2718_v57 = vmax.f32 %v2165_v18, 0.0  ;;  %v4730_v18 = vld [vmem:[%s6325_s6 + $0x80] sm:$0xff]  }
 0x1d1   :  { %v2719_v51 = vmax.f32 %v2167_v4, 0.0  ;;  %v1947_v45 = vpop.f32.mrb[84].mxu1 }
 0x1d2   :  { %v2826_v54 = vpack.c.bf16 %v2718_v57, %v2715_v62  ;;  %v1948_v5 = vadd.f32 %v1947_v45, %v5946_v50  ;;  %v1949_v15 = vpop.f32.mrb[85].mxu1  ;;  %v4816_v62 = vmov 0.0  }
 0x1d3   :  { %v2827_v24 = vpack.c.bf16 %v2719_v51, %v2716_v52  ;;  %v1950_v11 = vadd.f32 %v1949_v15, %v5950_v42  ;;  %v1951_v58 = vpop.f32.mrb[86].mxu1  ;;  %v2170_v2 = vpop.f32.mrb[84].mxu0  ;;  %4104 = vmatprep.subr.bf16.mxu0 %v4816_v62 }
 0x1d4   :  { %v1952_v31 = vadd.f32 %v1951_v58, %v5946_v50  ;;  %v2171_v32 = vadd.f32 %v2170_v2, %v1948_v5  ;;  %v1953_v49 = vpop.f32.mrb[87].mxu1  ;;  %v2172_v19 = vpop.f32.mrb[85].mxu0  ;;  %4105 = vmatpush3.bf16.msra.mxu0 %v4730_v18 }
 0x1d5   :  { %v1954_v53 = vadd.f32 %v1953_v49, %v5950_v42  ;;  %v2173_v28 = vadd.f32 %v2172_v19, %v1950_v11  ;;  %v2174_v16 = vpop.f32.mrb[86].mxu0  ;;  %3119 = vmatprep.mubr.bf16.mxu0 %v2827_v24  ;;  %4106 = vmatprep.subr.bf16.mxu0 %v4816_v62 }
 0x1d6   :  { %v2175_v7 = vadd.f32 %v2174_v16, %v1952_v31  ;;  %v2176_v14 = vpop.f32.mrb[87].mxu0  ;;  %2452 = vmatmul.mubr.bf16.gmra.mrb[192].mxu1 %v5627_v46  ;;  %3120 = vmatmul.mubr.bf16.gmra.mrb[156].mxu0 %v2826_v54  ;;  %v2721_v34 = vmax.f32 %v2171_v32, 0.0 }
 0x1d7   :  { %v2177_v30 = vadd.f32 %v2176_v14, %v1954_v53  ;;  %2459 = vmatprep.mubr.bf16.mxu1 %v5670_v9  ;;  %v2722_v1 = vmax.f32 %v2173_v28, 0.0 }
 0x1d8   :  { %v2724_v38 = vmax.f32 %v2175_v7, 0.0 }
 0x1d9   :  { %v2725_v33 = vmax.f32 %v2177_v30, 0.0  ;;  %v1957_v61 = vpop.f32.mrb[88].mxu1 }
 0x1da   :  { %v2829_v35 = vpack.c.bf16 %v2724_v38, %v2721_v34  ;;  %v1958_v63 = vadd.f32 %v1957_v61, %v5946_v50  ;;  %v1959_v12 = vpop.f32.mrb[89].mxu1 }
 0x1db   :  { %v2830_v22 = vpack.c.bf16 %v2725_v33, %v2722_v1  ;;  %v1960_v36 = vadd.f32 %v1959_v12, %v5950_v42  ;;  %v1961_v37 = vpop.f32.mrb[90].mxu1  ;;  %v2180_v0 = vpop.f32.mrb[88].mxu0 }
 0x1dc   :  { %v1962_v46 = vadd.f32 %v1961_v37, %v5946_v50  ;;  %v2181_v17 = vadd.f32 %v2180_v0, %v1958_v63  ;;  %v1963_v26 = vpop.f32.mrb[91].mxu1  ;;  %v2182_v41 = vpop.f32.mrb[89].mxu0 }
 0x1dd   :  { %v1964_v9 = vadd.f32 %v1963_v26, %v5950_v42  ;;  %v2183_v39 = vadd.f32 %v2182_v41, %v1960_v36  ;;  %v2184_v55 = vpop.f32.mrb[90].mxu0  ;;  %3127 = vmatprep.mubr.bf16.mxu0 %v2830_v22 }
 0x1de   :  { %v2185_v21 = vadd.f32 %v2184_v55, %v1962_v46  ;;  %v2186_v43 = vpop.f32.mrb[91].mxu0  ;;  %2460 = vmatmul.mubr.bf16.gmra.mrb[196].mxu1 %v5664_v29  ;;  %3128 = vmatmul.mubr.bf16.gmra.mrb[160].mxu0 %v2829_v35  ;;  %v2727_v10 = vmax.f32 %v2181_v17, 0.0 }
 0x1df   :  { %v2187_v47 = vadd.f32 %v2186_v43, %v1964_v9  ;;  %2467 = vmatprep.mubr.bf16.mxu1 %v5707_v59  ;;  %v2728_v57 = vmax.f32 %v2183_v39, 0.0  ;;  %v4731_v39 = vld [vmem:[%s6325_s6 + $0x88] sm:$0xff]  }
 0x1e0   :  { %v2730_v4 = vmax.f32 %v2185_v21, 0.0  ;;  %4107 = vmatpush3.bf16.msra.mxu0 %v4731_v39 }
 0x1e1   :  { %v2731_v52 = vmax.f32 %v2187_v47, 0.0  ;;  %v1967_v51 = vpop.f32.mrb[92].mxu1  ;;  %4108 = vmatprep.subr.bf16.mxu0 %v4816_v62 }
 0x1e2   :  { %v2832_v45 = vpack.c.bf16 %v2730_v4, %v2727_v10  ;;  %v1968_v29 = vadd.f32 %v1967_v51, %v5946_v50  ;;  %v1969_v54 = vpop.f32.mrb[93].mxu1 }
 0x1e3   :  { %v2833_v59 = vpack.c.bf16 %v2731_v52, %v2728_v57  ;;  %v1970_v5 = vadd.f32 %v1969_v54, %v5950_v42  ;;  %v1971_v15 = vpop.f32.mrb[94].mxu1  ;;  %v2190_v24 = vpop.f32.mrb[92].mxu0 }
 0x1e4   :  { %v1972_v11 = vadd.f32 %v1971_v15, %v5946_v50  ;;  %v2191_v58 = vadd.f32 %v2190_v24, %v1968_v29  ;;  %v1973_v2 = vpop.f32.mrb[95].mxu1  ;;  %v2192_v31 = vpop.f32.mrb[93].mxu0 }
 0x1e5   :  { %v1974_v32 = vadd.f32 %v1973_v2, %v5950_v42  ;;  %v2193_v49 = vadd.f32 %v2192_v31, %v1970_v5  ;;  %v2194_v19 = vpop.f32.mrb[94].mxu0  ;;  %3135 = vmatprep.mubr.bf16.mxu0 %v2833_v59  ;;  %v6410_v31 = vld [vmem:[#allocation34_spill] sm:$0xff] }
 0x1e6   :  { %v2195_v53 = vadd.f32 %v2194_v19, %v1972_v11  ;;  %v2196_v28 = vpop.f32.mrb[95].mxu0  ;;  %2468 = vmatmul.mubr.bf16.gmra.mrb[200].mxu1 %v5701_v27  ;;  %3136 = vmatmul.mubr.bf16.gmra.mrb[164].mxu0 %v2832_v45  ;;  %v2733_v7 = vmax.f32 %v2191_v58, 0.0 }
 0x1e7   :  { %v2197_v16 = vadd.f32 %v2196_v28, %v1974_v32  ;;  %2475 = vmatprep.mubr.bf16.mxu1 %v5737_v25  ;;  %v2734_v30 = vmax.f32 %v2193_v49, 0.0 }
 0x1e8   :  { %v2736_v14 = vmax.f32 %v2195_v53, 0.0 }
 0x1e9   :  { %v2737_v34 = vmax.f32 %v2197_v16, 0.0  ;;  %v1977_v38 = vpop.f32.mrb[96].mxu1 }
 0x1ea   :  { %v2835_v1 = vpack.c.bf16 %v2736_v14, %v2733_v7  ;;  %v1978_v33 = vadd.f32 %v1977_v38, %v5946_v50  ;;  %v1979_v61 = vpop.f32.mrb[97].mxu1 }
 0x1eb   :  { %v2836_v35 = vpack.c.bf16 %v2737_v34, %v2734_v30  ;;  %v1980_v63 = vadd.f32 %v1979_v61, %v5950_v42  ;;  %v1981_v12 = vpop.f32.mrb[98].mxu1  ;;  %v2200_v22 = vpop.f32.mrb[96].mxu0 }
 0x1ec   :  { %v1982_v27 = vadd.f32 %v1981_v12, %v5946_v50  ;;  %v2201_v36 = vadd.f32 %v2200_v22, %v1978_v33  ;;  %v1983_v37 = vpop.f32.mrb[99].mxu1  ;;  %v2202_v0 = vpop.f32.mrb[97].mxu0 }
 0x1ed   :  { %v1984_v25 = vadd.f32 %v1983_v37, %v5950_v42  ;;  %v2203_v46 = vadd.f32 %v2202_v0, %v1980_v63  ;;  %v2204_v17 = vpop.f32.mrb[98].mxu0  ;;  %3143 = vmatprep.mubr.bf16.mxu0 %v2836_v35  ;;  %v6411_v37 = vld [vmem:[#allocation33_spill] sm:$0xff] }
 0x1ee   :  { %v2205_v26 = vadd.f32 %v2204_v17, %v1982_v27  ;;  %v2206_v41 = vpop.f32.mrb[99].mxu0  ;;  %2476 = vmatmul.mubr.bf16.gmra.mrb[204].mxu1 %v5734_v3  ;;  %3144 = vmatmul.mubr.bf16.gmra.mrb[168].mxu0 %v2835_v1  ;;  %v2739_v55 = vmax.f32 %v2201_v36, 0.0 }
 0x1ef   :  { %v2207_v9 = vadd.f32 %v2206_v41, %v1984_v25  ;;  %2483 = vmatprep.mubr.bf16.mxu1 %v5766_v8  ;;  %v2740_v43 = vmax.f32 %v2203_v46, 0.0  ;;  %v6412_v25 = vld [vmem:[#allocation38_spill] sm:$0xff] }
 0x1f0   :  { %v2742_v21 = vmax.f32 %v2205_v26, 0.0 }
 0x1f1   :  { %v2743_v47 = vmax.f32 %v2207_v9, 0.0  ;;  %v1987_v18 = vpop.f32.mrb[100].mxu1 }
 0x1f2   :  { %v2838_v10 = vpack.c.bf16 %v2742_v21, %v2739_v55  ;;  %v1988_v4 = vadd.f32 %v1987_v18, %v5946_v50  ;;  %v1989_v57 = vpop.f32.mrb[101].mxu1 }
 0x1f3   :  { %v2839_v3 = vpack.c.bf16 %v2743_v47, %v2740_v43  ;;  %v1990_v52 = vadd.f32 %v1989_v57, %v5950_v42  ;;  %v1991_v8 = vpop.f32.mrb[102].mxu1  ;;  %v2210_v51 = vpop.f32.mrb[100].mxu0 }
 0x1f4   :  { %v1992_v45 = vadd.f32 %v1991_v8, %v5946_v50  ;;  %v2211_v29 = vadd.f32 %v2210_v51, %v1988_v4  ;;  %v1993_v54 = vpop.f32.mrb[103].mxu1  ;;  %v2212_v59 = vpop.f32.mrb[101].mxu0 }
 0x1f5   :  { %v1994_v5 = vadd.f32 %v1993_v54, %v5950_v42  ;;  %v2213_v15 = vadd.f32 %v2212_v59, %v1990_v52  ;;  %v2214_v24 = vpop.f32.mrb[102].mxu0  ;;  %3151 = vmatprep.mubr.bf16.mxu0 %v2839_v3  ;;  %v6413_v59 = vld [vmem:[#allocation37_spill] sm:$0xff] }
 0x1f6   :  { %v2215_v11 = vadd.f32 %v2214_v24, %v1992_v45  ;;  %v2216_v58 = vpop.f32.mrb[103].mxu0  ;;  %2484 = vmatmul.mubr.bf16.gmra.mrb[208].mxu1 %v5763_v13  ;;  %3152 = vmatmul.mubr.bf16.gmra.mrb[172].mxu0 %v2838_v10  ;;  %v2745_v32 = vmax.f32 %v2211_v29, 0.0 }
 0x1f7   :  { %v2217_v2 = vadd.f32 %v2216_v58, %v1994_v5  ;;  %2491 = vmatprep.mubr.bf16.mxu1 %v6410_v31  ;;  %v2746_v19 = vmax.f32 %v2213_v15, 0.0  ;;  %v4732_v15 = vld [vmem:[%s6325_s6 + $0x90] sm:$0xff]  }
 0x1f8   :  { %v2748_v49 = vmax.f32 %v2215_v11, 0.0  ;;  %4109 = vmatpush3.bf16.msra.mxu0 %v4732_v15 }
 0x1f9   :  { %v2749_v53 = vmax.f32 %v2217_v2, 0.0  ;;  %v1997_v28 = vpop.f32.mrb[104].mxu1  ;;  %4110 = vmatprep.subr.bf16.mxu0 %v4816_v62 }
 0x1fa   :  { %v2841_v16 = vpack.c.bf16 %v2748_v49, %v2745_v32  ;;  %v1998_v7 = vadd.f32 %v1997_v28, %v5946_v50  ;;  %v1999_v14 = vpop.f32.mrb[105].mxu1 }
 0x1fb   :  { %v2842_v30 = vpack.c.bf16 %v2749_v53, %v2746_v19  ;;  %v2000_v34 = vadd.f32 %v1999_v14, %v5950_v42  ;;  %v2001_v38 = vpop.f32.mrb[106].mxu1  ;;  %v2220_v1 = vpop.f32.mrb[104].mxu0 }
 0x1fc   :  { %v2002_v13 = vadd.f32 %v2001_v38, %v5946_v50  ;;  %v2221_v33 = vadd.f32 %v2220_v1, %v1998_v7  ;;  %v2003_v61 = vpop.f32.mrb[107].mxu1  ;;  %v2222_v35 = vpop.f32.mrb[105].mxu0 }
 0x1fd   :  { %v2004_v63 = vadd.f32 %v2003_v61, %v5950_v42  ;;  %v2223_v12 = vadd.f32 %v2222_v35, %v2000_v34  ;;  %v2224_v22 = vpop.f32.mrb[106].mxu0  ;;  %3159 = vmatprep.mubr.bf16.mxu0 %v2842_v30 }
 0x1fe   :  { %v2225_v27 = vadd.f32 %v2224_v22, %v2002_v13  ;;  %v2226_v36 = vpop.f32.mrb[107].mxu0  ;;  %2492 = vmatmul.mubr.bf16.gmra.mrb[212].mxu1 %v6411_v37  ;;  %3160 = vmatmul.mubr.bf16.gmra.mrb[176].mxu0 %v2841_v16  ;;  %v2751_v46 = vmax.f32 %v2221_v33, 0.0 }
 0x1ff   :  { %v2227_v0 = vadd.f32 %v2226_v36, %v2004_v63  ;;  %2499 = vmatprep.mubr.bf16.mxu1 %v6412_v25  ;;  %v2752_v26 = vmax.f32 %v2223_v12, 0.0 }
 0x200   :  { %v2754_v17 = vmax.f32 %v2225_v27, 0.0 }
 0x201   :  { %v2755_v41 = vmax.f32 %v2227_v0, 0.0  ;;  %v2007_v9 = vpop.f32.mrb[108].mxu1 }
 0x202   :  { %v2844_v39 = vpack.c.bf16 %v2754_v17, %v2751_v46  ;;  %v2008_v55 = vadd.f32 %v2007_v9, %v5946_v50  ;;  %v2009_v21 = vpop.f32.mrb[109].mxu1 }
 0x203   :  { %v2845_v43 = vpack.c.bf16 %v2755_v41, %v2752_v26  ;;  %v2010_v47 = vadd.f32 %v2009_v21, %v5950_v42  ;;  %v2011_v18 = vpop.f32.mrb[110].mxu1  ;;  %v2230_v10 = vpop.f32.mrb[108].mxu0 }
 0x204   :  { %v2012_v4 = vadd.f32 %v2011_v18, %v5946_v50  ;;  %v2231_v57 = vadd.f32 %v2230_v10, %v2008_v55  ;;  %v2013_v3 = vpop.f32.mrb[111].mxu1  ;;  %v2232_v52 = vpop.f32.mrb[109].mxu0 }
 0x205   :  { %v2014_v8 = vadd.f32 %v2013_v3, %v5950_v42  ;;  %v2233_v51 = vadd.f32 %v2232_v52, %v2010_v47  ;;  %v2234_v45 = vpop.f32.mrb[110].mxu0  ;;  %3167 = vmatprep.mubr.bf16.mxu0 %v2845_v43 }
 0x206   :  { %v2235_v29 = vadd.f32 %v2234_v45, %v2012_v4  ;;  %v2236_v54 = vpop.f32.mrb[111].mxu0  ;;  %2500 = vmatmul.mubr.bf16.gmra.mrb[216].mxu1 %v6413_v59  ;;  %3168 = vmatmul.mubr.bf16.gmra.mrb[180].mxu0 %v2844_v39  ;;  %v2757_v24 = vmax.f32 %v2231_v57, 0.0  ;;  %v6414_v4 = vld [vmem:[#allocation4_spill] sm:$0xff]  ;;  %v4733_v57 = vld [vmem:[%s6325_s6 + $0x98] sm:$0xff]  }
 0x207   :  { %v2237_v5 = vadd.f32 %v2236_v54, %v2014_v8  ;;  %2507 = vmatprep.mubr.bf16.mxu1 %v5853_v56  ;;  %v2758_v58 = vmax.f32 %v2233_v51, 0.0  ;;  %4111 = vmatpush3.bf16.msra.mxu0 %v4733_v57 }
 0x208   :  { %v2760_v11 = vmax.f32 %v2235_v29, 0.0  ;;  %4112 = vmatprep.subr.bf16.mxu0 %v4816_v62 }
 0x209   :  { %v2761_v2 = vmax.f32 %v2237_v5, 0.0  ;;  %v2017_v31 = vpop.f32.mrb[112].mxu1 }
 0x20a   :  { %v2847_v32 = vpack.c.bf16 %v2760_v11, %v2757_v24  ;;  %v2018_v49 = vadd.f32 %v2017_v31, %v5946_v50  ;;  %v2019_v19 = vpop.f32.mrb[113].mxu1 }
 0x20b   :  { %v2848_v53 = vpack.c.bf16 %v2761_v2, %v2758_v58  ;;  %v2020_v28 = vadd.f32 %v2019_v19, %v5950_v42  ;;  %v2021_v56 = vpop.f32.mrb[114].mxu1  ;;  %v2240_v16 = vpop.f32.mrb[112].mxu0 }
 0x20c   :  { %v2022_v7 = vadd.f32 %v2021_v56, %v5946_v50  ;;  %v2241_v14 = vadd.f32 %v2240_v16, %v2018_v49  ;;  %v2023_v30 = vpop.f32.mrb[115].mxu1  ;;  %v2242_v34 = vpop.f32.mrb[113].mxu0  ;;  %v6415_v56 = vld [vmem:[#allocation3_spill] sm:$0xff] }
 0x20d   :  { %v2024_v38 = vadd.f32 %v2023_v30, %v5950_v42  ;;  %v2243_v1 = vadd.f32 %v2242_v34, %v2020_v28  ;;  %v2244_v13 = vpop.f32.mrb[114].mxu0  ;;  %3175 = vmatprep.mubr.bf16.mxu0 %v2848_v53 }
 0x20e   :  { %v2245_v33 = vadd.f32 %v2244_v13, %v2022_v7  ;;  %v2246_v61 = vpop.f32.mrb[115].mxu0  ;;  %2508 = vmatmul.mubr.bf16.gmra.mrb[220].mxu1 %v5850_v23  ;;  %3176 = vmatmul.mubr.bf16.gmra.mrb[184].mxu0 %v2847_v32  ;;  %v2763_v63 = vmax.f32 %v2241_v14, 0.0  ;;  %v6416_v7 = vld [vmem:[#allocation6_spill] sm:$0xff] }
 0x20f   :  { %v2247_v35 = vadd.f32 %v2246_v61, %v2024_v38  ;;  %2515 = vmatprep.mubr.bf16.mxu1 %v5880_v40  ;;  %v2764_v22 = vmax.f32 %v2243_v1, 0.0 }
 0x210   :  { %v2766_v12 = vmax.f32 %v2245_v33, 0.0 }
 0x211   :  { %v2767_v27 = vmax.f32 %v2247_v35, 0.0  ;;  %v2027_v36 = vpop.f32.mrb[116].mxu1 }
 0x212   :  { %v2850_v37 = vpack.c.bf16 %v2766_v12, %v2763_v63  ;;  %v2028_v0 = vadd.f32 %v2027_v36, %v5946_v50  ;;  %v2029_v25 = vpop.f32.mrb[117].mxu1 }
 0x213   :  { %v2851_v46 = vpack.c.bf16 %v2767_v27, %v2764_v22  ;;  %v2030_v17 = vadd.f32 %v2029_v25, %v5950_v42  ;;  %v2031_v26 = vpop.f32.mrb[118].mxu1  ;;  %v2250_v41 = vpop.f32.mrb[116].mxu0 }
 0x214   :  { %v2032_v23 = vadd.f32 %v2031_v26, %v5946_v50  ;;  %v2251_v9 = vadd.f32 %v2250_v41, %v2028_v0  ;;  %v2033_v39 = vpop.f32.mrb[119].mxu1  ;;  %v2252_v55 = vpop.f32.mrb[117].mxu0 }
 0x215   :  { %v2034_v40 = vadd.f32 %v2033_v39, %v5950_v42  ;;  %v2253_v21 = vadd.f32 %v2252_v55, %v2030_v17  ;;  %v2254_v43 = vpop.f32.mrb[118].mxu0  ;;  %3183 = vmatprep.mubr.bf16.mxu0 %v2851_v46  ;;  %v6418_v39 = vld [vmem:[#allocation8_spill] sm:$0xff] }
 0x216   :  { %v2255_v47 = vadd.f32 %v2254_v43, %v2032_v23  ;;  %v2256_v18 = vpop.f32.mrb[119].mxu0  ;;  %2516 = vmatmul.mubr.bf16.gmra.mrb[224].mxu1 %v5878_v6  ;;  %3184 = vmatmul.mubr.bf16.gmra.mrb[188].mxu0 %v2850_v37  ;;  %v2769_v3 = vmax.f32 %v2251_v9, 0.0  ;;  %v6417_v23 = vld [vmem:[#allocation5_spill] sm:$0xff] }
 0x217   :  { %v2257_v10 = vadd.f32 %v2256_v18, %v2034_v40  ;;  %3844 = vmatprep.mubr.msk.bf16.mxu1 %vm1835_vm2, %v6414_v4  ;;  %v2770_v8 = vmax.f32 %v2253_v21, 0.0 }
 0x218   :  { %v2772_v52 = vmax.f32 %v2255_v47, 0.0 }
 0x219   :  { %v2773_v51 = vmax.f32 %v2257_v10, 0.0  ;;  %v2037_v45 = vpop.f32.mrb[120].mxu1 }
 0x21a   :  { %v2853_v29 = vpack.c.bf16 %v2772_v52, %v2769_v3  ;;  %v2038_v54 = vadd.f32 %v2037_v45, %v5946_v50  ;;  %v2039_v59 = vpop.f32.mrb[121].mxu1 }
 0x21b   :  { %v2854_v6 = vpack.c.bf16 %v2773_v51, %v2770_v8  ;;  %v2040_v5 = vadd.f32 %v2039_v59, %v5950_v42  ;;  %v2041_v15 = vpop.f32.mrb[122].mxu1  ;;  %v2260_v24 = vpop.f32.mrb[120].mxu0 }
 0x21c   :  { %v2042_v11 = vadd.f32 %v2041_v15, %v5946_v50  ;;  %v2261_v58 = vadd.f32 %v2260_v24, %v2038_v54  ;;  %v2043_v2 = vpop.f32.mrb[123].mxu1  ;;  %v2262_v31 = vpop.f32.mrb[121].mxu0 }
 0x21d   :  { %v2044_v32 = vadd.f32 %v2043_v2, %v5950_v42  ;;  %v2263_v49 = vadd.f32 %v2262_v31, %v2040_v5  ;;  %v2264_v19 = vpop.f32.mrb[122].mxu0  ;;  %3191 = vmatprep.mubr.bf16.mxu0 %v2854_v6  ;;  %v6420_v31 = vld [vmem:[#allocation10_spill] sm:$0xff] }
 0x21e   :  { %v2265_v53 = vadd.f32 %v2264_v19, %v2042_v11  ;;  %v2266_v28 = vpop.f32.mrb[123].mxu0  ;;  %2557 = vmatmul.mubr.bf16.vlgmr.msra.gmra.mrb[152].mxu1 %v6415_v56  ;;  %3192 = vmatmul.mubr.bf16.gmra.mrb[192].mxu0 %v2853_v29  ;;  %v2775_v14 = vmax.f32 %v2261_v58, 0.0  ;;  %v6419_v11 = vld [vmem:[#allocation7_spill] sm:$0xff]  ;;  %v4734_v58 = vld [vmem:[%s6325_s6 + $0xa0] sm:$0xff]  }
 0x21f   :  { %v2267_v16 = vadd.f32 %v2266_v28, %v2044_v32  ;;  %3845 = vmatprep.mubr.msk.bf16.mxu1 %vm1835_vm2, %v6416_v7  ;;  %v2776_v34 = vmax.f32 %v2263_v49, 0.0  ;;  %4113 = vmatpush3.bf16.msra.mxu0 %v4734_v58  ;;  %v4735_v19 = vld [vmem:[%s6325_s6 + $0xa8] sm:$0xff]  }
 0x220   :  { %v2778_v30 = vmax.f32 %v2265_v53, 0.0  ;;  %4114 = vmatprep.subr.bf16.mxu0 %v4816_v62 }
 0x221   :  { %v2779_v38 = vmax.f32 %v2267_v16, 0.0  ;;  %v2047_v1 = vpop.f32.mrb[124].mxu1 }
 0x222   :  { %v2856_v13 = vpack.c.bf16 %v2778_v30, %v2775_v14  ;;  %v2048_v33 = vadd.f32 %v2047_v1, %v5946_v50  ;;  %v2049_v61 = vpop.f32.mrb[125].mxu1 }
 0x223   :  { %v2857_v35 = vpack.c.bf16 %v2779_v38, %v2776_v34  ;;  %v2050_v63 = vadd.f32 %v2049_v61, %v5950_v42  ;;  %v2051_v12 = vpop.f32.mrb[126].mxu1  ;;  %v2270_v22 = vpop.f32.mrb[124].mxu0  ;;  %4115 = vmatpush3.bf16.msra.mxu0 %v4735_v19 }
 0x224   :  { %v2052_v27 = vadd.f32 %v2051_v12, %v5946_v50  ;;  %v2271_v36 = vadd.f32 %v2270_v22, %v2048_v33  ;;  %v2053_v37 = vpop.f32.mrb[127].mxu1  ;;  %v2272_v0 = vpop.f32.mrb[125].mxu0  ;;  %4116 = vmatprep.subr.bf16.mxu0 %v4816_v62 }
 0x225   :  { %v2054_v25 = vadd.f32 %v2053_v37, %v5950_v42  ;;  %v2273_v46 = vadd.f32 %v2272_v0, %v2050_v63  ;;  %v2274_v17 = vpop.f32.mrb[126].mxu0  ;;  %3199 = vmatprep.mubr.bf16.mxu0 %v2857_v35  ;;  %v4736_v63 = vld [vmem:[%s6325_s6 + $0xb0] sm:$0xff]   ;;  %v6421_v0 = vld [vmem:[#allocation9_spill] sm:$0xff] }
 0x226   :  { %v2275_v26 = vadd.f32 %v2274_v17, %v2052_v27  ;;  %v2276_v41 = vpop.f32.mrb[127].mxu0  ;;  %2565 = vmatmul.mubr.bf16.gmra.mrb[156].mxu1 %v6417_v23  ;;  %3200 = vmatmul.mubr.bf16.gmra.mrb[196].mxu0 %v2856_v13  ;;  %v2781_v55 = vmax.f32 %v2271_v36, 0.0 }
 0x227   :  { %v2277_v9 = vadd.f32 %v2276_v41, %v2054_v25  ;;  %3846 = vmatprep.mubr.msk.bf16.mxu1 %vm1835_vm2, %v6418_v39  ;;  %v2782_v21 = vmax.f32 %v2273_v46, 0.0  ;;  %v6422_v46 = vld [vmem:[#allocation12_spill] sm:$0xff]  ;;  %4117 = vmatpush3.bf16.msra.mxu0 %v4736_v63  ;;  %v4737_v41 = vld [vmem:[%s6325_s6 + $0xb8] sm:$0xff]  }
 0x228   :  { %v2784_v40 = vmax.f32 %v2275_v26, 0.0  ;;  %4118 = vmatprep.subr.bf16.mxu0 %v4816_v62  ;;  %v6426_v63 = vld [vmem:[#allocation16_spill] sm:$0xff] }
 0x229   :  { %v2785_v43 = vmax.f32 %v2277_v9, 0.0  ;;  %v2057_v47 = vpop.f32.mrb[128].mxu1 }
 0x22a   :  { %v2859_v18 = vpack.c.bf16 %v2784_v40, %v2781_v55  ;;  %v2058_v10 = vadd.f32 %v2057_v47, %v5946_v50  ;;  %v2059_v4 = vpop.f32.mrb[129].mxu1 }
 0x22b   :  { %v2860_v57 = vpack.c.bf16 %v2785_v43, %v2782_v21  ;;  %v2060_v3 = vadd.f32 %v2059_v4, %v5950_v42  ;;  %v2061_v52 = vpop.f32.mrb[130].mxu1  ;;  %v2280_v8 = vpop.f32.mrb[128].mxu0  ;;  %4119 = vmatpush3.bf16.msra.mxu0 %v4737_v41 }
 0x22c   :  { %v2062_v51 = vadd.f32 %v2061_v52, %v5946_v50  ;;  %v2281_v45 = vadd.f32 %v2280_v8, %v2058_v10  ;;  %v2063_v29 = vpop.f32.mrb[131].mxu1  ;;  %v2282_v54 = vpop.f32.mrb[129].mxu0 }
 0x22d   :  { %v2064_v59 = vadd.f32 %v2063_v29, %v5950_v42  ;;  %v2283_v6 = vadd.f32 %v2282_v54, %v2060_v3  ;;  %v2284_v5 = vpop.f32.mrb[130].mxu0  ;;  %3207 = vmatprep.mubr.bf16.mxu0 %v2860_v57 }
 0x22e   :  { %v2285_v15 = vadd.f32 %v2284_v5, %v2062_v51  ;;  %v2286_v24 = vpop.f32.mrb[131].mxu0  ;;  %2573 = vmatmul.mubr.bf16.gmra.mrb[160].mxu1 %v6419_v11  ;;  %3208 = vmatmul.mubr.bf16.gmra.mrb[200].mxu0 %v2859_v18  ;;  %v2787_v32 = vmax.f32 %v2281_v45, 0.0  ;;  %v6424_v5 = vld [vmem:[#allocation14_spill] sm:$0xff] }
 0x22f   :  { %v2287_v2 = vadd.f32 %v2286_v24, %v2064_v59  ;;  %3847 = vmatprep.mubr.msk.bf16.mxu1 %vm1835_vm2, %v6420_v31  ;;  %v2788_v53 = vmax.f32 %v2283_v6, 0.0  ;;  %v6423_v59 = vld [vmem:[#allocation11_spill] sm:$0xff] }
 0x230   :  { %v2790_v49 = vmax.f32 %v2285_v15, 0.0 }
 0x231   :  { %v2791_v28 = vmax.f32 %v2287_v2, 0.0  ;;  %v2067_v56 = vpop.f32.mrb[132].mxu1 }
 0x232   :  { %v2862_v16 = vpack.c.bf16 %v2790_v49, %v2787_v32  ;;  %v2068_v7 = vadd.f32 %v2067_v56, %v5946_v50  ;;  %v2069_v14 = vpop.f32.mrb[133].mxu1 }
 0x233   :  { %v2863_v30 = vpack.c.bf16 %v2791_v28, %v2788_v53  ;;  %v2070_v34 = vadd.f32 %v2069_v14, %v5950_v42  ;;  %v2071_v38 = vpop.f32.mrb[134].mxu1  ;;  %v2290_v1 = vpop.f32.mrb[132].mxu0 }
 0x234   :  { %v2072_v13 = vadd.f32 %v2071_v38, %v5946_v50  ;;  %v2291_v33 = vadd.f32 %v2290_v1, %v2068_v7  ;;  %v2073_v61 = vpop.f32.mrb[135].mxu1  ;;  %v2292_v35 = vpop.f32.mrb[133].mxu0 }
 0x235   :  { %v2074_v12 = vadd.f32 %v2073_v61, %v5950_v42  ;;  %v2293_v22 = vadd.f32 %v2292_v35, %v2070_v34  ;;  %v2294_v27 = vpop.f32.mrb[134].mxu0  ;;  %3215 = vmatprep.mubr.bf16.mxu0 %v2863_v30  ;;  %v6425_v61 = vld [vmem:[#allocation13_spill] sm:$0xff] }
 0x236   :  { %v2295_v36 = vadd.f32 %v2294_v27, %v2072_v13  ;;  %v2296_v37 = vpop.f32.mrb[135].mxu0  ;;  %2581 = vmatmul.mubr.bf16.gmra.mrb[164].mxu1 %v6421_v0  ;;  %3216 = vmatmul.mubr.bf16.gmra.mrb[204].mxu0 %v2862_v16  ;;  %v2793_v17 = vmax.f32 %v2291_v33, 0.0 }
 0x237   :  { %v2297_v25 = vadd.f32 %v2296_v37, %v2074_v12  ;;  %3848 = vmatprep.mubr.msk.bf16.mxu1 %vm1835_vm2, %v6422_v46  ;;  %v2794_v23 = vmax.f32 %v2293_v22, 0.0 }
 0x238   :  { %v2796_v26 = vmax.f32 %v2295_v36, 0.0 }
 0x239   :  { %v2797_v9 = vmax.f32 %v2297_v25, 0.0  ;;  %v2077_v39 = vpop.f32.mrb[136].mxu1 }
 0x23a   :  { %v2865_v55 = vpack.c.bf16 %v2796_v26, %v2793_v17  ;;  %v2078_v40 = vadd.f32 %v2077_v39, %v5946_v50  ;;  %v2079_v21 = vpop.f32.mrb[137].mxu1 }
 0x23b   :  { %v2866_v43 = vpack.c.bf16 %v2797_v9, %v2794_v23  ;;  %v2080_v47 = vadd.f32 %v2079_v21, %v5950_v42  ;;  %v2081_v18 = vpop.f32.mrb[138].mxu1  ;;  %v2300_v10 = vpop.f32.mrb[136].mxu0 }
 0x23c   :  { %v2082_v4 = vadd.f32 %v2081_v18, %v5946_v50  ;;  %v2301_v57 = vadd.f32 %v2300_v10, %v2078_v40  ;;  %v2083_v3 = vpop.f32.mrb[139].mxu1  ;;  %v2302_v52 = vpop.f32.mrb[137].mxu0 }
 0x23d   :  { %v2084_v8 = vadd.f32 %v2083_v3, %v5950_v42  ;;  %v2303_v51 = vadd.f32 %v2302_v52, %v2080_v47  ;;  %v2304_v45 = vpop.f32.mrb[138].mxu0  ;;  %3223 = vmatprep.mubr.bf16.mxu0 %v2866_v43  ;;  %v6428_v3 = vld [vmem:[#allocation18_spill] sm:$0xff] }
 0x23e   :  { %v2305_v29 = vadd.f32 %v2304_v45, %v2082_v4  ;;  %v2306_v54 = vpop.f32.mrb[139].mxu0  ;;  %2589 = vmatmul.mubr.bf16.gmra.mrb[168].mxu1 %v6423_v59  ;;  %3224 = vmatmul.mubr.bf16.gmra.mrb[208].mxu0 %v2865_v55  ;;  %v2799_v15 = vmax.f32 %v2301_v57, 0.0  ;;  %v6427_v4 = vld [vmem:[#allocation15_spill] sm:$0xff] }
 0x23f   :  { %v2307_v6 = vadd.f32 %v2306_v54, %v2084_v8  ;;  %3849 = vmatprep.mubr.msk.bf16.mxu1 %vm1835_vm2, %v6424_v5  ;;  %v2800_v11 = vmax.f32 %v2303_v51, 0.0 }
 0x240   :  { %v2802_v24 = vmax.f32 %v2305_v29, 0.0 }
 0x241   :  { %v2803_v58 = vmax.f32 %v2307_v6, 0.0  ;;  %v2087_v2 = vpop.f32.mrb[140].mxu1 }
 0x242   :  { %v2868_v31 = vpack.c.bf16 %v2802_v24, %v2799_v15  ;;  %v2088_v32 = vadd.f32 %v2087_v2, %v5946_v50  ;;  %v2089_v49 = vpop.f32.mrb[141].mxu1 }
 0x243   :  { %v2869_v19 = vpack.c.bf16 %v2803_v58, %v2800_v11  ;;  %v2090_v53 = vadd.f32 %v2089_v49, %v5950_v42  ;;  %v2091_v28 = vpop.f32.mrb[142].mxu1  ;;  %v2310_v56 = vpop.f32.mrb[140].mxu0 }
 0x244   :  { %v2092_v16 = vadd.f32 %v2091_v28, %v5946_v50  ;;  %v2311_v7 = vadd.f32 %v2310_v56, %v2088_v32  ;;  %v2093_v14 = vpop.f32.mrb[143].mxu1  ;;  %v2312_v30 = vpop.f32.mrb[141].mxu0 }
 0x245   :  { %v2094_v34 = vadd.f32 %v2093_v14, %v5950_v42  ;;  %v2313_v38 = vadd.f32 %v2312_v30, %v2090_v53  ;;  %v2314_v1 = vpop.f32.mrb[142].mxu0  ;;  %3231 = vmatprep.mubr.bf16.mxu0 %v2869_v19  ;;  %v6430_v14 = vld [vmem:[#allocation20_spill] sm:$0xff] }
 0x246   :  { %v2315_v13 = vadd.f32 %v2314_v1, %v2092_v16  ;;  %v2316_v33 = vpop.f32.mrb[143].mxu0  ;;  %2597 = vmatmul.mubr.bf16.gmra.mrb[172].mxu1 %v6425_v61  ;;  %3232 = vmatmul.mubr.bf16.gmra.mrb[212].mxu0 %v2868_v31  ;;  %v2805_v12 = vmax.f32 %v2311_v7, 0.0  ;;  %v6429_v16 = vld [vmem:[#allocation17_spill] sm:$0xff] }
 0x247   :  { %v2317_v35 = vadd.f32 %v2316_v33, %v2094_v34  ;;  %3850 = vmatprep.mubr.msk.bf16.mxu1 %vm1835_vm2, %v6426_v63  ;;  %v2806_v27 = vmax.f32 %v2313_v38, 0.0  ;;  %v6432_v33 = vld [vmem:[#allocation22_spill] sm:$0xff]  ;;  %v6433_v61 = vld [vmem:[#allocation21_spill] sm:$0xff]  ;;  %v6435_v63 = vld [vmem:[#allocation23_spill] sm:$0xff] }
 0x248   :  { %v2808_v22 = vmax.f32 %v2315_v13, 0.0 }
 0x249   :  { %v2809_v36 = vmax.f32 %v2317_v35, 0.0  ;;  %v2097_v37 = vpop.f32.mrb[144].mxu1  ;;  %v6434_v35 = vld [vmem:[#allocation24_spill] sm:$0xff] }
 0x24a   :  { %v2871_v0 = vpack.c.bf16 %v2808_v22, %v2805_v12  ;;  %v2098_v25 = vadd.f32 %v2097_v37, %v5946_v50  ;;  %v2099_v46 = vpop.f32.mrb[145].mxu1  ;;  %v6436_v12 = vld [vmem:[#allocation26_spill] sm:$0xff]  ;;  %v6437_v22 = vld [vmem:[#allocation25_spill] sm:$0xff] }
 0x24b   :  { %v2872_v17 = vpack.c.bf16 %v2809_v36, %v2806_v27  ;;  %v2100_v26 = vadd.f32 %v2099_v46, %v5950_v42  ;;  %v2101_v41 = vpop.f32.mrb[146].mxu1  ;;  %v2320_v23 = vpop.f32.mrb[144].mxu0  ;;  %v6438_v27 = vld [vmem:[#allocation28_spill] sm:$0xff]  ;;  %v6439_v36 = vld [vmem:[#allocation27_spill] sm:$0xff]  ;;  %v6440_v37 = vld [vmem:[#allocation30_spill] sm:$0xff] }
 0x24c   :  { %v2102_v9 = vadd.f32 %v2101_v41, %v5946_v50  ;;  %v2321_v39 = vadd.f32 %v2320_v23, %v2098_v25  ;;  %v2103_v55 = vpop.f32.mrb[147].mxu1  ;;  %v2322_v40 = vpop.f32.mrb[145].mxu0  ;;  %v6442_v25 = vld [vmem:[#allocation32_spill] sm:$0xff]  ;;  %v6443_v46 = vld [vmem:[#allocation31_spill] sm:$0xff] }
 0x24d   :  { %v2104_v21 = vadd.f32 %v2103_v55, %v5950_v42  ;;  %v2323_v43 = vadd.f32 %v2322_v40, %v2100_v26  ;;  %v2324_v47 = vpop.f32.mrb[146].mxu0  ;;  %3239 = vmatprep.mubr.bf16.mxu0 %v2872_v17  ;;  %v6444_v17 = vld [vmem:[#allocation36_spill] sm:$0xff]  ;;  %v6445_v26 = vld [vmem:[#allocation35_spill] sm:$0xff] }
 0x24e   :  { %v2325_v18 = vadd.f32 %v2324_v47, %v2102_v9  ;;  %v2326_v10 = vpop.f32.mrb[147].mxu0  ;;  %2605 = vmatmul.mubr.bf16.gmra.mrb[176].mxu1 %v6427_v4  ;;  %3240 = vmatmul.mubr.bf16.gmra.mrb[216].mxu0 %v2871_v0  ;;  %v2811_v52 = vmax.f32 %v2321_v39, 0.0  ;;  %v6441_v0 = vld [vmem:[#allocation29_spill] sm:$0xff]  ;;  %v6446_v41 = vld [vmem:[#allocation40_spill] sm:$0xff]  ;;  %v6447_v23 = vld [vmem:[#allocation39_spill] sm:$0xff] }
 0x24f   :  { %v2327_v57 = vadd.f32 %v2326_v10, %v2104_v21  ;;  %3851 = vmatprep.mubr.msk.bf16.mxu1 %vm1835_vm2, %v6428_v3  ;;  %v2812_v51 = vmax.f32 %v2323_v43, 0.0  ;;  %v4814_v9 = vld [vmem:[%s6326_s5] sm:$0x7] }
 0x250   :  { %v2814_v8 = vmax.f32 %v2325_v18, 0.0  ;;  %v6448_v39 = vld [vmem:[#allocation2_spill] sm:$0xff] }
 0x251   :  { %v2815_v45 = vmax.f32 %v2327_v57, 0.0  ;;  %v2107_v29 = vpop.f32.mrb[148].mxu1  ;;  %v6144_v55 = vrot.slane %v4814_v9, %v6448_v39 }
 0x252   :  { %v2874_v54 = vpack.c.bf16 %v2814_v8, %v2811_v52  ;;  %v2108_v59 = vadd.f32 %v2107_v29, %v5946_v50  ;;  %v2109_v6 = vpop.f32.mrb[149].mxu1 }
 0x253   :  { %v2875_v5 = vpack.c.bf16 %v2815_v45, %v2812_v51  ;;  %v2110_v15 = vadd.f32 %v2109_v6, %v5950_v42  ;;  %v2111_v24 = vpop.f32.mrb[150].mxu1  ;;  %v2330_v11 = vpop.f32.mrb[148].mxu0 }
 0x254   :  { %v2112_v58 = vadd.f32 %v2111_v24, %v5946_v50  ;;  %v2331_v2 = vadd.f32 %v2330_v11, %v2108_v59  ;;  %v2113_v31 = vpop.f32.mrb[151].mxu1  ;;  %v2332_v32 = vpop.f32.mrb[149].mxu0 }
 0x255   :  { %v2114_v49 = vadd.f32 %v2113_v31, %v5950_v42  ;;  %v2333_v19 = vadd.f32 %v2332_v32, %v2110_v15  ;;  %v2334_v53 = vpop.f32.mrb[150].mxu0  ;;  %3247 = vmatprep.mubr.bf16.mxu0 %v2875_v5  ;;  %v6431_v42 = vld [vmem:[#allocation19_spill] sm:$0xff] }
 0x256   :  { %v2335_v28 = vadd.f32 %v2334_v53, %v2112_v58  ;;  %v2336_v56 = vpop.f32.mrb[151].mxu0  ;;  %2613 = vmatmul.mubr.bf16.gmra.mrb[180].mxu1 %v6429_v16  ;;  %3248 = vmatmul.mubr.bf16.gmra.mrb[220].mxu0 %v2874_v54  ;;  %v2817_v30 = vmax.f32 %v2331_v2, 0.0 }
 0x257   :  { %v2337_v7 = vadd.f32 %v2336_v56, %v2114_v49  ;;  %3852 = vmatprep.mubr.msk.bf16.mxu1 %vm1835_vm2, %v6430_v14  ;;  %v2818_v50 = vmax.f32 %v2333_v19, 0.0 }
 0x258   :  { %v2820_v34 = vmax.f32 %v2335_v28, 0.0 }
 0x259   :  { %v2821_v38 = vmax.f32 %v2337_v7, 0.0 }
 0x25a   :  { %v2877_v1 = vpack.c.bf16 %v2820_v34, %v2817_v30 }
 0x25b   :  { %v2878_v13 = vpack.c.bf16 %v2821_v38, %v2818_v50 }
 0x25d   :  { %3255 = vmatprep.mubr.bf16.mxu0 %v2878_v13 }
 0x25e   :  { %2621 = vmatmul.mubr.bf16.gmra.mrb[184].mxu1 %v6431_v42  ;;  %3256 = vmatmul.mubr.bf16.gmra.mrb[224].mxu0 %v2877_v1 }
 0x25f   :  { %3853 = vmatprep.mubr.msk.bf16.mxu1 %vm1835_vm2, %v6432_v33  ;;  %4120 = vmatprep.mubr.msk.bf16.mxu0 %vm4817_vm3, %v4816_v62 }
 0x266   :  { %2629 = vmatmul.mubr.bf16.gmra.mrb[188].mxu1 %v6433_v61 }
 0x267   :  { %3854 = vmatprep.mubr.msk.bf16.mxu1 %vm1835_vm2, %v6434_v35 }
 0x26e   :  { %2637 = vmatmul.mubr.bf16.gmra.mrb[192].mxu1 %v6435_v63 }
 0x26f   :  { %3855 = vmatprep.mubr.msk.bf16.mxu1 %vm1835_vm2, %v6436_v12 }
 0x276   :  { %2645 = vmatmul.mubr.bf16.gmra.mrb[196].mxu1 %v6437_v22 }
 0x277   :  { %3856 = vmatprep.mubr.msk.bf16.mxu1 %vm1835_vm2, %v6438_v27 }
 0x27e   :  { %2653 = vmatmul.mubr.bf16.gmra.mrb[200].mxu1 %v6439_v36 }
 0x27f   :  { %3857 = vmatprep.mubr.msk.bf16.mxu1 %vm1835_vm2, %v6440_v37 }
 0x286   :  { %2661 = vmatmul.mubr.bf16.gmra.mrb[204].mxu1 %v6441_v0 }
 0x287   :  { %3858 = vmatprep.mubr.msk.bf16.mxu1 %vm1835_vm2, %v6442_v25 }
 0x28e   :  { %2669 = vmatmul.mubr.bf16.gmra.mrb[208].mxu1 %v6443_v46 }
 0x28f   :  { %3859 = vmatprep.mubr.msk.bf16.mxu1 %vm1835_vm2, %v6444_v17 }
 0x296   :  { %2677 = vmatmul.mubr.bf16.gmra.mrb[212].mxu1 %v6445_v26 }
 0x297   :  { %3860 = vmatprep.mubr.msk.bf16.mxu1 %vm1835_vm2, %v6446_v41 }
 0x29e   :  { %2685 = vmatmul.mubr.bf16.gmra.mrb[216].mxu1 %v6447_v23 }
 0x29f   :  { %3861 = vmatprep.mubr.msk.bf16.mxu1 %vm1835_vm2, %v5860_v48 }
 0x2a6   :  { %2693 = vmatmul.mubr.bf16.gmra.mrb[220].mxu1 %v5858_v44 }
 0x2a7   :  { %3862 = vmatprep.mubr.msk.bf16.mxu1 %vm1835_vm2, %v5884_v60 }
 0x2ae   :  { %2701 = vmatmul.mubr.bf16.gmra.mrb[224].mxu1 %v5882_v20 }
 0x2f1   :  { %v2558_v40 = vpop.f32.mrb[152].mxu1 }
 0x2f2   :  { %v4348_v21 = vadd.f32 %v2558_v40, %v6144_v55  ;;  %v2560_v43 = vpop.f32.mrb[153].mxu1 }
 0x2f3   :  { %v2561_v47 = vpop.f32.mrb[154].mxu1 }
 0x2f4   :  { %v4349_v48 = vadd.f32 %v2561_v47, %v6144_v55  ;;  %v2563_v44 = vpop.f32.mrb[155].mxu1  ;;  %v2711_v18 = vmax.f32 %v4348_v21, 0.0 }
 0x2f6   :  { %v2714_v10 = vmax.f32 %v4349_v48, 0.0 }
 0x2f8   :  { %v2825_v60 = vpack.c.bf16 %v2714_v10, %v2711_v18 }
 0x2f9   :  { %v2566_v4 = vpop.f32.mrb[156].mxu1 }
 0x2fa   :  { %v4350_v20 = vadd.f32 %v2566_v4, %v6144_v55  ;;  %v2568_v57 = vpop.f32.mrb[157].mxu1  ;;  %4121 = vmatmul.mubr.bf16.vlgmr.msra.gmra.mrb[152].mxu0 %v2825_v60 }
 0x2fb   :  { %v2569_v3 = vpop.f32.mrb[158].mxu1  ;;  %4124 = vmatprep.mubr.msk.bf16.mxu0 %vm4817_vm3, %v4816_v62 }
 0x2fc   :  { %v4351_v52 = vadd.f32 %v2569_v3, %v6144_v55  ;;  %v2571_v8 = vpop.f32.mrb[159].mxu1  ;;  %v2717_v51 = vmax.f32 %v4350_v20, 0.0 }
 0x2fe   :  { %v2720_v45 = vmax.f32 %v4351_v52, 0.0 }
 0x300   :  { %v2828_v29 = vpack.c.bf16 %v2720_v45, %v2717_v51 }
 0x301   :  { %v2574_v54 = vpop.f32.mrb[160].mxu1 }
 0x302   :  { %v4352_v59 = vadd.f32 %v2574_v54, %v6144_v55  ;;  %v2576_v6 = vpop.f32.mrb[161].mxu1  ;;  %4125 = vmatmul.mubr.bf16.gmra.mrb[156].mxu0 %v2828_v29 }
 0x303   :  { %v2577_v5 = vpop.f32.mrb[162].mxu1  ;;  %4128 = vmatprep.mubr.msk.bf16.mxu0 %vm4817_vm3, %v4816_v62 }
 0x304   :  { %v4353_v15 = vadd.f32 %v2577_v5, %v6144_v55  ;;  %v2579_v24 = vpop.f32.mrb[163].mxu1  ;;  %v2723_v11 = vmax.f32 %v4352_v59, 0.0 }
 0x306   :  { %v2726_v58 = vmax.f32 %v4353_v15, 0.0 }
 0x308   :  { %v2831_v2 = vpack.c.bf16 %v2726_v58, %v2723_v11 }
 0x309   :  { %v2582_v31 = vpop.f32.mrb[164].mxu1 }
 0x30a   :  { %v4354_v32 = vadd.f32 %v2582_v31, %v6144_v55  ;;  %v2584_v49 = vpop.f32.mrb[165].mxu1  ;;  %4129 = vmatmul.mubr.bf16.gmra.mrb[160].mxu0 %v2831_v2 }
 0x30b   :  { %v2585_v19 = vpop.f32.mrb[166].mxu1  ;;  %4132 = vmatprep.mubr.msk.bf16.mxu0 %vm4817_vm3, %v4816_v62 }
 0x30c   :  { %v4355_v53 = vadd.f32 %v2585_v19, %v6144_v55  ;;  %v2587_v28 = vpop.f32.mrb[167].mxu1  ;;  %v2729_v56 = vmax.f32 %v4354_v32, 0.0 }
 0x30e   :  { %v2732_v16 = vmax.f32 %v4355_v53, 0.0 }
 0x310   :  { %v2834_v7 = vpack.c.bf16 %v2732_v16, %v2729_v56 }
 0x311   :  { %v2590_v14 = vpop.f32.mrb[168].mxu1 }
 0x312   :  { %v4356_v30 = vadd.f32 %v2590_v14, %v6144_v55  ;;  %v2592_v34 = vpop.f32.mrb[169].mxu1  ;;  %4133 = vmatmul.mubr.bf16.gmra.mrb[164].mxu0 %v2834_v7 }
 0x313   :  { %v2593_v50 = vpop.f32.mrb[170].mxu1  ;;  %4136 = vmatprep.mubr.msk.bf16.mxu0 %vm4817_vm3, %v4816_v62 }
 0x314   :  { %v4357_v38 = vadd.f32 %v2593_v50, %v6144_v55  ;;  %v2595_v1 = vpop.f32.mrb[171].mxu1  ;;  %v2735_v13 = vmax.f32 %v4356_v30, 0.0 }
 0x316   :  { %v2738_v42 = vmax.f32 %v4357_v38, 0.0 }
 0x318   :  { %v2837_v33 = vpack.c.bf16 %v2738_v42, %v2735_v13 }
 0x319   :  { %v2598_v61 = vpop.f32.mrb[172].mxu1 }
 0x31a   :  { %v4358_v35 = vadd.f32 %v2598_v61, %v6144_v55  ;;  %v2600_v63 = vpop.f32.mrb[173].mxu1  ;;  %4137 = vmatmul.mubr.bf16.gmra.mrb[168].mxu0 %v2837_v33 }
 0x31b   :  { %v2601_v12 = vpop.f32.mrb[174].mxu1  ;;  %4140 = vmatprep.mubr.msk.bf16.mxu0 %vm4817_vm3, %v4816_v62 }
 0x31c   :  { %v4359_v22 = vadd.f32 %v2601_v12, %v6144_v55  ;;  %v2603_v27 = vpop.f32.mrb[175].mxu1  ;;  %v2741_v36 = vmax.f32 %v4358_v35, 0.0 }
 0x31e   :  { %v2744_v37 = vmax.f32 %v4359_v22, 0.0 }
 0x320   :  { %v2840_v0 = vpack.c.bf16 %v2744_v37, %v2741_v36 }
 0x321   :  { %v2606_v25 = vpop.f32.mrb[176].mxu1 }
 0x322   :  { %v4360_v46 = vadd.f32 %v2606_v25, %v6144_v55  ;;  %v2608_v17 = vpop.f32.mrb[177].mxu1  ;;  %4141 = vmatmul.mubr.bf16.gmra.mrb[172].mxu0 %v2840_v0 }
 0x323   :  { %v2609_v26 = vpop.f32.mrb[178].mxu1  ;;  %4144 = vmatprep.mubr.msk.bf16.mxu0 %vm4817_vm3, %v4816_v62 }
 0x324   :  { %v4361_v41 = vadd.f32 %v2609_v26, %v6144_v55  ;;  %v2611_v23 = vpop.f32.mrb[179].mxu1  ;;  %v2747_v9 = vmax.f32 %v4360_v46, 0.0 }
 0x326   :  { %v2750_v39 = vmax.f32 %v4361_v41, 0.0 }
 0x328   :  { %v2843_v40 = vpack.c.bf16 %v2750_v39, %v2747_v9 }
 0x329   :  { %v2614_v21 = vpop.f32.mrb[180].mxu1 }
 0x32a   :  { %v4362_v43 = vadd.f32 %v2614_v21, %v6144_v55  ;;  %v2616_v47 = vpop.f32.mrb[181].mxu1  ;;  %4145 = vmatmul.mubr.bf16.gmra.mrb[176].mxu0 %v2843_v40 }
 0x32b   :  { %v2617_v48 = vpop.f32.mrb[182].mxu1  ;;  %4148 = vmatprep.mubr.msk.bf16.mxu0 %vm4817_vm3, %v4816_v62 }
 0x32c   :  { %v4363_v44 = vadd.f32 %v2617_v48, %v6144_v55  ;;  %v2619_v18 = vpop.f32.mrb[183].mxu1  ;;  %v2753_v10 = vmax.f32 %v4362_v43, 0.0 }
 0x32e   :  { %v2756_v60 = vmax.f32 %v4363_v44, 0.0 }
 0x330   :  { %v2846_v4 = vpack.c.bf16 %v2756_v60, %v2753_v10 }
 0x331   :  { %v2622_v20 = vpop.f32.mrb[184].mxu1 }
 0x332   :  { %v4364_v57 = vadd.f32 %v2622_v20, %v6144_v55  ;;  %v2624_v3 = vpop.f32.mrb[185].mxu1  ;;  %4149 = vmatmul.mubr.bf16.gmra.mrb[180].mxu0 %v2846_v4 }
 0x333   :  { %v2625_v52 = vpop.f32.mrb[186].mxu1  ;;  %4152 = vmatprep.mubr.msk.bf16.mxu0 %vm4817_vm3, %v4816_v62 }
 0x334   :  { %v4365_v8 = vadd.f32 %v2625_v52, %v6144_v55  ;;  %v2627_v51 = vpop.f32.mrb[187].mxu1  ;;  %v2759_v45 = vmax.f32 %v4364_v57, 0.0 }
 0x336   :  { %v2762_v29 = vmax.f32 %v4365_v8, 0.0 }
 0x338   :  { %v2849_v54 = vpack.c.bf16 %v2762_v29, %v2759_v45 }
 0x339   :  { %v2630_v59 = vpop.f32.mrb[188].mxu1 }
 0x33a   :  { %v4366_v6 = vadd.f32 %v2630_v59, %v6144_v55  ;;  %v2632_v5 = vpop.f32.mrb[189].mxu1  ;;  %4153 = vmatmul.mubr.bf16.gmra.mrb[184].mxu0 %v2849_v54 }
 0x33b   :  { %v2633_v15 = vpop.f32.mrb[190].mxu1  ;;  %4156 = vmatprep.mubr.msk.bf16.mxu0 %vm4817_vm3, %v4816_v62 }
 0x33c   :  { %v4367_v24 = vadd.f32 %v2633_v15, %v6144_v55  ;;  %v2635_v11 = vpop.f32.mrb[191].mxu1  ;;  %v2765_v58 = vmax.f32 %v4366_v6, 0.0 }
 0x33e   :  { %v2768_v2 = vmax.f32 %v4367_v24, 0.0 }
 0x340   :  { %v2852_v31 = vpack.c.bf16 %v2768_v2, %v2765_v58 }
 0x341   :  { %v2638_v32 = vpop.f32.mrb[192].mxu1 }
 0x342   :  { %v4368_v49 = vadd.f32 %v2638_v32, %v6144_v55  ;;  %v2640_v19 = vpop.f32.mrb[193].mxu1  ;;  %4157 = vmatmul.mubr.bf16.gmra.mrb[188].mxu0 %v2852_v31 }
 0x343   :  { %v2641_v53 = vpop.f32.mrb[194].mxu1  ;;  %4160 = vmatprep.mubr.msk.bf16.mxu0 %vm4817_vm3, %v4816_v62 }
 0x344   :  { %v4369_v28 = vadd.f32 %v2641_v53, %v6144_v55  ;;  %v2643_v56 = vpop.f32.mrb[195].mxu1  ;;  %v2771_v16 = vmax.f32 %v4368_v49, 0.0 }
 0x346   :  { %v2774_v7 = vmax.f32 %v4369_v28, 0.0 }
 0x348   :  { %v2855_v14 = vpack.c.bf16 %v2774_v7, %v2771_v16 }
 0x349   :  { %v2646_v30 = vpop.f32.mrb[196].mxu1 }
 0x34a   :  { %v4370_v34 = vadd.f32 %v2646_v30, %v6144_v55  ;;  %v2648_v50 = vpop.f32.mrb[197].mxu1  ;;  %4161 = vmatmul.mubr.bf16.gmra.mrb[192].mxu0 %v2855_v14 }
 0x34b   :  { %v2649_v38 = vpop.f32.mrb[198].mxu1  ;;  %4164 = vmatprep.mubr.msk.bf16.mxu0 %vm4817_vm3, %v4816_v62 }
 0x34c   :  { %v4371_v1 = vadd.f32 %v2649_v38, %v6144_v55  ;;  %v2651_v13 = vpop.f32.mrb[199].mxu1  ;;  %v2777_v42 = vmax.f32 %v4370_v34, 0.0 }
 0x34e   :  { %v2780_v33 = vmax.f32 %v4371_v1, 0.0 }
 0x350   :  { %v2858_v61 = vpack.c.bf16 %v2780_v33, %v2777_v42 }
 0x351   :  { %v2654_v35 = vpop.f32.mrb[200].mxu1 }
 0x352   :  { %v4372_v63 = vadd.f32 %v2654_v35, %v6144_v55  ;;  %v2656_v12 = vpop.f32.mrb[201].mxu1  ;;  %4165 = vmatmul.mubr.bf16.gmra.mrb[196].mxu0 %v2858_v61 }
 0x353   :  { %v2657_v22 = vpop.f32.mrb[202].mxu1  ;;  %4168 = vmatprep.mubr.msk.bf16.mxu0 %vm4817_vm3, %v4816_v62 }
 0x354   :  { %v4373_v27 = vadd.f32 %v2657_v22, %v6144_v55  ;;  %v2659_v36 = vpop.f32.mrb[203].mxu1  ;;  %v2783_v37 = vmax.f32 %v4372_v63, 0.0  ;;  %v6223_v63 = vld [vmem:[%s6327_s7] ss:$0 sm:$0xff] }
 0x356   :  { %v2786_v0 = vmax.f32 %v4373_v27, 0.0 }
 0x358   :  { %v2861_v25 = vpack.c.bf16 %v2786_v0, %v2783_v37 }
 0x359   :  { %v2662_v46 = vpop.f32.mrb[204].mxu1 }
 0x35a   :  { %v4374_v17 = vadd.f32 %v2662_v46, %v6144_v55  ;;  %v2664_v26 = vpop.f32.mrb[205].mxu1  ;;  %4169 = vmatmul.mubr.bf16.gmra.mrb[200].mxu0 %v2861_v25 }
 0x35b   :  { %v2665_v41 = vpop.f32.mrb[206].mxu1  ;;  %4172 = vmatprep.mubr.msk.bf16.mxu0 %vm4817_vm3, %v4816_v62 }
 0x35c   :  { %v4375_v23 = vadd.f32 %v2665_v41, %v6144_v55  ;;  %v2667_v9 = vpop.f32.mrb[207].mxu1  ;;  %v2789_v39 = vmax.f32 %v4374_v17, 0.0 }
 0x35e   :  { %v2792_v40 = vmax.f32 %v4375_v23, 0.0 }
 0x360   :  { %v2864_v21 = vpack.c.bf16 %v2792_v40, %v2789_v39 }
 0x361   :  { %v2670_v43 = vpop.f32.mrb[208].mxu1 }
 0x362   :  { %v4376_v47 = vadd.f32 %v2670_v43, %v6144_v55  ;;  %v2672_v48 = vpop.f32.mrb[209].mxu1  ;;  %4173 = vmatmul.mubr.bf16.gmra.mrb[204].mxu0 %v2864_v21 }
 0x363   :  { %v2673_v44 = vpop.f32.mrb[210].mxu1  ;;  %4176 = vmatprep.mubr.msk.bf16.mxu0 %vm4817_vm3, %v4816_v62 }
 0x364   :  { %v4377_v18 = vadd.f32 %v2673_v44, %v6144_v55  ;;  %v2675_v10 = vpop.f32.mrb[211].mxu1  ;;  %v2795_v60 = vmax.f32 %v4376_v47, 0.0 }
 0x366   :  { %v2798_v4 = vmax.f32 %v4377_v18, 0.0 }
 0x368   :  { %v2867_v20 = vpack.c.bf16 %v2798_v4, %v2795_v60 }
 0x369   :  { %v2678_v57 = vpop.f32.mrb[212].mxu1 }
 0x36a   :  { %v4378_v3 = vadd.f32 %v2678_v57, %v6144_v55  ;;  %v2680_v52 = vpop.f32.mrb[213].mxu1  ;;  %4177 = vmatmul.mubr.bf16.gmra.mrb[208].mxu0 %v2867_v20 }
 0x36b   :  { %v2681_v8 = vpop.f32.mrb[214].mxu1  ;;  %4180 = vmatprep.mubr.msk.bf16.mxu0 %vm4817_vm3, %v4816_v62 }
 0x36c   :  { %v4379_v51 = vadd.f32 %v2681_v8, %v6144_v55  ;;  %v2683_v45 = vpop.f32.mrb[215].mxu1  ;;  %v2801_v29 = vmax.f32 %v4378_v3, 0.0 }
 0x36e   :  { %v2804_v54 = vmax.f32 %v4379_v51, 0.0 }
 0x370   :  { %v2870_v59 = vpack.c.bf16 %v2804_v54, %v2801_v29 }
 0x371   :  { %v2686_v6 = vpop.f32.mrb[216].mxu1 }
 0x372   :  { %v4380_v5 = vadd.f32 %v2686_v6, %v6144_v55  ;;  %v2688_v15 = vpop.f32.mrb[217].mxu1  ;;  %4181 = vmatmul.mubr.bf16.gmra.mrb[212].mxu0 %v2870_v59 }
 0x373   :  { %v2689_v24 = vpop.f32.mrb[218].mxu1  ;;  %4184 = vmatprep.mubr.msk.bf16.mxu0 %vm4817_vm3, %v4816_v62 }
 0x374   :  { %v4381_v11 = vadd.f32 %v2689_v24, %v6144_v55  ;;  %v2691_v58 = vpop.f32.mrb[219].mxu1  ;;  %v2807_v2 = vmax.f32 %v4380_v5, 0.0 }
 0x376   :  { %v2810_v31 = vmax.f32 %v4381_v11, 0.0 }
 0x378   :  { %v2873_v32 = vpack.c.bf16 %v2810_v31, %v2807_v2 }
 0x379   :  { %v2694_v49 = vpop.f32.mrb[220].mxu1 }
 0x37a   :  { %v4382_v19 = vadd.f32 %v2694_v49, %v6144_v55  ;;  %v2696_v53 = vpop.f32.mrb[221].mxu1  ;;  %4185 = vmatmul.mubr.bf16.gmra.mrb[216].mxu0 %v2873_v32 }
 0x37b   :  { %v2697_v28 = vpop.f32.mrb[222].mxu1  ;;  %4188 = vmatprep.mubr.msk.bf16.mxu0 %vm4817_vm3, %v4816_v62 }
 0x37c   :  { %v4383_v56 = vadd.f32 %v2697_v28, %v6144_v55  ;;  %v2699_v16 = vpop.f32.mrb[223].mxu1  ;;  %v2813_v7 = vmax.f32 %v4382_v19, 0.0 }
 0x37e   :  { %v2816_v14 = vmax.f32 %v4383_v56, 0.0 }
 0x380   :  { %v2876_v30 = vpack.c.bf16 %v2816_v14, %v2813_v7 }
 0x381   :  { %v2702_v34 = vpop.f32.mrb[224].mxu1 }
 0x382   :  { %v4384_v50 = vadd.f32 %v2702_v34, %v6144_v55  ;;  %v2704_v38 = vpop.f32.mrb[225].mxu1  ;;  %4189 = vmatmul.mubr.bf16.gmra.mrb[220].mxu0 %v2876_v30 }
 0x383   :  { %v2705_v1 = vpop.f32.mrb[226].mxu1  ;;  %4192 = vmatprep.mubr.msk.bf16.mxu0 %vm4817_vm3, %v4816_v62 }
 0x384   :  { %v4385_v13 = vadd.f32 %v2705_v1, %v6144_v55  ;;  %v2707_v42 = vpop.f32.mrb[227].mxu1  ;;  %v2819_v33 = vmax.f32 %v4384_v50, 0.0 }
 0x386   :  { %v2822_v61 = vmax.f32 %v4385_v13, 0.0 }
 0x388   :  { %v2879_v35 = vpack.c.bf16 %v2822_v61, %v2819_v33 }
 0x38a   :  { %4193 = vmatmul.mubr.bf16.gmra.mrb[224].mxu0 %v2879_v35 }
 0x3cd   :  { %v3298_v12 = vpop.f32.mrb[152].mxu0 }
 0x3ce   :  { %v4386_v22 = vadd.f32 %v6223_v63, %v3298_v12  ;;  %v4122_v27 = vpop.f32.mrb[153].mxu0 }
 0x3cf   :  { %v3301_v36 = vpop.f32.mrb[154].mxu0 }
 0x3d0   :  { %v4387_v37 = vadd.f32 %v6223_v63, %v3301_v36  ;;  %v4123_v62 = vpop.f32.mrb[155].mxu0  ;;  %4738 = vtanh.f32 %v4386_v22 }
 0x3d2   :  { %4740 = vtanh.f32 %v4387_v37 }
 0x3d5   :  { %v3306_v55 = vpop.f32.mrb[156].mxu0 }
 0x3d6   :  { %v4388_v0 = vadd.f32 %v6223_v63, %v3306_v55  ;;  %v4126_v25 = vpop.f32.mrb[157].mxu0 }
 0x3d7   :  { %v3309_v46 = vpop.f32.mrb[158].mxu0 }
 0x3d8   :  { %v4389_v17 = vadd.f32 %v6223_v63, %v3309_v46  ;;  %v4127_v26 = vpop.f32.mrb[159].mxu0  ;;  %4742 = vtanh.f32 %v4388_v0 }
 0x3da   :  { %4744 = vtanh.f32 %v4389_v17  ;;  %v4739_v41 = vpop.eup %4738 }
 0x3dc   :  { %v4741_v23 = vpop.eup %4740 }
 0x3dd   :  { %v3967_v9 = vpack.c.bf16 %v4741_v23, %v4739_v41  ;;  %v3314_v39 = vpop.f32.mrb[160].mxu0 }
 0x3de   :  { %v4390_v40 = vadd.f32 %v6223_v63, %v3314_v39  ;;  %v4130_v21 = vpop.f32.mrb[161].mxu0 }
 0x3df   :  { %3968 = vst [vmem:[%s6328_s8] sm:$0xff] %v3967_v9   ;;  %v3317_v43 = vpop.f32.mrb[162].mxu0 }
 0x3e0   :  { %v4391_v47 = vadd.f32 %v6223_v63, %v3317_v43  ;;  %v4131_v48 = vpop.f32.mrb[163].mxu0  ;;  %4746 = vtanh.f32 %v4390_v40 }
 0x3e2   :  { %4748 = vtanh.f32 %v4391_v47  ;;  %v4743_v44 = vpop.eup %4742 }
 0x3e4   :  { %v4745_v18 = vpop.eup %4744 }
 0x3e5   :  { %v3972_v10 = vpack.c.bf16 %v4745_v18, %v4743_v44  ;;  %v3322_v60 = vpop.f32.mrb[164].mxu0 }
 0x3e6   :  { %v4392_v4 = vadd.f32 %v6223_v63, %v3322_v60  ;;  %v4134_v20 = vpop.f32.mrb[165].mxu0 }
 0x3e7   :  { %4059 = vst [vmem:[%s6328_s8 + $0x8] sm:$0xff] %v3972_v10   ;;  %v3325_v57 = vpop.f32.mrb[166].mxu0 }
 0x3e8   :  { %v4393_v3 = vadd.f32 %v6223_v63, %v3325_v57  ;;  %v4135_v52 = vpop.f32.mrb[167].mxu0  ;;  %4750 = vtanh.f32 %v4392_v4 }
 0x3ea   :  { %4752 = vtanh.f32 %v4393_v3  ;;  %v4747_v8 = vpop.eup %4746 }
 0x3ec   :  { %v4749_v51 = vpop.eup %4748 }
 0x3ed   :  { %v3977_v45 = vpack.c.bf16 %v4749_v51, %v4747_v8  ;;  %v3330_v29 = vpop.f32.mrb[168].mxu0 }
 0x3ee   :  { %v4394_v54 = vadd.f32 %v6223_v63, %v3330_v29  ;;  %v4138_v59 = vpop.f32.mrb[169].mxu0 }
 0x3ef   :  { %4060 = vst [vmem:[%s6328_s8 + $0x10] sm:$0xff] %v3977_v45   ;;  %v3333_v6 = vpop.f32.mrb[170].mxu0 }
 0x3f0   :  { %v4395_v5 = vadd.f32 %v6223_v63, %v3333_v6  ;;  %v4139_v15 = vpop.f32.mrb[171].mxu0  ;;  %4754 = vtanh.f32 %v4394_v54 }
 0x3f2   :  { %4756 = vtanh.f32 %v4395_v5  ;;  %v4751_v24 = vpop.eup %4750 }
 0x3f4   :  { %v4753_v11 = vpop.eup %4752 }
 0x3f5   :  { %v3982_v58 = vpack.c.bf16 %v4753_v11, %v4751_v24  ;;  %v3338_v2 = vpop.f32.mrb[172].mxu0 }
 0x3f6   :  { %v4396_v31 = vadd.f32 %v6223_v63, %v3338_v2  ;;  %v4142_v32 = vpop.f32.mrb[173].mxu0 }
 0x3f7   :  { %4061 = vst [vmem:[%s6328_s8 + $0x18] sm:$0xff] %v3982_v58   ;;  %v3341_v49 = vpop.f32.mrb[174].mxu0 }
 0x3f8   :  { %v4397_v19 = vadd.f32 %v6223_v63, %v3341_v49  ;;  %v4143_v53 = vpop.f32.mrb[175].mxu0  ;;  %4758 = vtanh.f32 %v4396_v31 }
 0x3fa   :  { %4760 = vtanh.f32 %v4397_v19  ;;  %v4755_v28 = vpop.eup %4754 }
 0x3fc   :  { %v4757_v56 = vpop.eup %4756 }
 0x3fd   :  { %v3987_v16 = vpack.c.bf16 %v4757_v56, %v4755_v28  ;;  %v3346_v7 = vpop.f32.mrb[176].mxu0 }
 0x3fe   :  { %v4398_v14 = vadd.f32 %v6223_v63, %v3346_v7  ;;  %v4146_v30 = vpop.f32.mrb[177].mxu0 }
 0x3ff   :  { %4062 = vst [vmem:[%s6328_s8 + $0x20] sm:$0xff] %v3987_v16   ;;  %v3349_v34 = vpop.f32.mrb[178].mxu0 }
 0x400   :  { %v4399_v50 = vadd.f32 %v6223_v63, %v3349_v34  ;;  %v4147_v38 = vpop.f32.mrb[179].mxu0  ;;  %4762 = vtanh.f32 %v4398_v14 }
 0x402   :  { %4764 = vtanh.f32 %v4399_v50  ;;  %v4759_v1 = vpop.eup %4758 }
 0x404   :  { %v4761_v13 = vpop.eup %4760 }
 0x405   :  { %v3992_v42 = vpack.c.bf16 %v4761_v13, %v4759_v1  ;;  %v3354_v33 = vpop.f32.mrb[180].mxu0 }
 0x406   :  { %v4400_v61 = vadd.f32 %v6223_v63, %v3354_v33  ;;  %v4150_v35 = vpop.f32.mrb[181].mxu0 }
 0x407   :  { %4063 = vst [vmem:[%s6328_s8 + $0x28] sm:$0xff] %v3992_v42   ;;  %v3357_v12 = vpop.f32.mrb[182].mxu0 }
 0x408   :  { %v4401_v22 = vadd.f32 %v6223_v63, %v3357_v12  ;;  %v4151_v27 = vpop.f32.mrb[183].mxu0  ;;  %4766 = vtanh.f32 %v4400_v61 }
 0x40a   :  { %4768 = vtanh.f32 %v4401_v22  ;;  %v4763_v36 = vpop.eup %4762 }
 0x40c   :  { %v4765_v37 = vpop.eup %4764 }
 0x40d   :  { %v3997_v62 = vpack.c.bf16 %v4765_v37, %v4763_v36  ;;  %v3362_v55 = vpop.f32.mrb[184].mxu0 }
 0x40e   :  { %v4402_v0 = vadd.f32 %v6223_v63, %v3362_v55  ;;  %v4154_v25 = vpop.f32.mrb[185].mxu0 }
 0x40f   :  { %4064 = vst [vmem:[%s6328_s8 + $0x30] sm:$0xff] %v3997_v62   ;;  %v3365_v46 = vpop.f32.mrb[186].mxu0 }
 0x410   :  { %v4403_v17 = vadd.f32 %v6223_v63, %v3365_v46  ;;  %v4155_v26 = vpop.f32.mrb[187].mxu0  ;;  %4770 = vtanh.f32 %v4402_v0 }
 0x412   :  { %4772 = vtanh.f32 %v4403_v17  ;;  %v4767_v41 = vpop.eup %4766 }
 0x414   :  { %v4769_v23 = vpop.eup %4768 }
 0x415   :  { %v4002_v9 = vpack.c.bf16 %v4769_v23, %v4767_v41  ;;  %v3370_v39 = vpop.f32.mrb[188].mxu0 }
 0x416   :  { %v4404_v40 = vadd.f32 %v6223_v63, %v3370_v39  ;;  %v4158_v21 = vpop.f32.mrb[189].mxu0 }
 0x417   :  { %4065 = vst [vmem:[%s6328_s8 + $0x38] sm:$0xff] %v4002_v9   ;;  %v3373_v43 = vpop.f32.mrb[190].mxu0 }
 0x418   :  { %v4405_v47 = vadd.f32 %v6223_v63, %v3373_v43  ;;  %v4159_v48 = vpop.f32.mrb[191].mxu0  ;;  %4774 = vtanh.f32 %v4404_v40 }
 0x41a   :  { %4776 = vtanh.f32 %v4405_v47  ;;  %v4771_v44 = vpop.eup %4770 }
 0x41c   :  { %v4773_v18 = vpop.eup %4772 }
 0x41d   :  { %v4007_v10 = vpack.c.bf16 %v4773_v18, %v4771_v44  ;;  %v3378_v60 = vpop.f32.mrb[192].mxu0 }
 0x41e   :  { %v4406_v4 = vadd.f32 %v6223_v63, %v3378_v60  ;;  %v4162_v20 = vpop.f32.mrb[193].mxu0 }
 0x41f   :  { %4066 = vst [vmem:[%s6328_s8 + $0x40] sm:$0xff] %v4007_v10   ;;  %v3381_v57 = vpop.f32.mrb[194].mxu0 }
 0x420   :  { %v4407_v3 = vadd.f32 %v6223_v63, %v3381_v57  ;;  %v4163_v52 = vpop.f32.mrb[195].mxu0  ;;  %4778 = vtanh.f32 %v4406_v4 }
 0x422   :  { %4780 = vtanh.f32 %v4407_v3  ;;  %v4775_v8 = vpop.eup %4774 }
 0x424   :  { %v4777_v51 = vpop.eup %4776 }
 0x425   :  { %v4012_v45 = vpack.c.bf16 %v4777_v51, %v4775_v8  ;;  %v3386_v29 = vpop.f32.mrb[196].mxu0 }
 0x426   :  { %v4408_v54 = vadd.f32 %v6223_v63, %v3386_v29  ;;  %v4166_v59 = vpop.f32.mrb[197].mxu0 }
 0x427   :  { %4067 = vst [vmem:[%s6328_s8 + $0x48] sm:$0xff] %v4012_v45   ;;  %v3389_v6 = vpop.f32.mrb[198].mxu0 }
 0x428   :  { %v4409_v5 = vadd.f32 %v6223_v63, %v3389_v6  ;;  %v4167_v15 = vpop.f32.mrb[199].mxu0  ;;  %4782 = vtanh.f32 %v4408_v54 }
 0x42a   :  { %4784 = vtanh.f32 %v4409_v5  ;;  %v4779_v24 = vpop.eup %4778 }
 0x42c   :  { %v4781_v11 = vpop.eup %4780 }
 0x42d   :  { %v4017_v58 = vpack.c.bf16 %v4781_v11, %v4779_v24  ;;  %v3394_v2 = vpop.f32.mrb[200].mxu0 }
 0x42e   :  { %v4410_v31 = vadd.f32 %v6223_v63, %v3394_v2  ;;  %v4170_v32 = vpop.f32.mrb[201].mxu0 }
 0x42f   :  { %4068 = vst [vmem:[%s6328_s8 + $0x50] sm:$0xff] %v4017_v58   ;;  %v3397_v49 = vpop.f32.mrb[202].mxu0 }
 0x430   :  { %v4411_v19 = vadd.f32 %v6223_v63, %v3397_v49  ;;  %v4171_v53 = vpop.f32.mrb[203].mxu0  ;;  %4786 = vtanh.f32 %v4410_v31 }
 0x432   :  { %4788 = vtanh.f32 %v4411_v19  ;;  %v4783_v28 = vpop.eup %4782 }
 0x434   :  { %v4785_v56 = vpop.eup %4784 }
 0x435   :  { %v4022_v16 = vpack.c.bf16 %v4785_v56, %v4783_v28  ;;  %v3402_v7 = vpop.f32.mrb[204].mxu0 }
 0x436   :  { %v4412_v14 = vadd.f32 %v6223_v63, %v3402_v7  ;;  %v4174_v30 = vpop.f32.mrb[205].mxu0 }
 0x437   :  { %4069 = vst [vmem:[%s6328_s8 + $0x58] sm:$0xff] %v4022_v16   ;;  %v3405_v34 = vpop.f32.mrb[206].mxu0 }
 0x438   :  { %v4413_v50 = vadd.f32 %v6223_v63, %v3405_v34  ;;  %v4175_v38 = vpop.f32.mrb[207].mxu0  ;;  %4790 = vtanh.f32 %v4412_v14 }
 0x43a   :  { %4792 = vtanh.f32 %v4413_v50  ;;  %v4787_v1 = vpop.eup %4786 }
 0x43c   :  { %v4789_v13 = vpop.eup %4788 }
 0x43d   :  { %v4027_v42 = vpack.c.bf16 %v4789_v13, %v4787_v1  ;;  %v3410_v33 = vpop.f32.mrb[208].mxu0 }
 0x43e   :  { %v4414_v61 = vadd.f32 %v6223_v63, %v3410_v33  ;;  %v4178_v35 = vpop.f32.mrb[209].mxu0 }
 0x43f   :  { %4070 = vst [vmem:[%s6328_s8 + $0x60] sm:$0xff] %v4027_v42   ;;  %v3413_v12 = vpop.f32.mrb[210].mxu0 }
 0x440   :  { %v4415_v22 = vadd.f32 %v6223_v63, %v3413_v12  ;;  %v4179_v27 = vpop.f32.mrb[211].mxu0  ;;  %4794 = vtanh.f32 %v4414_v61 }
 0x442   :  { %4796 = vtanh.f32 %v4415_v22  ;;  %v4791_v36 = vpop.eup %4790 }
 0x444   :  { %v4793_v37 = vpop.eup %4792 }
 0x445   :  { %v4032_v62 = vpack.c.bf16 %v4793_v37, %v4791_v36  ;;  %v3418_v55 = vpop.f32.mrb[212].mxu0 }
 0x446   :  { %v4416_v0 = vadd.f32 %v6223_v63, %v3418_v55  ;;  %v4182_v25 = vpop.f32.mrb[213].mxu0 }
 0x447   :  { %4071 = vst [vmem:[%s6328_s8 + $0x68] sm:$0xff] %v4032_v62   ;;  %v3421_v46 = vpop.f32.mrb[214].mxu0 }
 0x448   :  { %v4417_v17 = vadd.f32 %v6223_v63, %v3421_v46  ;;  %v4183_v26 = vpop.f32.mrb[215].mxu0  ;;  %4798 = vtanh.f32 %v4416_v0 }
 0x44a   :  { %4800 = vtanh.f32 %v4417_v17  ;;  %v4795_v41 = vpop.eup %4794 }
 0x44c   :  { %v4797_v23 = vpop.eup %4796 }
 0x44d   :  { %v4037_v9 = vpack.c.bf16 %v4797_v23, %v4795_v41  ;;  %v3426_v39 = vpop.f32.mrb[216].mxu0 }
 0x44e   :  { %v4418_v40 = vadd.f32 %v6223_v63, %v3426_v39  ;;  %v4186_v21 = vpop.f32.mrb[217].mxu0 }
 0x44f   :  { %4072 = vst [vmem:[%s6328_s8 + $0x70] sm:$0xff] %v4037_v9   ;;  %v3429_v43 = vpop.f32.mrb[218].mxu0 }
 0x450   :  { %v4419_v47 = vadd.f32 %v6223_v63, %v3429_v43  ;;  %v4187_v48 = vpop.f32.mrb[219].mxu0  ;;  %4802 = vtanh.f32 %v4418_v40 }
 0x452   :  { %4804 = vtanh.f32 %v4419_v47  ;;  %v4799_v44 = vpop.eup %4798 }
 0x454   :  { %v4801_v18 = vpop.eup %4800 }
 0x455   :  { %v4042_v10 = vpack.c.bf16 %v4801_v18, %v4799_v44  ;;  %v3434_v60 = vpop.f32.mrb[220].mxu0 }
 0x456   :  { %v4420_v4 = vadd.f32 %v6223_v63, %v3434_v60  ;;  %v4190_v20 = vpop.f32.mrb[221].mxu0 }
 0x457   :  { %4073 = vst [vmem:[%s6328_s8 + $0x78] sm:$0xff] %v4042_v10   ;;  %v3437_v57 = vpop.f32.mrb[222].mxu0 }
 0x458   :  { %v4421_v3 = vadd.f32 %v6223_v63, %v3437_v57  ;;  %v4191_v52 = vpop.f32.mrb[223].mxu0  ;;  %4806 = vtanh.f32 %v4420_v4 }
 0x45a   :  { %4808 = vtanh.f32 %v4421_v3  ;;  %v4803_v8 = vpop.eup %4802 }
 0x45c   :  { %v4805_v51 = vpop.eup %4804 }
 0x45d   :  { %v4047_v45 = vpack.c.bf16 %v4805_v51, %v4803_v8  ;;  %v3442_v29 = vpop.f32.mrb[224].mxu0 }
 0x45e   :  { %v4422_v54 = vadd.f32 %v6223_v63, %v3442_v29  ;;  %v4194_v59 = vpop.f32.mrb[225].mxu0 }
 0x45f   :  { %4074 = vst [vmem:[%s6328_s8 + $0x80] sm:$0xff] %v4047_v45   ;;  %v3445_v6 = vpop.f32.mrb[226].mxu0 }
 0x460   :  { %v4423_v5 = vadd.f32 %v6223_v63, %v3445_v6  ;;  %v4195_v15 = vpop.f32.mrb[227].mxu0  ;;  %4810 = vtanh.f32 %v4422_v54 }
 0x462   :  { %4812 = vtanh.f32 %v4423_v5  ;;  %v4807_v24 = vpop.eup %4806 }
 0x464   :  { %v4809_v11 = vpop.eup %4808 }
 0x465   :  { %v4052_v58 = vpack.c.bf16 %v4809_v11, %v4807_v24 }
 0x467   :  { %4075 = vst [vmem:[%s6328_s8 + $0x88] sm:$0xff] %v4052_v58  }
 0x46a   :  { %v4811_v2 = vpop.eup %4810 }
 0x46c   :  { %v4813_v31 = vpop.eup %4812 }
 0x46d   :  { %v4057_v32 = vpack.c.bf16 %v4813_v31, %v4811_v2 }
 0x46f   :  { %4076 = vst [vmem:[%s6328_s8 + $0x90] sm:$0xff] %v4057_v32  }

</bundles_post_ra>
